<compile_context>
chip_gen: v5e
topology: v5e:2x2
jax: 0.10.0
libtpu: 0.0.40
codegen_flags: <defaults>
</compile_context>

<pallas_src>
import math
from functools import partial

import numpy as np
import jax
import jax.numpy as jnp
from jax.experimental import pallas as pl
from jax.experimental.pallas import tpu as pltpu


# ---------------------------------------------------------------------------
# Shared in-kernel helper (f32 statistics)
# ---------------------------------------------------------------------------

def _ln_f32(x, g, b, eps=1e-5):
    """Row-wise LayerNorm in float32. x:(M,C) f32, g/b:(1,C) f32."""
    mu = jnp.mean(x, axis=-1, keepdims=True)
    xc = x - mu
    var = jnp.mean(xc * xc, axis=-1, keepdims=True)
    return xc * jax.lax.rsqrt(var + eps) * g + b


# ---------------------------------------------------------------------------
# Kernel 1: patch-merge (im2col-matmul + bias + LayerNorm, lane-dense packed out)
# ---------------------------------------------------------------------------

def _patch_merge_kernel(p_ref, w_ref, b_ref, g_ref, bn_ref, o_ref, *, pack):
    p = p_ref[...]                                             # (n_tok, Cin*k*k) bf16
    y = jnp.dot(p, w_ref[...], preferred_element_type=jnp.float32) + b_ref[...]
    y = _ln_f32(y, g_ref[...], bn_ref[...])                    # (n_tok, C) f32
    n_tok, cout = y.shape
    rows = n_tok // pack
    # pack `pack` tokens per 128-lane row: o[r, q*C:(q+1)*C] = y[q*rows + r, :]
    for q in range(pack):
        o_ref[:, q * cout:(q + 1) * cout] = y[q * rows:(q + 1) * rows, :].astype(o_ref.dtype)


def pallas_patch_merge(patches, w_bf16, bias, ln_g, ln_b, *, B, n_tok, cout, pack):
    """patches:(B*n_tok, Kdim) bf16 -> packed tokens:(B, n_tok//pack, pack*cout) f32."""
    Kdim = patches.shape[1]
    full = lambda b: (0, 0)
    return pl.pallas_call(
        partial(_patch_merge_kernel, pack=pack),
        out_shape=jax.ShapeDtypeStruct((B, n_tok // pack, pack * cout), jnp.float32),
        grid=(B,),
        in_specs=[
            pl.BlockSpec((n_tok, Kdim), lambda b: (b, 0)),
            pl.BlockSpec((Kdim, cout), full),
            pl.BlockSpec((1, cout), full),
            pl.BlockSpec((1, cout), full),
            pl.BlockSpec((1, cout), full),
        ],
        out_specs=pl.BlockSpec((None, n_tok // pack, pack * cout), lambda b: (b, 0, 0)),
        compiler_params=pltpu.CompilerParams(
            dimension_semantics=("parallel",),
            vmem_limit_bytes=32 * 1024 * 1024),
    )(patches, w_bf16, bias, ln_g, ln_b)


# ---------------------------------------------------------------------------
# Kernel 2: the whole MixBlock stack in ONE pallas_call
#   grid = (B, depth): batch "parallel" (megacore), depth "arbitrary".
#   The (N, C) activation lives in a VMEM scratch for the whole depth loop;
#   stacked weights are indexed by the depth grid axis (auto double-buffered,
#   so block d+1's weight DMA hides behind block d's compute).
# ---------------------------------------------------------------------------

def _stage_blocks_kernel(x_ref, pool_ref,
                         ln1_g, ln1_b, wq, bq, wk, bk, wv, bv, wo, bo,
                         ln2_g, ln2_b, w1, b1, w2, b2,
                         o_ref, acc_ref, *, num_heads, pack):
    d_idx = pl.program_id(1)
    N, C = acc_ref.shape
    rows = N // pack
    dh = C // num_heads

    # ---- unpack lane-dense input tile into the (N, C) residual scratch (once / b) ----
    @pl.when(d_idx == 0)
    def _():
        for q in range(pack):
            acc_ref[q * rows:(q + 1) * rows, :] = x_ref[:, q * C:(q + 1) * C]

    x = acc_ref[...]                                           # (N, C) f32 residual

    # ---- attention branch (pre-LN, spatially-reduced K/V) ----
    h = _ln_f32(x, ln1_g[...], ln1_b[...])
    h_bf = h.astype(jnp.bfloat16)

    # projections on the MXU in bf16, f32 accumulation (1/sqrt(d) folded into wq/bq)
    q_ = jnp.dot(h_bf, wq[...], preferred_element_type=jnp.float32) + bq[...]
    pooled = jnp.dot(pool_ref[...], h_bf, preferred_element_type=jnp.float32)
    pooled_bf = pooled.astype(jnp.bfloat16)
    k_ = jnp.dot(pooled_bf, wk[...], preferred_element_type=jnp.float32) + bk[...]
    v_ = jnp.dot(pooled_bf, wv[...], preferred_element_type=jnp.float32) + bv[...]

    # multi-head attention: heads are contiguous d-wide lane chunks; the output
    # projection is folded into the head loop (no concatenate / relayout).
    attn_proj = None
    for hd in range(num_heads):
        lo = hd * dh
        qh = q_[:, lo:lo + dh].astype(jnp.bfloat16)            # (N, d)
        kh = k_[:, lo:lo + dh].astype(jnp.bfloat16)            # (Nk, d)
        vh = v_[:, lo:lo + dh].astype(jnp.bfloat16)            # (Nk, d)
        s = jax.lax.dot_general(qh, kh, (((1,), (1,)), ((), ())),
                                preferred_element_type=jnp.float32)   # (N, Nk) f32
        s = s - jnp.max(s, axis=-1, keepdims=True)
        e = jnp.exp(s)
        prob = e * pl.reciprocal(jnp.sum(e, axis=-1, keepdims=True), approx=True)
        oh = jnp.dot(prob.astype(jnp.bfloat16), vh,
                     preferred_element_type=jnp.float32)       # (N, d) f32
        contrib = jnp.dot(oh.astype(jnp.bfloat16), wo[lo:lo + dh, :],
                          preferred_element_type=jnp.float32)  # (N, C) f32
        attn_proj = contrib if attn_proj is None else attn_proj + contrib
    x = x + attn_proj + bo[...]

    # ---- MLP branch (pre-LN) ----
    h2 = _ln_f32(x, ln2_g[...], ln2_b[...])
    m = jnp.dot(h2.astype(jnp.bfloat16), w1[...],
                preferred_element_type=jnp.float32) + b1[...]
    m = jax.nn.gelu(m, approximate=True)
    x = x + jnp.dot(m.astype(jnp.bfloat16), w2[...],
                    preferred_element_type=jnp.float32) + b2[...]

    acc_ref[...] = x

    # ---- store once, lane-dense, after the last block ----
    @pl.when(d_idx == pl.num_programs(1) - 1)
    def _():
        for q in range(pack):
            o_ref[:, q * C:(q + 1) * C] = x[q * rows:(q + 1) * rows, :].astype(o_ref.dtype)


def pallas_stage(tokens_packed, pool_mat, p, *, B, N, C, num_heads, depth, pack):
    """tokens_packed:(B, N//pack, pack*C) f32 -> (B, N//pack, pack*C) f32."""
    Nk = pool_mat.shape[0]
    hidden = p["w1"].shape[-1]
    kernel = partial(_stage_blocks_kernel, num_heads=num_heads, pack=pack)

    act = lambda b, d: (b, 0, 0)     # activation tile: resident across depth
    wgt = lambda b, d: (d, 0, 0)     # stacked weights: indexed by depth
    cst = lambda b, d: (0, 0)        # pooling matrix: fully constant

    return pl.pallas_call(
        kernel,
        out_shape=jax.ShapeDtypeStruct((B, N // pack, pack * C), jnp.float32),
        grid=(B, depth),
        in_specs=[
            pl.BlockSpec((None, N // pack, pack * C), act),                  # tokens
            pl.BlockSpec((Nk, N), cst),                                      # pool matrix
            pl.BlockSpec((None, 1, C), wgt), pl.BlockSpec((None, 1, C), wgt),        # ln1
            pl.BlockSpec((None, C, C), wgt), pl.BlockSpec((None, 1, C), wgt),        # wq,bq
            pl.BlockSpec((None, C, C), wgt), pl.BlockSpec((None, 1, C), wgt),        # wk,bk
            pl.BlockSpec((None, C, C), wgt), pl.BlockSpec((None, 1, C), wgt),        # wv,bv
            pl.BlockSpec((None, C, C), wgt), pl.BlockSpec((None, 1, C), wgt),        # wo,bo
            pl.BlockSpec((None, 1, C), wgt), pl.BlockSpec((None, 1, C), wgt),        # ln2
            pl.BlockSpec((None, C, hidden), wgt), pl.BlockSpec((None, 1, hidden), wgt),  # w1,b1
            pl.BlockSpec((None, hidden, C), wgt), pl.BlockSpec((None, 1, C), wgt),       # w2,b2
        ],
        out_specs=pl.BlockSpec((None, N // pack, pack * C), act),
        scratch_shapes=[pltpu.VMEM((N, C), jnp.float32)],       # residual accumulator
        compiler_params=pltpu.CompilerParams(
            dimension_semantics=("parallel", "arbitrary"),
            vmem_limit_bytes=32 * 1024 * 1024),
    )(tokens_packed, pool_mat,
      p["ln1_g"], p["ln1_b"], p["wq"], p["bq"], p["wk"], p["bk"],
      p["wv"], p["bv"], p["wo"], p["bo"], p["ln2_g"], p["ln2_b"],
      p["w1"], p["b1"], p["w2"], p["b2"])


# ---------------------------------------------------------------------------
# Host-side glue (patch extraction, pooling matrix, layout plumbing)
# ---------------------------------------------------------------------------

def im2col_nchw(x, ksize, stride, pad):
    """Exact PyTorch Conv2d patch extraction (NCHW, OIHW-compatible column order)."""
    B, C, H, W = x.shape
    xp = jnp.pad(x, ((0, 0), (0, 0), (pad, pad), (pad, pad)))
    Ho = (H + 2 * pad - ksize) // stride + 1
    Wo = (W + 2 * pad - ksize) // stride + 1
    cols = []
    for i in range(ksize):
        for j in range(ksize):
            cols.append(xp[:, :, i:i + stride * Ho:stride, j:j + stride * Wo:stride])
    patches = jnp.stack(cols, axis=2)             # (B, C, k*k, Ho, Wo)
    patches = patches.transpose(0, 3, 4, 1, 2)    # (B, Ho, Wo, C, k*k)
    return patches.reshape(B * Ho * Wo, C * ksize * ksize), Ho, Wo


def make_pool_matrix(Hs, Ws, sr):
    """Constant (Nk, N) average-pooling matrix for the K/V spatial reduction."""
    assert Hs % sr == 0 and Ws % sr == 0, "spatial size must be divisible by sr"
    Hp, Wp = Hs // sr, Ws // sr
    P = np.zeros((Hp * Wp, Hs * Ws), np.float32)
    inv = 1.0 / (sr * sr)
    for pr in range(Hp):
        for pc in range(Wp):
            pi = pr * Wp + pc
            for dr in range(sr):
                for dc in range(sr):
                    P[pi, (pr * sr + dr) * Ws + (pc * sr + dc)] = inv
    return jnp.asarray(P, jnp.bfloat16)


def stage_module_forward(X, params, *, kernel_size, out_channels, num_heads,
                         down_scale_ratio):
    """X: NCHW (B, Cin, H, W) -> NCHW (B, Cout, H//2, W//2)."""
    B = X.shape[0]
    patches, Ho, Wo = im2col_nchw(X, kernel_size, stride=2, pad=kernel_size // 2)
    patches = patches.astype(jnp.bfloat16)        # halve HBM traffic of the patches
    N, C = Ho * Wo, out_channels

    # token packing factor: pack tokens so kernel tiles present a full 128-lane row.
    pack = 128 // C if (C <= 128 and 128 % C == 0 and N % max(1, 128 // C) == 0) else 1

    tokens_packed = pallas_patch_merge(
        patches, params["conv_w"], params["conv_b"],
        params["pm_ln_g"], params["pm_ln_b"],
        B=B, n_tok=N, cout=C, pack=pack)          # (B, N//pack, pack*C) f32

    pool = make_pool_matrix(Ho, Wo, down_scale_ratio)
    depth = params["wq"].shape[0]
    out_packed = pallas_stage(tokens_packed, pool, params, B=B, N=N, C=C,
                              num_heads=num_heads, depth=depth, pack=pack)

    # unpack lane-dense rows: packed[b, r, q*C:(q+1)*C] == token (q*(N//pack) + r)
    tok = (out_packed.reshape(B, N // pack, pack, C)
                     .transpose(0, 2, 1, 3)
                     .reshape(B, N, C))
    return tok.reshape(B, Ho, Wo, C).transpose(0, 3, 1, 2)     # back to NCHW


# ---------------------------------------------------------------------------
# Deterministic parameter init (weights bf16 for the MXU, depth-stacked; LN/bias f32)
# ---------------------------------------------------------------------------

def init_params(key, in_ch, out_ch, ksize, depth, num_heads, mlp_ratio=4):
    hidden = mlp_ratio * out_ch
    qscale = 1.0 / math.sqrt(out_ch // num_heads)   # attention scale folded into wq/bq
    kc, kq, kk, kv, ko, k1, k2 = jax.random.split(key, 7)
    nrm = lambda k, shape, s: s * jax.random.normal(k, shape, dtype=jnp.float32)
    return {
        # matmul-ready conv weight: (Cin*k*k, Cout), bf16
        "conv_w": nrm(kc, (in_ch * ksize * ksize, out_ch), 0.1).astype(jnp.bfloat16),
        "conv_b": jnp.zeros((1, out_ch), jnp.float32),
        "pm_ln_g": jnp.ones((1, out_ch), jnp.float32),
        "pm_ln_b": jnp.zeros((1, out_ch), jnp.float32),
        # MixBlock weights stacked along a leading depth axis
        "ln1_g": jnp.ones((depth, 1, out_ch), jnp.float32),
        "ln1_b": jnp.zeros((depth, 1, out_ch), jnp.float32),
        "wq": (nrm(kq, (depth, out_ch, out_ch), 0.05) * qscale).astype(jnp.bfloat16),
        "bq": jnp.zeros((depth, 1, out_ch), jnp.float32),       # (zeros; scale folded)
        "wk": nrm(kk, (depth, out_ch, out_ch), 0.05).astype(jnp.bfloat16),
        "bk": jnp.zeros((depth, 1, out_ch), jnp.float32),
        "wv": nrm(kv, (depth, out_ch, out_ch), 0.05).astype(jnp.bfloat16),
        "bv": jnp.zeros((depth, 1, out_ch), jnp.float32),
        "wo": nrm(ko, (depth, out_ch, out_ch), 0.05).astype(jnp.bfloat16),
        "bo": jnp.zeros((depth, 1, out_ch), jnp.float32),
        "ln2_g": jnp.ones((depth, 1, out_ch), jnp.float32),
        "ln2_b": jnp.zeros((depth, 1, out_ch), jnp.float32),
        "w1": nrm(k1, (depth, out_ch, hidden), 0.05).astype(jnp.bfloat16),
        "b1": jnp.zeros((depth, 1, hidden), jnp.float32),
        "w2": nrm(k2, (depth, hidden, out_ch), 0.05).astype(jnp.bfloat16),
        "b2": jnp.zeros((depth, 1, out_ch), jnp.float32),
    }


# ---------------------------------------------------------------------------
# Driver
# ---------------------------------------------------------------------------

if __name__ == "__main__":
    # StageModuleTfBlock(in_channels=4, out_channles=32, kernel_size=3, depth=2,
    #                    down_resolution=8, num_heads=4, down_scale_ratio=2)
    B, in_ch, H, W = 2, 4, 16, 16
    out_ch, ksize, depth = 32, 3, 2
    num_heads, sr = 4, 2

    key = jax.random.PRNGKey(0)
    kx, kp = jax.random.split(key)
    X = jax.random.normal(kx, (B, in_ch, H, W), dtype=jnp.float32)
    params = init_params(kp, in_ch, out_ch, ksize, depth, num_heads)

    fwd = jax.jit(partial(stage_module_forward,
                          kernel_size=ksize, out_channels=out_ch,
                          num_heads=num_heads, down_scale_ratio=sr))
    out = fwd(X, params)
    jax.block_until_ready(out)

    assert out.shape == (B, out_ch, H // 2, W // 2), out.shape
    assert bool(jnp.all(jnp.isfinite(out)))
    print("KERNEL_OK")
</pallas_src>

<mosaic_0001>
module attributes {stable_mosaic.version = 11 : i64} {
  func.func @_patch_merge_kernel(%arg0: i32, %arg1: memref<64x36xbf16, #tpu.memory_space<vmem>>, %arg2: memref<36x32xbf16, #tpu.memory_space<vmem>>, %arg3: memref<1x32xf32, #tpu.memory_space<vmem>>, %arg4: memref<1x32xf32, #tpu.memory_space<vmem>>, %arg5: memref<1x32xf32, #tpu.memory_space<vmem>>, %arg6: memref<1x16x128xf32, #tpu.memory_space<vmem>>) attributes {dimension_semantics = [#tpu.dimension_semantics<parallel>], iteration_bounds = array<i64: 2>, scalar_prefetch = 0 : i64, scratch_operands = 0 : i64, tpu.core_type = #tpu.core_type<tc>, window_params = [{transform_indices = @transform_0, window_bounds = array<i64: 64, 36>}, {pipeline_mode = #tpu.pipeline_mode<synchronous>, transform_indices = @transform_1, window_bounds = array<i64: 36, 32>}, {pipeline_mode = #tpu.pipeline_mode<synchronous>, transform_indices = @transform_2, window_bounds = array<i64: 1, 32>}, {pipeline_mode = #tpu.pipeline_mode<synchronous>, transform_indices = @transform_3, window_bounds = array<i64: 1, 32>}, {pipeline_mode = #tpu.pipeline_mode<synchronous>, transform_indices = @transform_4, window_bounds = array<i64: 1, 32>}, {transform_indices = @transform_5, window_bounds = array<i64: 1, 16, 128>}]} {
    %c0 = arith.constant 0 : index
    %c0_0 = arith.constant 0 : index
    %0 = vector.load %arg1[%c0, %c0_0] : memref<64x36xbf16, #tpu.memory_space<vmem>>, vector<64x36xbf16>
    %c0_1 = arith.constant 0 : index
    %c0_2 = arith.constant 0 : index
    %1 = vector.load %arg2[%c0_1, %c0_2] : memref<36x32xbf16, #tpu.memory_space<vmem>>, vector<36x32xbf16>
    %cst = arith.constant dense<0.000000e+00> : vector<64x32xf32>
    %2 = tpu.matmul %0, %1, %cst {dimension_numbers = #tpu.dot_dimension_numbers<[1], [0], [0], [1], [0, 0, 1, 1], [], []>} : vector<64x36xbf16>, vector<36x32xbf16>, vector<64x32xf32> -> vector<64x32xf32>
    %c0_3 = arith.constant 0 : index
    %c0_4 = arith.constant 0 : index
    %3 = vector.load %arg3[%c0_3, %c0_4] : memref<1x32xf32, #tpu.memory_space<vmem>>, vector<1x32xf32>
    %4 = vector.broadcast %3 : vector<1x32xf32> to vector<64x32xf32>
    %5 = arith.addf %2, %4 : vector<64x32xf32>
    %c0_5 = arith.constant 0 : index
    %c0_6 = arith.constant 0 : index
    %6 = vector.load %arg4[%c0_5, %c0_6] : memref<1x32xf32, #tpu.memory_space<vmem>>, vector<1x32xf32>
    %c0_7 = arith.constant 0 : index
    %c0_8 = arith.constant 0 : index
    %7 = vector.load %arg5[%c0_7, %c0_8] : memref<1x32xf32, #tpu.memory_space<vmem>>, vector<1x32xf32>
    %cst_9 = arith.constant dense<0.000000e+00> : vector<64xf32>
    %8 = vector.multi_reduction <add>, %5, %cst_9 [1] : vector<64x32xf32> to vector<64xf32>
    %9 = vector.shape_cast %8 : vector<64xf32> to vector<64x1xf32>
    %cst_10 = arith.constant 3.200000e+01 : f32
    %10 = vector.broadcast %cst_10 : f32 to vector<64x1xf32>
    %11 = arith.divf %9, %10 : vector<64x1xf32>
    %12 = vector.broadcast %11 : vector<64x1xf32> to vector<64x32xf32>
    %13 = arith.subf %5, %12 : vector<64x32xf32>
    %14 = arith.mulf %13, %13 : vector<64x32xf32>
    %cst_11 = arith.constant dense<0.000000e+00> : vector<64xf32>
    %15 = vector.multi_reduction <add>, %14, %cst_11 [1] : vector<64x32xf32> to vector<64xf32>
    %16 = vector.shape_cast %15 : vector<64xf32> to vector<64x1xf32>
    %cst_12 = arith.constant 3.200000e+01 : f32
    %17 = vector.broadcast %cst_12 : f32 to vector<64x1xf32>
    %18 = arith.divf %16, %17 : vector<64x1xf32>
    %cst_13 = arith.constant 9.99999974E-6 : f32
    %19 = vector.broadcast %cst_13 : f32 to vector<64x1xf32>
    %20 = arith.addf %18, %19 : vector<64x1xf32>
    %21 = math.rsqrt %20 : vector<64x1xf32>
    %22 = vector.broadcast %21 : vector<64x1xf32> to vector<64x32xf32>
    %23 = arith.mulf %13, %22 : vector<64x32xf32>
    %24 = vector.broadcast %6 : vector<1x32xf32> to vector<64x32xf32>
    %25 = arith.mulf %23, %24 : vector<64x32xf32>
    %26 = vector.broadcast %7 : vector<1x32xf32> to vector<64x32xf32>
    %27 = arith.addf %25, %26 : vector<64x32xf32>
    %28 = vector.extract_strided_slice %27 {offsets = [0, 0], sizes = [16, 32], strides = [1, 1]} : vector<64x32xf32> to vector<16x32xf32>
    %c0_14 = arith.constant 0 : index
    %c0_15 = arith.constant 0 : index
    %c0_16 = arith.constant 0 : index
    %29 = vector.load %arg6[%c0_14, %c0_15, %c0_16] : memref<1x16x128xf32, #tpu.memory_space<vmem>>, vector<1x16x32xf32>
    %30 = vector.shape_cast %29 : vector<1x16x32xf32> to vector<16x32xf32>
    %31 = vector.shape_cast %28 : vector<16x32xf32> to vector<1x16x32xf32>
    tpu.vector_store %arg6[%c0_14, %c0_15, %c0_16], %31 {strides = array<i32>} : memref<1x16x128xf32, #tpu.memory_space<vmem>>, vector<1x16x32xf32>,
    %32 = vector.extract_strided_slice %27 {offsets = [16, 0], sizes = [16, 32], strides = [1, 1]} : vector<64x32xf32> to vector<16x32xf32>
    %c0_17 = arith.constant 0 : index
    %c0_18 = arith.constant 0 : index
    %c32 = arith.constant 32 : index
    %33 = vector.load %arg6[%c0_17, %c0_18, %c32] : memref<1x16x128xf32, #tpu.memory_space<vmem>>, vector<1x16x32xf32>
    %34 = vector.shape_cast %33 : vector<1x16x32xf32> to vector<16x32xf32>
    %35 = vector.shape_cast %32 : vector<16x32xf32> to vector<1x16x32xf32>
    tpu.vector_store %arg6[%c0_17, %c0_18, %c32], %35 {strides = array<i32>} : memref<1x16x128xf32, #tpu.memory_space<vmem>>, vector<1x16x32xf32>,
    %36 = vector.extract_strided_slice %27 {offsets = [32, 0], sizes = [16, 32], strides = [1, 1]} : vector<64x32xf32> to vector<16x32xf32>
    %c0_19 = arith.constant 0 : index
    %c0_20 = arith.constant 0 : index
    %c64 = arith.constant 64 : index
    %37 = vector.load %arg6[%c0_19, %c0_20, %c64] : memref<1x16x128xf32, #tpu.memory_space<vmem>>, vector<1x16x32xf32>
    %38 = vector.shape_cast %37 : vector<1x16x32xf32> to vector<16x32xf32>
    %39 = vector.shape_cast %36 : vector<16x32xf32> to vector<1x16x32xf32>
    tpu.vector_store %arg6[%c0_19, %c0_20, %c64], %39 {strides = array<i32>} : memref<1x16x128xf32, #tpu.memory_space<vmem>>, vector<1x16x32xf32>,
    %40 = vector.extract_strided_slice %27 {offsets = [48, 0], sizes = [16, 32], strides = [1, 1]} : vector<64x32xf32> to vector<16x32xf32>
    %c0_21 = arith.constant 0 : index
    %c0_22 = arith.constant 0 : index
    %c96 = arith.constant 96 : index
    %41 = vector.load %arg6[%c0_21, %c0_22, %c96] : memref<1x16x128xf32, #tpu.memory_space<vmem>>, vector<1x16x32xf32>
    %42 = vector.shape_cast %41 : vector<1x16x32xf32> to vector<16x32xf32>
    %43 = vector.shape_cast %40 : vector<16x32xf32> to vector<1x16x32xf32>
    tpu.vector_store %arg6[%c0_21, %c0_22, %c96], %43 {strides = array<i32>} : memref<1x16x128xf32, #tpu.memory_space<vmem>>, vector<1x16x32xf32>,
    return
  }
  func.func @transform_0(%arg0: i32) -> (i32, i32) {
    %c0_i32 = arith.constant 0 : i32
    %c0_i32_0 = arith.constant 0 : i32
    return %arg0, %c0_i32 : i32, i32
  }
  func.func @transform_1(%arg0: i32) -> (i32, i32) {
    %c0_i32 = arith.constant 0 : i32
    %c0_i32_0 = arith.constant 0 : i32
    %c0_i32_1 = arith.constant 0 : i32
    return %c0_i32, %c0_i32_0 : i32, i32
  }
  func.func @transform_2(%arg0: i32) -> (i32, i32) {
    %c0_i32 = arith.constant 0 : i32
    %c0_i32_0 = arith.constant 0 : i32
    %c0_i32_1 = arith.constant 0 : i32
    return %c0_i32, %c0_i32_0 : i32, i32
  }
  func.func @transform_3(%arg0: i32) -> (i32, i32) {
    %c0_i32 = arith.constant 0 : i32
    %c0_i32_0 = arith.constant 0 : i32
    %c0_i32_1 = arith.constant 0 : i32
    return %c0_i32, %c0_i32_0 : i32, i32
  }
  func.func @transform_4(%arg0: i32) -> (i32, i32) {
    %c0_i32 = arith.constant 0 : i32
    %c0_i32_0 = arith.constant 0 : i32
    %c0_i32_1 = arith.constant 0 : i32
    return %c0_i32, %c0_i32_0 : i32, i32
  }
  func.func @transform_5(%arg0: i32) -> (i32, i32, i32) {
    %c0_i32 = arith.constant 0 : i32
    %c0_i32_0 = arith.constant 0 : i32
    %c0_i32_1 = arith.constant 0 : i32
    return %arg0, %c0_i32, %c0_i32_0 : i32, i32, i32
  }
}

module attributes {stable_mosaic.version = 11 : i64} {
  func.func @_stage_blocks_kernel(%arg0: i32, %arg1: i32, %arg2: memref<1x16x128xf32, #tpu.memory_space<vmem>>, %arg3: memref<16x64xbf16, #tpu.memory_space<vmem>>, %arg4: memref<1x1x32xf32, #tpu.memory_space<vmem>>, %arg5: memref<1x1x32xf32, #tpu.memory_space<vmem>>, %arg6: memref<1x32x32xbf16, #tpu.memory_space<vmem>>, %arg7: memref<1x1x32xf32, #tpu.memory_space<vmem>>, %arg8: memref<1x32x32xbf16, #tpu.memory_space<vmem>>, %arg9: memref<1x1x32xf32, #tpu.memory_space<vmem>>, %arg10: memref<1x32x32xbf16, #tpu.memory_space<vmem>>, %arg11: memref<1x1x32xf32, #tpu.memory_space<vmem>>, %arg12: memref<1x32x32xbf16, #tpu.memory_space<vmem>>, %arg13: memref<1x1x32xf32, #tpu.memory_space<vmem>>, %arg14: memref<1x1x32xf32, #tpu.memory_space<vmem>>, %arg15: memref<1x1x32xf32, #tpu.memory_space<vmem>>, %arg16: memref<1x32x128xbf16, #tpu.memory_space<vmem>>, %arg17: memref<1x1x128xf32, #tpu.memory_space<vmem>>, %arg18: memref<1x128x32xbf16, #tpu.memory_space<vmem>>, %arg19: memref<1x1x32xf32, #tpu.memory_space<vmem>>, %arg20: memref<1x16x128xf32, #tpu.memory_space<vmem>>, %arg21: memref<64x32xf32, #tpu.memory_space<vmem>>) attributes {dimension_semantics = [#tpu.dimension_semantics<parallel>, #tpu.dimension_semantics<arbitrary>], iteration_bounds = array<i64: 2, 2>, scalar_prefetch = 0 : i64, scratch_operands = 1 : i64, tpu.core_type = #tpu.core_type<tc>, window_params = [{transform_indices = @transform_0, window_bounds = array<i64: 1, 16, 128>}, {pipeline_mode = #tpu.pipeline_mode<synchronous>, transform_indices = @transform_1, window_bounds = array<i64: 16, 64>}, {transform_indices = @transform_2, window_bounds = array<i64: 1, 1, 32>}, {transform_indices = @transform_3, window_bounds = array<i64: 1, 1, 32>}, {transform_indices = @transform_4, window_bounds = array<i64: 1, 32, 32>}, {transform_indices = @transform_5, window_bounds = array<i64: 1, 1, 32>}, {transform_indices = @transform_6, window_bounds = array<i64: 1, 32, 32>}, {transform_indices = @transform_7, window_bounds = array<i64: 1, 1, 32>}, {transform_indices = @transform_8, window_bounds = array<i64: 1, 32, 32>}, {transform_indices = @transform_9, window_bounds = array<i64: 1, 1, 32>}, {transform_indices = @transform_10, window_bounds = array<i64: 1, 32, 32>}, {transform_indices = @transform_11, window_bounds = array<i64: 1, 1, 32>}, {transform_indices = @transform_12, window_bounds = array<i64: 1, 1, 32>}, {transform_indices = @transform_13, window_bounds = array<i64: 1, 1, 32>}, {transform_indices = @transform_14, window_bounds = array<i64: 1, 32, 128>}, {transform_indices = @transform_15, window_bounds = array<i64: 1, 1, 128>}, {transform_indices = @transform_16, window_bounds = array<i64: 1, 128, 32>}, {transform_indices = @transform_17, window_bounds = array<i64: 1, 1, 32>}, {transform_indices = @transform_18, window_bounds = array<i64: 1, 16, 128>}]} {
    %c0_i32 = arith.constant 0 : i32
    %0 = arith.cmpi eq, %arg1, %c0_i32 : i32
    %1 = arith.extui %0 : i1 to i32
    %c0_i32_0 = arith.constant 0 : i32
    %2 = arith.cmpi ne, %1, %c0_i32_0 : i32
    scf.if %2 {
      %c0_100 = arith.constant 0 : index
      %c0_101 = arith.constant 0 : index
      %c0_102 = arith.constant 0 : index
      %211 = vector.load %arg2[%c0_100, %c0_101, %c0_102] : memref<1x16x128xf32, #tpu.memory_space<vmem>>, vector<1x16x32xf32>
      %212 = vector.shape_cast %211 : vector<1x16x32xf32> to vector<16x32xf32>
      %c0_103 = arith.constant 0 : index
      %c0_104 = arith.constant 0 : index
      %213 = vector.load %arg21[%c0_103, %c0_104] : memref<64x32xf32, #tpu.memory_space<vmem>>, vector<16x32xf32>
      tpu.vector_store %arg21[%c0_103, %c0_104], %212 {strides = array<i32>} : memref<64x32xf32, #tpu.memory_space<vmem>>, vector<16x32xf32>,
      %c0_105 = arith.constant 0 : index
      %c0_106 = arith.constant 0 : index
      %c32 = arith.constant 32 : index
      %214 = vector.load %arg2[%c0_105, %c0_106, %c32] : memref<1x16x128xf32, #tpu.memory_space<vmem>>, vector<1x16x32xf32>
      %215 = vector.shape_cast %214 : vector<1x16x32xf32> to vector<16x32xf32>
      %c16_107 = arith.constant 16 : index
      %c0_108 = arith.constant 0 : index
      %216 = vector.load %arg21[%c16_107, %c0_108] : memref<64x32xf32, #tpu.memory_space<vmem>>, vector<16x32xf32>
      tpu.vector_store %arg21[%c16_107, %c0_108], %215 {strides = array<i32>} : memref<64x32xf32, #tpu.memory_space<vmem>>, vector<16x32xf32>,
      %c0_109 = arith.constant 0 : index
      %c0_110 = arith.constant 0 : index
      %c64 = arith.constant 64 : index
      %217 = vector.load %arg2[%c0_109, %c0_110, %c64] : memref<1x16x128xf32, #tpu.memory_space<vmem>>, vector<1x16x32xf32>
      %218 = vector.shape_cast %217 : vector<1x16x32xf32> to vector<16x32xf32>
      %c32_111 = arith.constant 32 : index
      %c0_112 = arith.constant 0 : index
      %219 = vector.load %arg21[%c32_111, %c0_112] : memref<64x32xf32, #tpu.memory_space<vmem>>, vector<16x32xf32>
      tpu.vector_store %arg21[%c32_111, %c0_112], %218 {strides = array<i32>} : memref<64x32xf32, #tpu.memory_space<vmem>>, vector<16x32xf32>,
      %c0_113 = arith.constant 0 : index
      %c0_114 = arith.constant 0 : index
      %c96 = arith.constant 96 : index
      %220 = vector.load %arg2[%c0_113, %c0_114, %c96] : memref<1x16x128xf32, #tpu.memory_space<vmem>>, vector<1x16x32xf32>
      %221 = vector.shape_cast %220 : vector<1x16x32xf32> to vector<16x32xf32>
      %c48 = arith.constant 48 : index
      %c0_115 = arith.constant 0 : index
      %222 = vector.load %arg21[%c48, %c0_115] : memref<64x32xf32, #tpu.memory_space<vmem>>, vector<16x32xf32>
      tpu.vector_store %arg21[%c48, %c0_115], %221 {strides = array<i32>} : memref<64x32xf32, #tpu.memory_space<vmem>>, vector<16x32xf32>,
    } else {
    }
    %c0 = arith.constant 0 : index
    %c0_1 = arith.constant 0 : index
    %3 = vector.load %arg21[%c0, %c0_1] : memref<64x32xf32, #tpu.memory_space<vmem>>, vector<64x32xf32>
    %c0_2 = arith.constant 0 : index
    %c0_3 = arith.constant 0 : index
    %c0_4 = arith.constant 0 : index
    %4 = vector.load %arg4[%c0_2, %c0_3, %c0_4] : memref<1x1x32xf32, #tpu.memory_space<vmem>>, vector<1x1x32xf32>
    %5 = vector.shape_cast %4 : vector<1x1x32xf32> to vector<1x32xf32>
    %c0_5 = arith.constant 0 : index
    %c0_6 = arith.constant 0 : index
    %c0_7 = arith.constant 0 : index
    %6 = vector.load %arg5[%c0_5, %c0_6, %c0_7] : memref<1x1x32xf32, #tpu.memory_space<vmem>>, vector<1x1x32xf32>
    %7 = vector.shape_cast %6 : vector<1x1x32xf32> to vector<1x32xf32>
    %cst = arith.constant dense<0.000000e+00> : vector<64xf32>
    %8 = vector.multi_reduction <add>, %3, %cst [1] : vector<64x32xf32> to vector<64xf32>
    %9 = vector.shape_cast %8 : vector<64xf32> to vector<64x1xf32>
    %cst_8 = arith.constant 3.200000e+01 : f32
    %10 = vector.broadcast %cst_8 : f32 to vector<64x1xf32>
    %11 = arith.divf %9, %10 : vector<64x1xf32>
    %12 = vector.broadcast %11 : vector<64x1xf32> to vector<64x32xf32>
    %13 = arith.subf %3, %12 : vector<64x32xf32>
    %14 = arith.mulf %13, %13 : vector<64x32xf32>
    %cst_9 = arith.constant dense<0.000000e+00> : vector<64xf32>
    %15 = vector.multi_reduction <add>, %14, %cst_9 [1] : vector<64x32xf32> to vector<64xf32>
    %16 = vector.shape_cast %15 : vector<64xf32> to vector<64x1xf32>
    %cst_10 = arith.constant 3.200000e+01 : f32
    %17 = vector.broadcast %cst_10 : f32 to vector<64x1xf32>
    %18 = arith.divf %16, %17 : vector<64x1xf32>
    %cst_11 = arith.constant 9.99999974E-6 : f32
    %19 = vector.broadcast %cst_11 : f32 to vector<64x1xf32>
    %20 = arith.addf %18, %19 : vector<64x1xf32>
    %21 = math.rsqrt %20 : vector<64x1xf32>
    %22 = vector.broadcast %21 : vector<64x1xf32> to vector<64x32xf32>
    %23 = arith.mulf %13, %22 : vector<64x32xf32>
    %24 = vector.broadcast %5 : vector<1x32xf32> to vector<64x32xf32>
    %25 = arith.mulf %23, %24 : vector<64x32xf32>
    %26 = vector.broadcast %7 : vector<1x32xf32> to vector<64x32xf32>
    %27 = arith.addf %25, %26 : vector<64x32xf32>
    %28 = arith.truncf %27 : vector<64x32xf32> to vector<64x32xbf16>
    %c0_12 = arith.constant 0 : index
    %c0_13 = arith.constant 0 : index
    %c0_14 = arith.constant 0 : index
    %29 = vector.load %arg6[%c0_12, %c0_13, %c0_14] : memref<1x32x32xbf16, #tpu.memory_space<vmem>>, vector<1x32x32xbf16>
    %30 = vector.shape_cast %29 : vector<1x32x32xbf16> to vector<32x32xbf16>
    %cst_15 = arith.constant dense<0.000000e+00> : vector<64x32xf32>
    %31 = tpu.matmul %28, %30, %cst_15 {dimension_numbers = #tpu.dot_dimension_numbers<[1], [0], [0], [1], [0, 0, 1, 1], [], []>} : vector<64x32xbf16>, vector<32x32xbf16>, vector<64x32xf32> -> vector<64x32xf32>
    %c0_16 = arith.constant 0 : index
    %c0_17 = arith.constant 0 : index
    %c0_18 = arith.constant 0 : index
    %32 = vector.load %arg7[%c0_16, %c0_17, %c0_18] : memref<1x1x32xf32, #tpu.memory_space<vmem>>, vector<1x1x32xf32>
    %33 = vector.shape_cast %32 : vector<1x1x32xf32> to vector<1x32xf32>
    %34 = vector.broadcast %33 : vector<1x32xf32> to vector<64x32xf32>
    %35 = arith.addf %31, %34 : vector<64x32xf32>
    %c0_19 = arith.constant 0 : index
    %c0_20 = arith.constant 0 : index
    %36 = vector.load %arg3[%c0_19, %c0_20] : memref<16x64xbf16, #tpu.memory_space<vmem>>, vector<16x64xbf16>
    %cst_21 = arith.constant dense<0.000000e+00> : vector<16x32xf32>
    %37 = tpu.matmul %36, %28, %cst_21 {dimension_numbers = #tpu.dot_dimension_numbers<[1], [0], [0], [1], [0, 0, 1, 1], [], []>} : vector<16x64xbf16>, vector<64x32xbf16>, vector<16x32xf32> -> vector<16x32xf32>
    %38 = arith.truncf %37 : vector<16x32xf32> to vector<16x32xbf16>
    %c0_22 = arith.constant 0 : index
    %c0_23 = arith.constant 0 : index
    %c0_24 = arith.constant 0 : index
    %39 = vector.load %arg8[%c0_22, %c0_23, %c0_24] : memref<1x32x32xbf16, #tpu.memory_space<vmem>>, vector<1x32x32xbf16>
    %40 = vector.shape_cast %39 : vector<1x32x32xbf16> to vector<32x32xbf16>
    %cst_25 = arith.constant dense<0.000000e+00> : vector<16x32xf32>
    %41 = tpu.matmul %38, %40, %cst_25 {dimension_numbers = #tpu.dot_dimension_numbers<[1], [0], [0], [1], [0, 0, 1, 1], [], []>} : vector<16x32xbf16>, vector<32x32xbf16>, vector<16x32xf32> -> vector<16x32xf32>
    %c0_26 = arith.constant 0 : index
    %c0_27 = arith.constant 0 : index
    %c0_28 = arith.constant 0 : index
    %42 = vector.load %arg9[%c0_26, %c0_27, %c0_28] : memref<1x1x32xf32, #tpu.memory_space<vmem>>, vector<1x1x32xf32>
    %43 = vector.shape_cast %42 : vector<1x1x32xf32> to vector<1x32xf32>
    %44 = vector.broadcast %43 : vector<1x32xf32> to vector<16x32xf32>
    %45 = arith.addf %41, %44 : vector<16x32xf32>
    %c0_29 = arith.constant 0 : index
    %c0_30 = arith.constant 0 : index
    %c0_31 = arith.constant 0 : index
    %46 = vector.load %arg10[%c0_29, %c0_30, %c0_31] : memref<1x32x32xbf16, #tpu.memory_space<vmem>>, vector<1x32x32xbf16>
    %47 = vector.shape_cast %46 : vector<1x32x32xbf16> to vector<32x32xbf16>
    %cst_32 = arith.constant dense<0.000000e+00> : vector<16x32xf32>
    %48 = tpu.matmul %38, %47, %cst_32 {dimension_numbers = #tpu.dot_dimension_numbers<[1], [0], [0], [1], [0, 0, 1, 1], [], []>} : vector<16x32xbf16>, vector<32x32xbf16>, vector<16x32xf32> -> vector<16x32xf32>
    %c0_33 = arith.constant 0 : index
    %c0_34 = arith.constant 0 : index
    %c0_35 = arith.constant 0 : index
    %49 = vector.load %arg11[%c0_33, %c0_34, %c0_35] : memref<1x1x32xf32, #tpu.memory_space<vmem>>, vector<1x1x32xf32>
    %50 = vector.shape_cast %49 : vector<1x1x32xf32> to vector<1x32xf32>
    %51 = vector.broadcast %50 : vector<1x32xf32> to vector<16x32xf32>
    %52 = arith.addf %48, %51 : vector<16x32xf32>
    %53 = vector.extract_strided_slice %35 {offsets = [0, 0], sizes = [64, 8], strides = [1, 1]} : vector<64x32xf32> to vector<64x8xf32>
    %54 = arith.truncf %53 : vector<64x8xf32> to vector<64x8xbf16>
    %55 = vector.extract_strided_slice %45 {offsets = [0, 0], sizes = [16, 8], strides = [1, 1]} : vector<16x32xf32> to vector<16x8xf32>
    %56 = arith.truncf %55 : vector<16x8xf32> to vector<16x8xbf16>
    %57 = vector.extract_strided_slice %52 {offsets = [0, 0], sizes = [16, 8], strides = [1, 1]} : vector<16x32xf32> to vector<16x8xf32>
    %58 = arith.truncf %57 : vector<16x8xf32> to vector<16x8xbf16>
    %cst_36 = arith.constant dense<0.000000e+00> : vector<64x16xf32>
    %59 = tpu.matmul %54, %56, %cst_36 {dimension_numbers = #tpu.dot_dimension_numbers<[1], [1], [0], [0], [0, 0, 1, 0], [], []>} : vector<64x8xbf16>, vector<16x8xbf16>, vector<64x16xf32> -> vector<64x16xf32>
    %cst_37 = arith.constant dense<0xFF800000> : vector<64xf32>
    %60 = vector.multi_reduction <maximumf>, %59, %cst_37 [1] : vector<64x16xf32> to vector<64xf32>
    %61 = vector.shape_cast %60 : vector<64xf32> to vector<64x1xf32>
    %62 = vector.broadcast %61 : vector<64x1xf32> to vector<64x16xf32>
    %63 = arith.subf %59, %62 : vector<64x16xf32>
    %64 = math.exp %63 : vector<64x16xf32>
    %cst_38 = arith.constant dense<0.000000e+00> : vector<64xf32>
    %65 = vector.multi_reduction <add>, %64, %cst_38 [1] : vector<64x16xf32> to vector<64xf32>
    %66 = vector.shape_cast %65 : vector<64xf32> to vector<64x1xf32>
    %67 = tpu.reciprocal %66 {approx = true} : vector<64x1xf32> -> vector<64x1xf32>
    %68 = vector.broadcast %67 : vector<64x1xf32> to vector<64x16xf32>
    %69 = arith.mulf %64, %68 : vector<64x16xf32>
    %70 = arith.truncf %69 : vector<64x16xf32> to vector<64x16xbf16>
    %cst_39 = arith.constant dense<0.000000e+00> : vector<64x8xf32>
    %71 = tpu.matmul %70, %58, %cst_39 {dimension_numbers = #tpu.dot_dimension_numbers<[1], [0], [0], [1], [0, 0, 1, 1], [], []>} : vector<64x16xbf16>, vector<16x8xbf16>, vector<64x8xf32> -> vector<64x8xf32>
    %72 = arith.truncf %71 : vector<64x8xf32> to vector<64x8xbf16>
    %c0_40 = arith.constant 0 : index
    %c0_41 = arith.constant 0 : index
    %c0_42 = arith.constant 0 : index
    %73 = vector.load %arg12[%c0_40, %c0_41, %c0_42] : memref<1x32x32xbf16, #tpu.memory_space<vmem>>, vector<1x8x32xbf16>
    %74 = vector.shape_cast %73 : vector<1x8x32xbf16> to vector<8x32xbf16>
    %cst_43 = arith.constant dense<0.000000e+00> : vector<64x32xf32>
    %75 = tpu.matmul %72, %74, %cst_43 {dimension_numbers = #tpu.dot_dimension_numbers<[1], [0], [0], [1], [0, 0, 1, 1], [], []>} : vector<64x8xbf16>, vector<8x32xbf16>, vector<64x32xf32> -> vector<64x32xf32>
    %76 = vector.extract_strided_slice %35 {offsets = [0, 8], sizes = [64, 8], strides = [1, 1]} : vector<64x32xf32> to vector<64x8xf32>
    %77 = arith.truncf %76 : vector<64x8xf32> to vector<64x8xbf16>
    %78 = vector.extract_strided_slice %45 {offsets = [0, 8], sizes = [16, 8], strides = [1, 1]} : vector<16x32xf32> to vector<16x8xf32>
    %79 = arith.truncf %78 : vector<16x8xf32> to vector<16x8xbf16>
    %80 = vector.extract_strided_slice %52 {offsets = [0, 8], sizes = [16, 8], strides = [1, 1]} : vector<16x32xf32> to vector<16x8xf32>
    %81 = arith.truncf %80 : vector<16x8xf32> to vector<16x8xbf16>
    %cst_44 = arith.constant dense<0.000000e+00> : vector<64x16xf32>
    %82 = tpu.matmul %77, %79, %cst_44 {dimension_numbers = #tpu.dot_dimension_numbers<[1], [1], [0], [0], [0, 0, 1, 0], [], []>} : vector<64x8xbf16>, vector<16x8xbf16>, vector<64x16xf32> -> vector<64x16xf32>
    %cst_45 = arith.constant dense<0xFF800000> : vector<64xf32>
    %83 = vector.multi_reduction <maximumf>, %82, %cst_45 [1] : vector<64x16xf32> to vector<64xf32>
    %84 = vector.shape_cast %83 : vector<64xf32> to vector<64x1xf32>
    %85 = vector.broadcast %84 : vector<64x1xf32> to vector<64x16xf32>
    %86 = arith.subf %82, %85 : vector<64x16xf32>
    %87 = math.exp %86 : vector<64x16xf32>
    %cst_46 = arith.constant dense<0.000000e+00> : vector<64xf32>
    %88 = vector.multi_reduction <add>, %87, %cst_46 [1] : vector<64x16xf32> to vector<64xf32>
    %89 = vector.shape_cast %88 : vector<64xf32> to vector<64x1xf32>
    %90 = tpu.reciprocal %89 {approx = true} : vector<64x1xf32> -> vector<64x1xf32>
    %91 = vector.broadcast %90 : vector<64x1xf32> to vector<64x16xf32>
    %92 = arith.mulf %87, %91 : vector<64x16xf32>
    %93 = arith.truncf %92 : vector<64x16xf32> to vector<64x16xbf16>
    %cst_47 = arith.constant dense<0.000000e+00> : vector<64x8xf32>
    %94 = tpu.matmul %93, %81, %cst_47 {dimension_numbers = #tpu.dot_dimension_numbers<[1], [0], [0], [1], [0, 0, 1, 1], [], []>} : vector<64x16xbf16>, vector<16x8xbf16>, vector<64x8xf32> -> vector<64x8xf32>
    %95 = arith.truncf %94 : vector<64x8xf32> to vector<64x8xbf16>
    %c0_48 = arith.constant 0 : index
    %c8 = arith.constant 8 : index
    %c0_49 = arith.constant 0 : index
    %96 = vector.load %arg12[%c0_48, %c8, %c0_49] : memref<1x32x32xbf16, #tpu.memory_space<vmem>>, vector<1x8x32xbf16>
    %97 = vector.shape_cast %96 : vector<1x8x32xbf16> to vector<8x32xbf16>
    %cst_50 = arith.constant dense<0.000000e+00> : vector<64x32xf32>
    %98 = tpu.matmul %95, %97, %cst_50 {dimension_numbers = #tpu.dot_dimension_numbers<[1], [0], [0], [1], [0, 0, 1, 1], [], []>} : vector<64x8xbf16>, vector<8x32xbf16>, vector<64x32xf32> -> vector<64x32xf32>
    %99 = arith.addf %75, %98 : vector<64x32xf32>
    %100 = vector.extract_strided_slice %35 {offsets = [0, 16], sizes = [64, 8], strides = [1, 1]} : vector<64x32xf32> to vector<64x8xf32>
    %101 = arith.truncf %100 : vector<64x8xf32> to vector<64x8xbf16>
    %102 = vector.extract_strided_slice %45 {offsets = [0, 16], sizes = [16, 8], strides = [1, 1]} : vector<16x32xf32> to vector<16x8xf32>
    %103 = arith.truncf %102 : vector<16x8xf32> to vector<16x8xbf16>
    %104 = vector.extract_strided_slice %52 {offsets = [0, 16], sizes = [16, 8], strides = [1, 1]} : vector<16x32xf32> to vector<16x8xf32>
    %105 = arith.truncf %104 : vector<16x8xf32> to vector<16x8xbf16>
    %cst_51 = arith.constant dense<0.000000e+00> : vector<64x16xf32>
    %106 = tpu.matmul %101, %103, %cst_51 {dimension_numbers = #tpu.dot_dimension_numbers<[1], [1], [0], [0], [0, 0, 1, 0], [], []>} : vector<64x8xbf16>, vector<16x8xbf16>, vector<64x16xf32> -> vector<64x16xf32>
    %cst_52 = arith.constant dense<0xFF800000> : vector<64xf32>
    %107 = vector.multi_reduction <maximumf>, %106, %cst_52 [1] : vector<64x16xf32> to vector<64xf32>
    %108 = vector.shape_cast %107 : vector<64xf32> to vector<64x1xf32>
    %109 = vector.broadcast %108 : vector<64x1xf32> to vector<64x16xf32>
    %110 = arith.subf %106, %109 : vector<64x16xf32>
    %111 = math.exp %110 : vector<64x16xf32>
    %cst_53 = arith.constant dense<0.000000e+00> : vector<64xf32>
    %112 = vector.multi_reduction <add>, %111, %cst_53 [1] : vector<64x16xf32> to vector<64xf32>
    %113 = vector.shape_cast %112 : vector<64xf32> to vector<64x1xf32>
    %114 = tpu.reciprocal %113 {approx = true} : vector<64x1xf32> -> vector<64x1xf32>
    %115 = vector.broadcast %114 : vector<64x1xf32> to vector<64x16xf32>
    %116 = arith.mulf %111, %115 : vector<64x16xf32>
    %117 = arith.truncf %116 : vector<64x16xf32> to vector<64x16xbf16>
    %cst_54 = arith.constant dense<0.000000e+00> : vector<64x8xf32>
    %118 = tpu.matmul %117, %105, %cst_54 {dimension_numbers = #tpu.dot_dimension_numbers<[1], [0], [0], [1], [0, 0, 1, 1], [], []>} : vector<64x16xbf16>, vector<16x8xbf16>, vector<64x8xf32> -> vector<64x8xf32>
    %119 = arith.truncf %118 : vector<64x8xf32> to vector<64x8xbf16>
    %c0_55 = arith.constant 0 : index
    %c16 = arith.constant 16 : index
    %c0_56 = arith.constant 0 : index
    %120 = vector.load %arg12[%c0_55, %c16, %c0_56] : memref<1x32x32xbf16, #tpu.memory_space<vmem>>, vector<1x8x32xbf16>
    %121 = vector.shape_cast %120 : vector<1x8x32xbf16> to vector<8x32xbf16>
    %cst_57 = arith.constant dense<0.000000e+00> : vector<64x32xf32>
    %122 = tpu.matmul %119, %121, %cst_57 {dimension_numbers = #tpu.dot_dimension_numbers<[1], [0], [0], [1], [0, 0, 1, 1], [], []>} : vector<64x8xbf16>, vector<8x32xbf16>, vector<64x32xf32> -> vector<64x32xf32>
    %123 = arith.addf %99, %122 : vector<64x32xf32>
    %124 = vector.extract_strided_slice %35 {offsets = [0, 24], sizes = [64, 8], strides = [1, 1]} : vector<64x32xf32> to vector<64x8xf32>
    %125 = arith.truncf %124 : vector<64x8xf32> to vector<64x8xbf16>
    %126 = vector.extract_strided_slice %45 {offsets = [0, 24], sizes = [16, 8], strides = [1, 1]} : vector<16x32xf32> to vector<16x8xf32>
    %127 = arith.truncf %126 : vector<16x8xf32> to vector<16x8xbf16>
    %128 = vector.extract_strided_slice %52 {offsets = [0, 24], sizes = [16, 8], strides = [1, 1]} : vector<16x32xf32> to vector<16x8xf32>
    %129 = arith.truncf %128 : vector<16x8xf32> to vector<16x8xbf16>
    %cst_58 = arith.constant dense<0.000000e+00> : vector<64x16xf32>
    %130 = tpu.matmul %125, %127, %cst_58 {dimension_numbers = #tpu.dot_dimension_numbers<[1], [1], [0], [0], [0, 0, 1, 0], [], []>} : vector<64x8xbf16>, vector<16x8xbf16>, vector<64x16xf32> -> vector<64x16xf32>
    %cst_59 = arith.constant dense<0xFF800000> : vector<64xf32>
    %131 = vector.multi_reduction <maximumf>, %130, %cst_59 [1] : vector<64x16xf32> to vector<64xf32>
    %132 = vector.shape_cast %131 : vector<64xf32> to vector<64x1xf32>
    %133 = vector.broadcast %132 : vector<64x1xf32> to vector<64x16xf32>
    %134 = arith.subf %130, %133 : vector<64x16xf32>
    %135 = math.exp %134 : vector<64x16xf32>
    %cst_60 = arith.constant dense<0.000000e+00> : vector<64xf32>
    %136 = vector.multi_reduction <add>, %135, %cst_60 [1] : vector<64x16xf32> to vector<64xf32>
    %137 = vector.shape_cast %136 : vector<64xf32> to vector<64x1xf32>
    %138 = tpu.reciprocal %137 {approx = true} : vector<64x1xf32> -> vector<64x1xf32>
    %139 = vector.broadcast %138 : vector<64x1xf32> to vector<64x16xf32>
    %140 = arith.mulf %135, %139 : vector<64x16xf32>
    %141 = arith.truncf %140 : vector<64x16xf32> to vector<64x16xbf16>
    %cst_61 = arith.constant dense<0.000000e+00> : vector<64x8xf32>
    %142 = tpu.matmul %141, %129, %cst_61 {dimension_numbers = #tpu.dot_dimension_numbers<[1], [0], [0], [1], [0, 0, 1, 1], [], []>} : vector<64x16xbf16>, vector<16x8xbf16>, vector<64x8xf32> -> vector<64x8xf32>
    %143 = arith.truncf %142 : vector<64x8xf32> to vector<64x8xbf16>
    %c0_62 = arith.constant 0 : index
    %c24 = arith.constant 24 : index
    %c0_63 = arith.constant 0 : index
    %144 = vector.load %arg12[%c0_62, %c24, %c0_63] : memref<1x32x32xbf16, #tpu.memory_space<vmem>>, vector<1x8x32xbf16>
    %145 = vector.shape_cast %144 : vector<1x8x32xbf16> to vector<8x32xbf16>
    %cst_64 = arith.constant dense<0.000000e+00> : vector<64x32xf32>
    %146 = tpu.matmul %143, %145, %cst_64 {dimension_numbers = #tpu.dot_dimension_numbers<[1], [0], [0], [1], [0, 0, 1, 1], [], []>} : vector<64x8xbf16>, vector<8x32xbf16>, vector<64x32xf32> -> vector<64x32xf32>
    %147 = arith.addf %123, %146 : vector<64x32xf32>
    %148 = arith.addf %3, %147 : vector<64x32xf32>
    %c0_65 = arith.constant 0 : index
    %c0_66 = arith.constant 0 : index
    %c0_67 = arith.constant 0 : index
    %149 = vector.load %arg13[%c0_65, %c0_66, %c0_67] : memref<1x1x32xf32, #tpu.memory_space<vmem>>, vector<1x1x32xf32>
    %150 = vector.shape_cast %149 : vector<1x1x32xf32> to vector<1x32xf32>
    %151 = vector.broadcast %150 : vector<1x32xf32> to vector<64x32xf32>
    %152 = arith.addf %148, %151 : vector<64x32xf32>
    %c0_68 = arith.constant 0 : index
    %c0_69 = arith.constant 0 : index
    %c0_70 = arith.constant 0 : index
    %153 = vector.load %arg14[%c0_68, %c0_69, %c0_70] : memref<1x1x32xf32, #tpu.memory_space<vmem>>, vector<1x1x32xf32>
    %154 = vector.shape_cast %153 : vector<1x1x32xf32> to vector<1x32xf32>
    %c0_71 = arith.constant 0 : index
    %c0_72 = arith.constant 0 : index
    %c0_73 = arith.constant 0 : index
    %155 = vector.load %arg15[%c0_71, %c0_72, %c0_73] : memref<1x1x32xf32, #tpu.memory_space<vmem>>, vector<1x1x32xf32>
    %156 = vector.shape_cast %155 : vector<1x1x32xf32> to vector<1x32xf32>
    %cst_74 = arith.constant dense<0.000000e+00> : vector<64xf32>
    %157 = vector.multi_reduction <add>, %152, %cst_74 [1] : vector<64x32xf32> to vector<64xf32>
    %158 = vector.shape_cast %157 : vector<64xf32> to vector<64x1xf32>
    %cst_75 = arith.constant 3.200000e+01 : f32
    %159 = vector.broadcast %cst_75 : f32 to vector<64x1xf32>
    %160 = arith.divf %158, %159 : vector<64x1xf32>
    %161 = vector.broadcast %160 : vector<64x1xf32> to vector<64x32xf32>
    %162 = arith.subf %152, %161 : vector<64x32xf32>
    %163 = arith.mulf %162, %162 : vector<64x32xf32>
    %cst_76 = arith.constant dense<0.000000e+00> : vector<64xf32>
    %164 = vector.multi_reduction <add>, %163, %cst_76 [1] : vector<64x32xf32> to vector<64xf32>
    %165 = vector.shape_cast %164 : vector<64xf32> to vector<64x1xf32>
    %cst_77 = arith.constant 3.200000e+01 : f32
    %166 = vector.broadcast %cst_77 : f32 to vector<64x1xf32>
    %167 = arith.divf %165, %166 : vector<64x1xf32>
    %cst_78 = arith.constant 9.99999974E-6 : f32
    %168 = vector.broadcast %cst_78 : f32 to vector<64x1xf32>
    %169 = arith.addf %167, %168 : vector<64x1xf32>
    %170 = math.rsqrt %169 : vector<64x1xf32>
    %171 = vector.broadcast %170 : vector<64x1xf32> to vector<64x32xf32>
    %172 = arith.mulf %162, %171 : vector<64x32xf32>
    %173 = vector.broadcast %154 : vector<1x32xf32> to vector<64x32xf32>
    %174 = arith.mulf %172, %173 : vector<64x32xf32>
    %175 = vector.broadcast %156 : vector<1x32xf32> to vector<64x32xf32>
    %176 = arith.addf %174, %175 : vector<64x32xf32>
    %177 = arith.truncf %176 : vector<64x32xf32> to vector<64x32xbf16>
    %c0_79 = arith.constant 0 : index
    %c0_80 = arith.constant 0 : index
    %c0_81 = arith.constant 0 : index
    %178 = vector.load %arg16[%c0_79, %c0_80, %c0_81] : memref<1x32x128xbf16, #tpu.memory_space<vmem>>, vector<1x32x128xbf16>
    %179 = vector.shape_cast %178 : vector<1x32x128xbf16> to vector<32x128xbf16>
    %cst_82 = arith.constant dense<0.000000e+00> : vector<64x128xf32>
    %180 = tpu.matmul %177, %179, %cst_82 {dimension_numbers = #tpu.dot_dimension_numbers<[1], [0], [0], [1], [0, 0, 1, 1], [], []>} : vector<64x32xbf16>, vector<32x128xbf16>, vector<64x128xf32> -> vector<64x128xf32>
    %c0_83 = arith.constant 0 : index
    %c0_84 = arith.constant 0 : index
    %c0_85 = arith.constant 0 : index
    %181 = vector.load %arg17[%c0_83, %c0_84, %c0_85] : memref<1x1x128xf32, #tpu.memory_space<vmem>>, vector<1x1x128xf32>
    %182 = vector.shape_cast %181 : vector<1x1x128xf32> to vector<1x128xf32>
    %183 = vector.broadcast %182 : vector<1x128xf32> to vector<64x128xf32>
    %184 = arith.addf %180, %183 : vector<64x128xf32>
    %185 = arith.mulf %184, %184 : vector<64x128xf32>
    %186 = arith.mulf %184, %185 : vector<64x128xf32>
    %cst_86 = arith.constant 4.471500e-02 : f32
    %187 = vector.broadcast %cst_86 : f32 to vector<64x128xf32>
    %188 = arith.mulf %187, %186 : vector<64x128xf32>
    %189 = arith.addf %184, %188 : vector<64x128xf32>
    %cst_87 = arith.constant 0.797884583 : f32
    %190 = vector.broadcast %cst_87 : f32 to vector<64x128xf32>
    %191 = arith.mulf %190, %189 : vector<64x128xf32>
    %192 = math.tanh %191 : vector<64x128xf32>
    %cst_88 = arith.constant 1.000000e+00 : f32
    %193 = vector.broadcast %cst_88 : f32 to vector<64x128xf32>
    %194 = arith.addf %193, %192 : vector<64x128xf32>
    %cst_89 = arith.constant 5.000000e-01 : f32
    %195 = vector.broadcast %cst_89 : f32 to vector<64x128xf32>
    %196 = arith.mulf %195, %194 : vector<64x128xf32>
    %197 = arith.mulf %184, %196 : vector<64x128xf32>
    %198 = arith.truncf %197 : vector<64x128xf32> to vector<64x128xbf16>
    %c0_90 = arith.constant 0 : index
    %c0_91 = arith.constant 0 : index
    %c0_92 = arith.constant 0 : index
    %199 = vector.load %arg18[%c0_90, %c0_91, %c0_92] : memref<1x128x32xbf16, #tpu.memory_space<vmem>>, vector<1x128x32xbf16>
    %200 = vector.shape_cast %199 : vector<1x128x32xbf16> to vector<128x32xbf16>
    %cst_93 = arith.constant dense<0.000000e+00> : vector<64x32xf32>
    %201 = tpu.matmul %198, %200, %cst_93 {dimension_numbers = #tpu.dot_dimension_numbers<[1], [0], [0], [1], [0, 0, 1, 1], [], []>} : vector<64x128xbf16>, vector<128x32xbf16>, vector<64x32xf32> -> vector<64x32xf32>
    %202 = arith.addf %152, %201 : vector<64x32xf32>
    %c0_94 = arith.constant 0 : index
    %c0_95 = arith.constant 0 : index
    %c0_96 = arith.constant 0 : index
    %203 = vector.load %arg19[%c0_94, %c0_95, %c0_96] : memref<1x1x32xf32, #tpu.memory_space<vmem>>, vector<1x1x32xf32>
    %204 = vector.shape_cast %203 : vector<1x1x32xf32> to vector<1x32xf32>
    %205 = vector.broadcast %204 : vector<1x32xf32> to vector<64x32xf32>
    %206 = arith.addf %202, %205 : vector<64x32xf32>
    %c0_97 = arith.constant 0 : index
    %c0_98 = arith.constant 0 : index
    %207 = vector.load %arg21[%c0_97, %c0_98] : memref<64x32xf32, #tpu.memory_space<vmem>>, vector<64x32xf32>
    tpu.vector_store %arg21[%c0_97, %c0_98], %206 {strides = array<i32>} : memref<64x32xf32, #tpu.memory_space<vmem>>, vector<64x32xf32>,
    %c1_i32 = arith.constant 1 : i32
    %208 = arith.cmpi eq, %arg1, %c1_i32 : i32
    %209 = arith.extui %208 : i1 to i32
    %c0_i32_99 = arith.constant 0 : i32
    %210 = arith.cmpi ne, %209, %c0_i32_99 : i32
    scf.if %210 {
      %211 = vector.extract_strided_slice %206 {offsets = [0, 0], sizes = [16, 32], strides = [1, 1]} : vector<64x32xf32> to vector<16x32xf32>
      %c0_100 = arith.constant 0 : index
      %c0_101 = arith.constant 0 : index
      %c0_102 = arith.constant 0 : index
      %212 = vector.load %arg20[%c0_100, %c0_101, %c0_102] : memref<1x16x128xf32, #tpu.memory_space<vmem>>, vector<1x16x32xf32>
      %213 = vector.shape_cast %212 : vector<1x16x32xf32> to vector<16x32xf32>
      %214 = vector.shape_cast %211 : vector<16x32xf32> to vector<1x16x32xf32>
      tpu.vector_store %arg20[%c0_100, %c0_101, %c0_102], %214 {strides = array<i32>} : memref<1x16x128xf32, #tpu.memory_space<vmem>>, vector<1x16x32xf32>,
      %215 = vector.extract_strided_slice %206 {offsets = [16, 0], sizes = [16, 32], strides = [1, 1]} : vector<64x32xf32> to vector<16x32xf32>
      %c0_103 = arith.constant 0 : index
      %c0_104 = arith.constant 0 : index
      %c32 = arith.constant 32 : index
      %216 = vector.load %arg20[%c0_103, %c0_104, %c32] : memref<1x16x128xf32, #tpu.memory_space<vmem>>, vector<1x16x32xf32>
      %217 = vector.shape_cast %216 : vector<1x16x32xf32> to vector<16x32xf32>
      %218 = vector.shape_cast %215 : vector<16x32xf32> to vector<1x16x32xf32>
      tpu.vector_store %arg20[%c0_103, %c0_104, %c32], %218 {strides = array<i32>} : memref<1x16x128xf32, #tpu.memory_space<vmem>>, vector<1x16x32xf32>,
      %219 = vector.extract_strided_slice %206 {offsets = [32, 0], sizes = [16, 32], strides = [1, 1]} : vector<64x32xf32> to vector<16x32xf32>
      %c0_105 = arith.constant 0 : index
      %c0_106 = arith.constant 0 : index
      %c64 = arith.constant 64 : index
      %220 = vector.load %arg20[%c0_105, %c0_106, %c64] : memref<1x16x128xf32, #tpu.memory_space<vmem>>, vector<1x16x32xf32>
      %221 = vector.shape_cast %220 : vector<1x16x32xf32> to vector<16x32xf32>
      %222 = vector.shape_cast %219 : vector<16x32xf32> to vector<1x16x32xf32>
      tpu.vector_store %arg20[%c0_105, %c0_106, %c64], %222 {strides = array<i32>} : memref<1x16x128xf32, #tpu.memory_space<vmem>>, vector<1x16x32xf32>,
      %223 = vector.extract_strided_slice %206 {offsets = [48, 0], sizes = [16, 32], strides = [1, 1]} : vector<64x32xf32> to vector<16x32xf32>
      %c0_107 = arith.constant 0 : index
      %c0_108 = arith.constant 0 : index
      %c96 = arith.constant 96 : index
      %224 = vector.load %arg20[%c0_107, %c0_108, %c96] : memref<1x16x128xf32, #tpu.memory_space<vmem>>, vector<1x16x32xf32>
      %225 = vector.shape_cast %224 : vector<1x16x32xf32> to vector<16x32xf32>
      %226 = vector.shape_cast %223 : vector<16x32xf32> to vector<1x16x32xf32>
      tpu.vector_store %arg20[%c0_107, %c0_108, %c96], %226 {strides = array<i32>} : memref<1x16x128xf32, #tpu.memory_space<vmem>>, vector<1x16x32xf32>,
    } else {
    }
    return
  }
  func.func @transform_0(%arg0: i32, %arg1: i32) -> (i32, i32, i32) {
    %c0_i32 = arith.constant 0 : i32
    %c0_i32_0 = arith.constant 0 : i32
    %c0_i32_1 = arith.constant 0 : i32
    return %arg0, %c0_i32, %c0_i32_0 : i32, i32, i32
  }
  func.func @transform_1(%arg0: i32, %arg1: i32) -> (i32, i32) {
    %c0_i32 = arith.constant 0 : i32
    %c0_i32_0 = arith.constant 0 : i32
    %c0_i32_1 = arith.constant 0 : i32
    return %c0_i32, %c0_i32_0 : i32, i32
  }
  func.func @transform_2(%arg0: i32, %arg1: i32) -> (i32, i32, i32) {
    %c0_i32 = arith.constant 0 : i32
    %c0_i32_0 = arith.constant 0 : i32
    %c0_i32_1 = arith.constant 0 : i32
    return %arg1, %c0_i32, %c0_i32_0 : i32, i32, i32
  }
  func.func @transform_3(%arg0: i32, %arg1: i32) -> (i32, i32, i32) {
    %c0_i32 = arith.constant 0 : i32
    %c0_i32_0 = arith.constant 0 : i32
    %c0_i32_1 = arith.constant 0 : i32
    return %arg1, %c0_i32, %c0_i32_0 : i32, i32, i32
  }
  func.func @transform_4(%arg0: i32, %arg1: i32) -> (i32, i32, i32) {
    %c0_i32 = arith.constant 0 : i32
    %c0_i32_0 = arith.constant 0 : i32
    %c0_i32_1 = arith.constant 0 : i32
    return %arg1, %c0_i32, %c0_i32_0 : i32, i32, i32
  }
  func.func @transform_5(%arg0: i32, %arg1: i32) -> (i32, i32, i32) {
    %c0_i32 = arith.constant 0 : i32
    %c0_i32_0 = arith.constant 0 : i32
    %c0_i32_1 = arith.constant 0 : i32
    return %arg1, %c0_i32, %c0_i32_0 : i32, i32, i32
  }
  func.func @transform_6(%arg0: i32, %arg1: i32) -> (i32, i32, i32) {
    %c0_i32 = arith.constant 0 : i32
    %c0_i32_0 = arith.constant 0 : i32
    %c0_i32_1 = arith.constant 0 : i32
    return %arg1, %c0_i32, %c0_i32_0 : i32, i32, i32
  }
  func.func @transform_7(%arg0: i32, %arg1: i32) -> (i32, i32, i32) {
    %c0_i32 = arith.constant 0 : i32
    %c0_i32_0 = arith.constant 0 : i32
    %c0_i32_1 = arith.constant 0 : i32
    return %arg1, %c0_i32, %c0_i32_0 : i32, i32, i32
  }
  func.func @transform_8(%arg0: i32, %arg1: i32) -> (i32, i32, i32) {
    %c0_i32 = arith.constant 0 : i32
    %c0_i32_0 = arith.constant 0 : i32
    %c0_i32_1 = arith.constant 0 : i32
    return %arg1, %c0_i32, %c0_i32_0 : i32, i32, i32
  }
  func.func @transform_9(%arg0: i32, %arg1: i32) -> (i32, i32, i32) {
    %c0_i32 = arith.constant 0 : i32
    %c0_i32_0 = arith.constant 0 : i32
    %c0_i32_1 = arith.constant 0 : i32
    return %arg1, %c0_i32, %c0_i32_0 : i32, i32, i32
  }
  func.func @transform_10(%arg0: i32, %arg1: i32) -> (i32, i32, i32) {
    %c0_i32 = arith.constant 0 : i32
    %c0_i32_0 = arith.constant 0 : i32
    %c0_i32_1 = arith.constant 0 : i32
    return %arg1, %c0_i32, %c0_i32_0 : i32, i32, i32
  }
  func.func @transform_11(%arg0: i32, %arg1: i32) -> (i32, i32, i32) {
    %c0_i32 = arith.constant 0 : i32
    %c0_i32_0 = arith.constant 0 : i32
    %c0_i32_1 = arith.constant 0 : i32
    return %arg1, %c0_i32, %c0_i32_0 : i32, i32, i32
  }
  func.func @transform_12(%arg0: i32, %arg1: i32) -> (i32, i32, i32) {
    %c0_i32 = arith.constant 0 : i32
    %c0_i32_0 = arith.constant 0 : i32
    %c0_i32_1 = arith.constant 0 : i32
    return %arg1, %c0_i32, %c0_i32_0 : i32, i32, i32
  }
  func.func @transform_13(%arg0: i32, %arg1: i32) -> (i32, i32, i32) {
    %c0_i32 = arith.constant 0 : i32
    %c0_i32_0 = arith.constant 0 : i32
    %c0_i32_1 = arith.constant 0 : i32
    return %arg1, %c0_i32, %c0_i32_0 : i32, i32, i32
  }
  func.func @transform_14(%arg0: i32, %arg1: i32) -> (i32, i32, i32) {
    %c0_i32 = arith.constant 0 : i32
    %c0_i32_0 = arith.constant 0 : i32
    %c0_i32_1 = arith.constant 0 : i32
    return %arg1, %c0_i32, %c0_i32_0 : i32, i32, i32
  }
  func.func @transform_15(%arg0: i32, %arg1: i32) -> (i32, i32, i32) {
    %c0_i32 = arith.constant 0 : i32
    %c0_i32_0 = arith.constant 0 : i32
    %c0_i32_1 = arith.constant 0 : i32
    return %arg1, %c0_i32, %c0_i32_0 : i32, i32, i32
  }
  func.func @transform_16(%arg0: i32, %arg1: i32) -> (i32, i32, i32) {
    %c0_i32 = arith.constant 0 : i32
    %c0_i32_0 = arith.constant 0 : i32
    %c0_i32_1 = arith.constant 0 : i32
    return %arg1, %c0_i32, %c0_i32_0 : i32, i32, i32
  }
  func.func @transform_17(%arg0: i32, %arg1: i32) -> (i32, i32, i32) {
    %c0_i32 = arith.constant 0 : i32
    %c0_i32_0 = arith.constant 0 : i32
    %c0_i32_1 = arith.constant 0 : i32
    return %arg1, %c0_i32, %c0_i32_0 : i32, i32, i32
  }
  func.func @transform_18(%arg0: i32, %arg1: i32) -> (i32, i32, i32) {
    %c0_i32 = arith.constant 0 : i32
    %c0_i32_0 = arith.constant 0 : i32
    %c0_i32_1 = arith.constant 0 : i32
    return %arg0, %c0_i32, %c0_i32_0 : i32, i32, i32
  }
}

</mosaic_0001>

<bundles_post_ra>
// kernel: stage_module_forward.2
= control target key start
LH: loop header
LB: loop body
LE: loop exit
PB: predicated region body
PF: predicated region fallthrough
CT: control target
= control target key end

     0   :  { %s754_s18 = smov 0   ;;  %s930_s0 = inlined_call_operand.vmem [shape: bf16[128,36], index: 0, kind: input, shape index: {}]   ;;  %s931_s1 = inlined_call_operand.vmem [shape: bf16[36,32], index: 1, kind: input, shape index: {}]   ;;  %s932_s2 = inlined_call_operand.vmem [shape: f32[1,32], index: 2, kind: input, shape index: {}]   ;;  %s933_s3 = inlined_call_operand.vmem [shape: f32[1,32], index: 3, kind: input, shape index: {}]   ;;  %s934_s4 = inlined_call_operand.vmem [shape: f32[1,32], index: 4, kind: input, shape index: {}]   ;;  %s935_s5 = inlined_call_operand.vmem [shape: f32[2,16,128], index: 5, kind: output, shape index: {}]  }
   0x1 LB: > { %s760_s19 = sadd.s32 4294967295, %s718_s18   ;;  %p628_p0 = scmp.ge.s32.totalorder %s718_s18, 1  ;;  %s718_s18 = sphi %s754_s18, %s15_s18  }
   0x2   : > { %p188_p1 = scmp.lt.s32.totalorder %s718_s18, 3 }
   0x4   : > { %p189_p2 = pnand %p628_p0, %p188_p1 }
   0x5   : > { %s629_s22 = sshll.u32 (!%p189_p2), %s760_s19, 3  ;;  %s721_s12 = smov (!%p189_p2), 32  }
   0x6   : > { %192 = sbr.rel (%p189_p2) target bundleno = 556 (0x22c), region = 40  ;;  %p217_p3 = scmp.lt.s32.totalorder (!%p189_p2), %s629_s22, 15 }
   0x7   : > { %s722_s13 = smov (!%p189_p2), 64   ;;  %p222_p4 = scmp.lt.s32.totalorder (!%p189_p2), %s760_s19, 1 }
   0x8   : > { %s723_s14 = smov (!%p189_p2), 96  }
   0xb   : > { %v240_v0 = vld [vmem:[%s931_s1 + $0x10] sm:$0x3]  ;;  %vm293_vm0 = vcmask 1041408   ;;  %s939_s22 = smov (!%p217_p3, %s629_s22), 15  ;;  %v669_v4 = vld [vmem:[%s931_s1 + $0x8] sm:$0xff]  ;;  %v668_v5 = vld [vmem:[%s931_s1] sm:$0xff] }
   0xc   : > { %v274_v1 = vunpack.c.l.b16 %v240_v0  ;;  %s630_s25 = sshll.u32 %s939_s22, 2  ;;  %vm280_vm1 = vcmask 293888   ;;  %v691_v10 = vld [vmem:[%s932_s2] ss:$0 sm:$0xff]  ;;  %vm328_vm2 = vcmask 261120   ;;  %v720_v35 = vmov 32.0  }
   0xd   : > { %s220_s30 = scalar_lea.vmem %s930_s0, %s630_s25  ;;  %694 = vrcp.f32 %v720_v35  ;;  %s941_s19 = smov (!%p222_p4, %s760_s19), 1 }
   0xe   : > { %v277_v2 = vpack.c.b16 %v274_v1, %v274_v1  ;;  %v665_v6 = vld [vmem:[%s220_s30 + $0x8] sm:$0xff]  ;;  %v666_v7 = vld [vmem:[%s220_s30 + $0x10] sm:$0xff]  ;;  %v667_v8 = vld [vmem:[%s220_s30 + $0x18] sm:$0xff]  ;;  %s663_s15 = sshll.u32 %s941_s19, 4 }
   0xf   : > { %v664_v9 = vld [vmem:[%s220_s30] sm:$0xff]  ;;  %s226_s20 = scalar_lea.vmem %s935_s5, %s663_s15 }
  0x10   : > { %v295_v3 = vsel %vm293_vm0, %v277_v2, 0 }
  0x11   : > { %670 = vmatpush.bf16.msra.mxu1 %v295_v3  ;;  %671 = vmatpush.bf16.msra.mxu2 %v295_v3 }
  0x12   : > { %672 = vmatpush.bf16.msra.mxu3 %v295_v3  ;;  %302 = vmatpush.bf16.msra.mxu0 %v295_v3 }
  0x13   : > { %v695_v36 = vpop.eup %694 }
  0x14   : > { %v354_v37 = vmul.f32 32.0, %v695_v36  ;;  %vm358_vm3 = vweird.f32 %v695_v36 }
  0x15   : > { %673 = vmatpush.bf16.msra.mxu1 %v669_v4  ;;  %674 = vmatpush.bf16.msra.mxu2 %v669_v4 }
  0x16   : > { %675 = vmatpush.bf16.msra.mxu3 %v669_v4  ;;  %303 = vmatpush.bf16.msra.mxu0 %v669_v4  ;;  %v355_v38 = vsub.f32 1.0, %v354_v37 }
  0x18   : > { %v356_v39 = vmul.f32 %v695_v36, %v355_v38 }
  0x19   : > { %676 = vmatpush.bf16.msra.mxu1 %v668_v5  ;;  %677 = vmatpush.bf16.msra.mxu2 %v668_v5 }
  0x1a   : > { %678 = vmatpush.bf16.msra.mxu3 %v668_v5  ;;  %304 = vmatpush.bf16.msra.mxu0 %v668_v5  ;;  %v357_v40 = vadd.f32 %v695_v36, %v356_v39 }
  0x1c   : > { %658 = vmatmul.msk.bf16.vlgmr.msra.gmra.mxu1 %vm280_vm1, %v665_v6  ;;  %659 = vmatmul.msk.bf16.vlgmr.msra.gmra.mxu2 %vm280_vm1, %v666_v7  ;;  %v788_v41 = vsel %vm358_vm3, %v695_v36, %v357_v40 }
  0x1d   : > { %660 = vmatmul.msk.bf16.vlgmr.msra.gmra.mxu3 %vm280_vm1, %v667_v8  ;;  %657 = vmatmul.msk.bf16.vlgmr.msra.gmra.mxu0 %vm280_vm1, %v664_v9 }
  0x99   : > { %v311_v11 = vpop.f32.mrf.mxu1 }
  0x9a   : > { %v312_v12 = vadd.f32 %v691_v10, %v311_v11  ;;  %v306_v15 = vpop.f32.mrf.mxu0 }
  0x9b   : > { %v307_v24 = vadd.f32 %v691_v10, %v306_v15 }
  0x9c   : > { %v335_v13 = vsel %vm328_vm2, %v312_v12, 0.0 }
  0x9d   : > { %336 = vadd.xlane.f32.xlu0 %v335_v13  ;;  %v329_v31 = vsel %vm328_vm2, %v307_v24, 0.0 }
  0x9f   : > { %v316_v14 = vpop.f32.mrf.mxu2 }
  0xa0   : > { %v317_v16 = vadd.f32 %v691_v10, %v316_v14  ;;  %v321_v17 = vpop.f32.mrf.mxu3 }
  0xa1   : > { %v322_v18 = vadd.f32 %v691_v10, %v321_v17  ;;  %v313_v19 = vpop.f32.mrf.mxu1 }
  0xa2   : > { %v314_v20 = vadd.f32 %v691_v10, %v313_v19  ;;  %v341_v21 = vsel %vm328_vm2, %v317_v16, 0.0  ;;  %v308_v29 = vpop.f32.mrf.mxu0 }
  0xa3   : > { %v347_v22 = vsel %vm328_vm2, %v322_v18, 0.0  ;;  %342 = vadd.xlane.f32.xlu1 %v341_v21  ;;  %v309_v33 = vadd.f32 %v691_v10, %v308_v29 }
  0xa4   : > { %348 = vadd.xlane.f32.xlu2 %v347_v22  ;;  %v338_v23 = vsel %vm328_vm2, %v314_v20, 0.0 }
  0xa5   : > { %339 = vadd.xlane.f32.xlu0 %v338_v23  ;;  %v332_v34 = vsel %vm328_vm2, %v309_v33, 0.0 }
  0xa7   : > { %v318_v25 = vpop.f32.mrf.mxu2 }
  0xa8   : > { %v319_v26 = vadd.f32 %v691_v10, %v318_v25  ;;  %v323_v27 = vpop.f32.mrf.mxu3 }
  0xa9   : > { %v324_v28 = vadd.f32 %v691_v10, %v323_v27 }
  0xaa   : > { %v344_v30 = vsel %vm328_vm2, %v319_v26, 0.0 }
  0xab   : > { %v350_v32 = vsel %vm328_vm2, %v324_v28, 0.0  ;;  %345 = vadd.xlane.f32.xlu1 %v344_v30 }
  0xac   : > { %351 = vadd.xlane.f32.xlu2 %v350_v32 }
  0xad   : > { %330 = vadd.xlane.f32.xlu0 %v329_v31 }
  0xb3   : > { %333 = vadd.xlane.f32.xlu1 %v332_v34 }
 0x110   : > { %v337_v42 = vpop.xlane.xlu0 %336 }
 0x111   : > { %v362_v43 = vmul.f32 %v788_v41, %v337_v42 }
 0x113   : > { %v791_v44 = vsub.f32 %v312_v12, %v362_v43 }
 0x115   : > { %v378_v45 = vmul.f32 %v791_v44, %v791_v44 }
 0x116   : > { %v343_v46 = vpop.xlane.xlu1 %342 }
 0x117   : > { %v349_v47 = vpop.xlane.xlu2 %348  ;;  %v364_v48 = vmul.f32 %v788_v41, %v343_v46  ;;  %v390_v49 = vsel %vm328_vm2, %v378_v45, 0.0 }
 0x118   : > { %391 = vadd.xlane.f32.xlu2 %v390_v49  ;;  %v340_v50 = vpop.xlane.xlu0 %339  ;;  %v366_v53 = vmul.f32 %v788_v41, %v349_v47  ;;  %v855_v49 = vld [vmem:[%s933_s3] ss:$0 sm:$0xff] }
 0x119   : > { %v797_v51 = vsub.f32 %v317_v16, %v364_v48  ;;  %v363_v52 = vmul.f32 %v788_v41, %v340_v50 }
 0x11a   : > { %v808_v59 = vsub.f32 %v322_v18, %v366_v53 }
 0x11b   : > { %v801_v54 = vsub.f32 %v314_v20, %v363_v52  ;;  %v380_v55 = vmul.f32 %v797_v51, %v797_v51 }
 0x11c   : > { %v382_v5 = vmul.f32 %v808_v59, %v808_v59 }
 0x11d   : > { %v396_v56 = vsel %vm328_vm2, %v380_v55, 0.0  ;;  %v379_v57 = vmul.f32 %v801_v54, %v801_v54 }
 0x11e   : > { %v346_v58 = vpop.xlane.xlu1 %345  ;;  %397 = vadd.xlane.f32.xlu1 %v396_v56  ;;  %v402_v12 = vsel %vm328_vm2, %v382_v5, 0.0 }
 0x11f   : > { %v352_v60 = vpop.xlane.xlu2 %351  ;;  %v365_v61 = vmul.f32 %v788_v41, %v346_v58  ;;  %v393_v62 = vsel %vm328_vm2, %v379_v57, 0.0  ;;  %v863_v58 = vld [vmem:[%s934_s4] ss:$0 sm:$0xff] }
 0x120   : > { %v367_v63 = vmul.f32 %v788_v41, %v352_v60  ;;  %394 = vadd.xlane.f32.xlu0 %v393_v62  ;;  %v331_v0 = vpop.xlane.xlu0 %330 }
 0x121   : > { %v813_v1 = vsub.f32 %v319_v26, %v365_v61  ;;  %v360_v2 = vmul.f32 %v788_v41, %v331_v0 }
 0x122   : > { %v816_v3 = vsub.f32 %v324_v28, %v367_v63 }
 0x123   : > { %v381_v4 = vmul.f32 %v813_v1, %v813_v1  ;;  %v824_v7 = vsub.f32 %v307_v24, %v360_v2 }
 0x124   : > { %v383_v6 = vmul.f32 %v816_v3, %v816_v3 }
 0x125   : > { %v399_v8 = vsel %vm328_vm2, %v381_v4, 0.0  ;;  %v376_v14 = vmul.f32 %v824_v7, %v824_v7 }
 0x126   : > { %400 = vadd.xlane.f32.xlu2 %v399_v8  ;;  %v405_v9 = vsel %vm328_vm2, %v383_v6, 0.0  ;;  %v334_v10 = vpop.xlane.xlu1 %333 }
 0x127   : > { %406 = vadd.xlane.f32.xlu1 %v405_v9  ;;  %v361_v11 = vmul.f32 %v788_v41, %v334_v10  ;;  %v384_v16 = vsel %vm328_vm2, %v376_v14, 0.0 }
 0x128   : > { %403 = vadd.xlane.f32.xlu0 %v402_v12 }
 0x129   : > { %v830_v13 = vsub.f32 %v309_v33, %v361_v11 }
 0x12b   : > { %v377_v15 = vmul.f32 %v830_v13, %v830_v13 }
 0x12d   : > { %v387_v17 = vsel %vm328_vm2, %v377_v15, 0.0 }
 0x12e   : > { %385 = vadd.xlane.f32.xlu2 %v384_v16 }
 0x130   : > { %388 = vadd.xlane.f32.xlu0 %v387_v17 }
 0x18b   : > { %v392_v18 = vpop.xlane.xlu2 %391 }
 0x18c   : > { %v410_v19 = vmul.f32 %v392_v18, %v788_v41 }
 0x18e   : > { %v418_v20 = vadd.f32 1e-05, %v410_v19 }
 0x190   : > { %696 = vrsqrt.f32 %v418_v20  ;;  %vm450_vm5 = vweird.f32 %v418_v20 }
 0x191   : > { %v398_v21 = vpop.xlane.xlu1 %397 }
 0x192   : > { %v412_v22 = vmul.f32 %v398_v21, %v788_v41 }
 0x193   : > { %v395_v23 = vpop.xlane.xlu0 %394 }
 0x194   : > { %v420_v24 = vadd.f32 1e-05, %v412_v22  ;;  %v411_v25 = vmul.f32 %v395_v23, %v788_v41 }
 0x196   : > { %v697_v26 = vpop.eup %696  ;;  %698 = vrsqrt.f32 %v420_v24  ;;  %v419_v27 = vadd.f32 1e-05, %v411_v25  ;;  %vm470_vm8 = vweird.f32 %v420_v24 }
 0x197   : > { %v445_v28 = vmul.f32 %v697_v26, %v418_v20  ;;  %vm451_vm4 = vweird.f32 %v697_v26 }
 0x198   : > { %700 = vrsqrt.f32 %v419_v27  ;;  %vm452_vm6 = vmor %vm450_vm5, %vm451_vm4  ;;  %vm460_vm11 = vweird.f32 %v419_v27 }
 0x199   : > { %v446_v29 = vmul.f32 %v697_v26, %v445_v28  ;;  %v401_v30 = vpop.xlane.xlu2 %400 }
 0x19a   : > { %v413_v31 = vmul.f32 %v401_v30, %v788_v41  ;;  %v407_v32 = vpop.xlane.xlu1 %406 }
 0x19b   : > { %v447_v33 = vmul.f32 0.5, %v446_v29  ;;  %v415_v34 = vmul.f32 %v407_v32, %v788_v41  ;;  %v404_v35 = vpop.xlane.xlu0 %403 }
 0x19c   : > { %v699_v36 = vpop.eup %698  ;;  %v843_v37 = vadd.f32 1e-05, %v413_v31  ;;  %v414_v38 = vmul.f32 %v404_v35, %v788_v41 }
 0x19d   : > { %v448_v39 = vsub.f32 1.5, %v447_v33  ;;  %v465_v40 = vmul.f32 %v699_v36, %v420_v24  ;;  %v846_v42 = vadd.f32 1e-05, %v415_v34  ;;  %vm471_vm7 = vweird.f32 %v699_v36 }
 0x19e   : > { %v701_v43 = vpop.eup %700  ;;  %702 = vrsqrt.f32 %v843_v37  ;;  %v849_v45 = vadd.f32 1e-05, %v414_v38  ;;  %vm870_vm10 = vmor %vm470_vm8, %vm471_vm7  ;;  %vm480_vm13 = vweird.f32 %v843_v37 }
 0x19f   : > { %v449_v46 = vmul.f32 %v697_v26, %v448_v39  ;;  %v466_v47 = vmul.f32 %v699_v36, %v465_v40  ;;  %v455_v48 = vmul.f32 %v701_v43, %v419_v27  ;;  %704 = vrsqrt.f32 %v846_v42 }
 0x1a0   : > { %706 = vrsqrt.f32 %v849_v45  ;;  %vm461_vm9 = vweird.f32 %v701_v43  ;;  %vm500_vm15 = vweird.f32 %v846_v42  ;;  %vm490_vm5 = vweird.f32 %v849_v45 }
 0x1a1   : > { %v453_v50 = vsel %vm452_vm6, %v697_v26, %v449_v46  ;;  %v467_v52 = vmul.f32 0.5, %v466_v47  ;;  %v456_v53 = vmul.f32 %v701_v43, %v455_v48  ;;  %v386_v55 = vpop.xlane.xlu2 %385  ;;  %vm462_vm12 = vmor %vm460_vm11, %vm461_vm9 }
 0x1a2   : > { %v408_v56 = vmul.f32 %v386_v55, %v788_v41  ;;  %v506_v57 = vmul.f32 %v453_v50, %v791_v44 }
 0x1a3   : > { %v468_v60 = vsub.f32 1.5, %v467_v52  ;;  %v457_v61 = vmul.f32 0.5, %v456_v53  ;;  %v389_v62 = vpop.xlane.xlu0 %388 }
 0x1a4   : > { %v703_v63 = vpop.eup %702  ;;  %v865_v0 = vadd.f32 1e-05, %v408_v56  ;;  %v409_v2 = vmul.f32 %v389_v62, %v788_v41  ;;  %v517_v4 = vmul.f32 %v855_v49, %v506_v57 }
 0x1a5   : > { %v469_v5 = vmul.f32 %v699_v36, %v468_v60  ;;  %v458_v6 = vsub.f32 1.5, %v457_v61  ;;  %v475_v44 = vmul.f32 %v703_v63, %v843_v37  ;;  %v705_v8 = vpop.eup %704  ;;  %vm481_vm14 = vweird.f32 %v703_v63 }
 0x1a6   : > { %708 = vrsqrt.f32 %v865_v0  ;;  %v875_v10 = vadd.f32 1e-05, %v409_v2  ;;  %v528_v11 = vadd.f32 %v863_v58, %v517_v4  ;;  %v707_v41 = vpop.eup %706  ;;  %v495_v16 = vmul.f32 %v705_v8, %v846_v42  ;;  %vm482_vm1 = vmor %vm480_vm13, %vm481_vm14 }
 0x1a7   : > { %v473_v12 = vsel %vm870_vm10, %v699_v36, %v469_v5  ;;  %v459_v14 = vmul.f32 %v701_v43, %v458_v6  ;;  %v476_v15 = vmul.f32 %v703_v63, %v475_v44  ;;  %v485_v17 = vmul.f32 %v707_v41, %v849_v45 }
 0x1a8   : > { %710 = vrsqrt.f32 %v875_v10  ;;  %538 = vrot.lane.b32.xlu1 %v528_v11, %s721_s12  ;;  %v496_v20 = vmul.f32 %v705_v8, %v495_v16  ;;  %v508_v22 = vmul.f32 %v473_v12, %v797_v51  ;;  %vm501_vm0 = vweird.f32 %v705_v8 }
 0x1a9   : > { %v463_v18 = vsel %vm462_vm12, %v701_v43, %v459_v14  ;;  %v477_v19 = vmul.f32 0.5, %v476_v15  ;;  %v486_v21 = vmul.f32 %v707_v41, %v485_v17  ;;  %vm491_vm3 = vweird.f32 %v707_v41  ;;  %vm502_vm4 = vmor %vm500_vm15, %vm501_vm0 }
 0x1aa   : > { %v507_v23 = vmul.f32 %v463_v18, %v801_v54  ;;  %v497_v25 = vmul.f32 0.5, %v496_v20  ;;  %v519_v28 = vmul.f32 %v855_v49, %v508_v22  ;;  %vm492_vm6 = vmor %vm490_vm5, %vm491_vm3  ;;  %vm430_vm8 = vweird.f32 %v865_v0 }
 0x1ab   : > { %v478_v24 = vsub.f32 1.5, %v477_v19  ;;  %v487_v27 = vmul.f32 0.5, %v486_v21  ;;  %vm440_vm11 = vweird.f32 %v875_v10  ;;  %vm544_vm13 = vcmask 523520  }
 0x1ac   : > { %v709_v26 = vpop.eup %708  ;;  %v518_v29 = vmul.f32 %v855_v49, %v507_v23  ;;  %v498_v31 = vsub.f32 1.5, %v497_v25  ;;  %v530_v33 = vadd.f32 %v863_v58, %v519_v28  ;;  %vm555_vm14 = vcmask 785920  }
 0x1ad   : > { %v479_v30 = vmul.f32 %v703_v63, %v478_v24  ;;  %v425_v51 = vmul.f32 %v709_v26, %v865_v0  ;;  %v488_v54 = vsub.f32 1.5, %v487_v27  ;;  %vm431_vm7 = vweird.f32 %v709_v26 }
 0x1ae   : > { %v711_v32 = vpop.eup %710  ;;  %v529_v34 = vadd.f32 %v863_v58, %v518_v29  ;;  %v499_v36 = vmul.f32 %v705_v8, %v498_v31  ;;  %549 = vrot.lane.b32.xlu0 %v530_v33, %s722_s13  ;;  %vm432_vm10 = vmor %vm430_vm8, %vm431_vm7  ;;  %vm566_vm15 = vcmask 1048320  }
 0x1af   : > { %v483_v35 = vsel %vm482_vm1, %v703_v63, %v479_v30  ;;  %v426_v37 = vmul.f32 %v709_v26, %v425_v51  ;;  %v435_v38 = vmul.f32 %v711_v32, %v875_v10  ;;  %v489_v39 = vmul.f32 %v707_v41, %v488_v54 }
 0x1b0   : > { %540 = vrot.lane.b32.xlu2 %v529_v34, %s721_s12  ;;  %v509_v40 = vmul.f32 %v483_v35, %v813_v1  ;;  %v503_v43 = vsel %vm502_vm4, %v705_v8, %v499_v36  ;;  %vm441_vm9 = vweird.f32 %v711_v32 }
 0x1b1   : > { %v427_v46 = vmul.f32 0.5, %v426_v37  ;;  %v436_v47 = vmul.f32 %v711_v32, %v435_v38  ;;  %v493_v42 = vsel %vm492_vm6, %v707_v41, %v489_v39  ;;  %v511_v48 = vmul.f32 %v503_v43, %v816_v3  ;;  %vm442_vm12 = vmor %vm440_vm11, %vm441_vm9 }
 0x1b2   : > { %v520_v45 = vmul.f32 %v855_v49, %v509_v40  ;;  %v510_v53 = vmul.f32 %v493_v42, %v808_v59 }
 0x1b3   : > { %v428_v50 = vsub.f32 1.5, %v427_v46  ;;  %v437_v52 = vmul.f32 0.5, %v436_v47  ;;  %v522_v1 = vmul.f32 %v855_v49, %v511_v48 }
 0x1b4   : > { %v521_v57 = vmul.f32 %v855_v49, %v510_v53  ;;  %v531_v60 = vadd.f32 %v863_v58, %v520_v45 }
 0x1b5   : > { %v429_v55 = vmul.f32 %v709_v26, %v428_v50  ;;  %v438_v56 = vsub.f32 1.5, %v437_v52  ;;  %v533_v3 = vadd.f32 %v863_v58, %v522_v1 }
 0x1b6   : > { %v532_v59 = vadd.f32 %v863_v58, %v521_v57 }
 0x1b7   : > { %v433_v61 = vsel %vm432_vm10, %v709_v26, %v429_v55  ;;  %v439_v62 = vmul.f32 %v711_v32, %v438_v56  ;;  %562 = vrot.lane.b32.xlu0 %v533_v3, %s723_s14 }
 0x1b8   : > { %v504_v63 = vmul.f32 %v433_v61, %v824_v7  ;;  %551 = vrot.lane.b32.xlu2 %v531_v60, %s722_s13  ;;  %560 = vrot.lane.b32.xlu1 %v532_v59, %s723_s14 }
 0x1b9   : > { %v443_v0 = vsel %vm442_vm12, %v711_v32, %v439_v62 }
 0x1ba   : > { %v515_v2 = vmul.f32 %v855_v49, %v504_v63  ;;  %v505_v4 = vmul.f32 %v443_v0, %v830_v13 }
 0x1bc   : > { %v516_v5 = vmul.f32 %v855_v49, %v505_v4  ;;  %v526_v7 = vadd.f32 %v863_v58, %v515_v2 }
 0x1be   : > { %v527_v6 = vadd.f32 %v863_v58, %v516_v5  ;;  %534 = vst.msk [vmem:[%s226_s20] sm:$0xff] %vm328_vm2, %v526_v7 }
 0x1c0   : > { %535 = vst.msk [vmem:[%s226_s20 + $0x8] sm:$0xff] %vm328_vm2, %v527_v6 }
 0x20a   : > { %v541_v44 = vpop.permute.xlu2 %540 }
 0x20b   : > { %546 = vst.msk [vmem:[%s226_s20 + $0x8] sm:$0xff] %vm544_vm13, %v541_v44 }
 0x212   : > { %v552_v8 = vpop.permute.xlu2 %551 }
 0x213   : > { %557 = vst.msk [vmem:[%s226_s20 + $0x8] sm:$0xff] %vm555_vm14, %v552_v8 }
 0x21a   : > { %v539_v13 = vpop.permute.xlu1 %538 }
 0x21b   : > { %545 = vst.msk [vmem:[%s226_s20] sm:$0xff] %vm544_vm13, %v539_v13 }
 0x220   : > { %v550_v9 = vpop.permute.xlu0 %549 }
 0x221   : > { %556 = vst.msk [vmem:[%s226_s20] sm:$0xff] %vm555_vm14, %v550_v9 }
 0x229   : > { %v563_v49 = vpop.permute.xlu0 %562 }
 0x22a   : > { %568 = vst.msk [vmem:[%s226_s20 + $0x8] sm:$0xff] %vm566_vm15, %v563_v49  ;;  %v561_v10 = vpop.permute.xlu1 %560 }
 0x22b   : > { %567 = vst.msk [vmem:[%s226_s20] sm:$0xff] %vm566_vm15, %v561_v10 }
 0x22c PF: > { %s15_s18 = sadd.s32 1, %s718_s18  }
 0x22d   : > { %p12_p5 = scmp.ge.s32.totalorder %s15_s18, 4  }
 0x22f   :  { %14 = sbr.rel (!%p12_p5) target bundleno = 1 (0x1), region = 70 }

// kernel: stage_module_forward.3
= control target key start
LH: loop header
LB: loop body
LE: loop exit
PB: predicated region body
PF: predicated region fallthrough
CT: control target
= control target key end

     0   :  { %s3563_s27 = smov 0   ;;  %s3565_s28 = smov 0   ;;  %s4565_s0 = inlined_call_operand.vmem [shape: f32[2,16,128], index: 0, kind: input, shape index: {}]   ;;  %s4566_s1 = inlined_call_operand.vmem [shape: bf16[16,64], index: 1, kind: input, shape index: {}]   ;;  %s4567_s2 = inlined_call_operand.vmem [shape: f32[2,1,32], index: 2, kind: input, shape index: {}]   ;;  %s4568_s3 = inlined_call_operand.vmem [shape: f32[2,1,32], index: 3, kind: input, shape index: {}]   ;;  %s4569_s4 = inlined_call_operand.vmem [shape: bf16[2,32,32], index: 4, kind: input, shape index: {}]   ;;  %s4570_s5 = inlined_call_operand.vmem [shape: f32[2,1,32], index: 5, kind: input, shape index: {}]   ;;  %s4571_s6 = inlined_call_operand.vmem [shape: bf16[2,32,32], index: 6, kind: input, shape index: {}]   ;;  %s4572_s7 = inlined_call_operand.vmem [shape: f32[2,1,32], index: 7, kind: input, shape index: {}]   ;;  %s4573_s8 = inlined_call_operand.vmem [shape: bf16[2,32,32], index: 8, kind: input, shape index: {}]   ;;  %s4574_s9 = inlined_call_operand.vmem [shape: f32[2,1,32], index: 9, kind: input, shape index: {}]   ;;  %s4575_s10 = inlined_call_operand.vmem [shape: bf16[2,32,32], index: 10, kind: input, shape index: {}]   ;;  %s4576_s11 = inlined_call_operand.vmem [shape: f32[2,1,32], index: 11, kind: input, shape index: {}]   ;;  %s4577_s12 = inlined_call_operand.vmem [shape: f32[2,1,32], index: 12, kind: input, shape index: {}]   ;;  %s4578_s13 = inlined_call_operand.vmem [shape: f32[2,1,32], index: 13, kind: input, shape index: {}]   ;;  %s4579_s14 = inlined_call_operand.vmem [shape: bf16[2,32,128], index: 14, kind: input, shape index: {}]   ;;  %s4580_s15 = inlined_call_operand.vmem [shape: f32[2,1,128], index: 15, kind: input, shape index: {}]   ;;  %s4581_s16 = inlined_call_operand.vmem [shape: bf16[2,128,32], index: 16, kind: input, shape index: {}]   ;;  %s4582_s17 = inlined_call_operand.vmem [shape: f32[2,1,32], index: 17, kind: input, shape index: {}]   ;;  %s4583_s18 = inlined_call_operand.vmem [shape: f32[2,16,128], index: 18, kind: output, shape index: {}]  }
   0x1   :  { %4589 = sst [smem:[#allocation10_spill]] %s4565_s0  ;;  %s3567_s29 = smov 0  }
   0x2   :  { %4590 = sst [smem:[#allocation11_spill]] %s4566_s1  ;;  %s3569_s30 = smov 0  }
   0x3   :  { %4591 = sst [smem:[#allocation12_spill]] %s4567_s2  ;;  %s3571_s0 = smov 0  }
   0x4   :  { %4592 = sst [smem:[#allocation13_spill]] %s4569_s4 }
   0x5   :  { %4593 = sst [smem:[#allocation14_spill]] %s4570_s5 }
   0x6   :  { %4594 = sst [smem:[#allocation15_spill]] %s4571_s6 }
   0x7   :  { %4595 = sst [smem:[#allocation16_spill]] %s4573_s8 }
   0x8   :  { %4596 = sst [smem:[#allocation17_spill]] %s4575_s10 }
   0x9   :  { %4597 = sst [smem:[#allocation18_spill]] %s4576_s11 }
   0xa   :  { %4598 = sst [smem:[#allocation19_spill]] %s4577_s12 }
   0xb   :  { %4599 = sst [smem:[#allocation20_spill]] %s4580_s15 }
   0xc   :  { %4600 = sst [smem:[#allocation21_spill]] %s4581_s16 }
   0xd   :  { %4601 = sst [smem:[#allocation22_spill]] %s4582_s17 }
   0xe   :  { %4602 = sst [smem:[#allocation23_spill]] %s4583_s18 }
   0xf LB: > { %4603 = sst [smem:[#allocation3_spill]] %s3440_s27  ;;  %s37_s19 = sadd.s32 1, %s3448_s29  ;;  %s3456_s0 = sphi %s3571_s0, %s28_s0   ;;  %s3452_s30 = sphi %s3569_s30, %s4653_s30   ;;  %s3448_s29 = sphi %s3567_s29, %s4652_s29   ;;  %s3444_s28 = sphi %s3565_s28, %s4651_s28   ;;  %s3440_s27 = sphi %s3563_s27, %s4650_s27  }
  0x10   : > { %4604 = sst [smem:[#allocation4_spill]] %s3448_s29  ;;  %s40_s1 = sadd.s32 1, %s3452_s30 }
  0x11   : > { %4605 = sst [smem:[#allocation5_spill]] %s3452_s30  ;;  %p38_p0 = scmp.ge.s32.totalorder %s37_s19, 2 }
  0x12   : > { %4606 = sst [smem:[#allocation6_spill]] %s3456_s0  ;;  %p2999_p1 = scmp.ge.s32.totalorder %s3456_s0, 1 }
  0x13   : > { %p664_p2 = scmp.lt.s32.totalorder %s3456_s0, 5  ;;  %s4655_s19 = smov (%p38_p0, %s37_s19), 0 }
  0x14   : > { %4607 = sst [smem:[#allocation7_spill]] %s4655_s19  ;;  %s4657_s1 = smov (!%p38_p0, %s40_s1), %s3452_s30 }
  0x15   : > { %p665_p3 = pnand %p2999_p1, %p664_p2  ;;  %p42_p4 = scmp.ge.s32.totalorder %s4657_s1, 2 }
  0x17   : > { %s4659_s1 = smov (%p42_p4, %s4657_s1), 0  ;;  %668 = sbr.rel (%p665_p3) target bundleno = 2900 (0xb54), region = 92 }
  0x18   : > { %4608 = sst [smem:[#allocation8_spill]] %s4659_s1 }
  0x1c   : > { %p778_p5 = scmp.lt.s32.totalorder %s3444_s28, 1  ;;  %p783_p6 = scmp.lt.s32.totalorder %s3440_s27, 1 }
  0x1d   : > { %s4609_s23 = sld [smem:[#allocation10_spill]] }
  0x1e   : > { %s4661_s28 = smov (!%p778_p5, %s3444_s28), 1  ;;  %s4611_s4 = sld [smem:[#allocation13_spill]] }
  0x1f   : > { %s3597_s20 = scalar_select %p783_p6, %s3440_s27, 1 }
  0x20   : > { %s3147_s21 = sshll.u32 %s4661_s28, 4  ;;  %s4613_s6 = sld [smem:[#allocation15_spill]] }
  0x21   : > { %s3148_s27 = sshll.u32 %s3597_s20, 4  ;;  %s4614_s8 = sld [smem:[#allocation16_spill]] }
  0x22   : > { %s4615_s10 = sld [smem:[#allocation17_spill]]  ;;  %s3658_s18 = scalar_lea.vmem %s4579_s14, %s3148_s27 }
  0x23   : > { %s782_s24 = scalar_lea.vmem %s4609_s23, %s3147_s21  ;;  %s4621_s29 = sld [smem:[#allocation21_spill]] }
  0x24   : > { %s3614_s28 = scalar_lea.vmem %s4611_s4, %s3148_s27  ;;  %s4619_s4 = sld [smem:[#allocation20_spill]] }
  0x26   : > { %s3623_s25 = scalar_lea.vmem %s4613_s6, %s3148_s27  ;;  %s4620_s6 = sld [smem:[#allocation22_spill]] }
  0x27   : > { %s3632_s19 = scalar_lea.vmem %s4614_s8, %s3148_s27  ;;  %s4622_s8 = sld [smem:[#allocation23_spill]] }
  0x28   : > { %s3641_s2 = scalar_lea.vmem %s4615_s10, %s3148_s27  ;;  %s4623_s27 = sld [smem:[#allocation3_spill]] }
  0x29   : > { %4616 = sst [smem:[#allocation9_spill]] %s3641_s2  ;;  %s3153_s2 = sshll.u32 %s3597_s20, 6 }
  0x2a   : > { %s834_s10 = scalar_lea.vmem %s4619_s4, %s3597_s20  ;;  %s3672_s12 = scalar_lea.vmem %s4621_s29, %s3153_s2 }
  0x2c   : > { %s842_s11 = scalar_lea.vmem %s4620_s6, %s3597_s20 }
  0x2d   : > { %s3677_s5 = scalar_lea.vmem %s4622_s8, %s3147_s21 }
  0x2e   : > { %p3016_p7 = scmp.ne.s32.totalorder %s4623_s27, 0 }
  0x2f   : > { %s3458_s4 = smov (!%p3016_p7), 64   ;;  %s3459_s16 = smov (!%p3016_p7), 96  }
  0x30   : > { %852 = sbr.rel (%p3016_p7) target bundleno = 179 (0xb3), region = 96  ;;  %s3460_s17 = smov (!%p3016_p7), 32  }
  0x35   : > { %v870_v0 = vld [vmem:[%s782_s24] sm:$0xff]  ;;  %v871_v1 = vld [vmem:[%s782_s24 + $0x8] sm:$0xff]  ;;  %vm855_vm0 = vcmask 261120  }
  0x36   : > { %874 = vrot.lane.b32.xlu1 %v870_v0, %s3458_s4  ;;  %862 = vrot.lane.b32.xlu0 %v870_v0, %s3459_s16  ;;  %856 = vst.msk [vmem:[#allocation2] sm:$0xff] %vm855_vm0, %v870_v0 }
  0x37   : > { %886 = vrot.lane.b32.xlu2 %v870_v0, %s3460_s17  ;;  %857 = vst.msk [vmem:[#allocation2 + $0x8] sm:$0xff] %vm855_vm0, %v871_v1 }
  0x3e   : > { %876 = vrot.lane.b32.xlu1 %v871_v1, %s3458_s4  ;;  %864 = vrot.lane.b32.xlu0 %v871_v1, %s3459_s16 }
  0x3f   : > { %888 = vrot.lane.b32.xlu2 %v871_v1, %s3460_s17 }
  0x91   : > { %v887_v2 = vpop.permute.xlu2 %886 }
  0x92   : > { %892 = vst.msk [vmem:[#allocation2 + $0x30] sm:$0xff] %vm855_vm0, %v887_v2 }
  0x99   : > { %v889_v3 = vpop.permute.xlu2 %888 }
  0x9a   : > { %893 = vst.msk [vmem:[#allocation2 + $0x38] sm:$0xff] %vm855_vm0, %v889_v3 }
  0xa8   : > { %v875_v4 = vpop.permute.xlu1 %874  ;;  %v863_v5 = vpop.permute.xlu0 %862 }
  0xa9   : > { %880 = vst.msk [vmem:[#allocation2 + $0x20] sm:$0xff] %vm855_vm0, %v875_v4 }
  0xaa   : > { %868 = vst.msk [vmem:[#allocation2 + $0x10] sm:$0xff] %vm855_vm0, %v863_v5 }
  0xb0   : > { %v877_v6 = vpop.permute.xlu1 %876  ;;  %v865_v7 = vpop.permute.xlu0 %864 }
  0xb1   : > { %881 = vst.msk [vmem:[#allocation2 + $0x28] sm:$0xff] %vm855_vm0, %v877_v6 }
  0xb2   : > { %869 = vst.msk [vmem:[#allocation2 + $0x18] sm:$0xff] %vm855_vm0, %v865_v7 }
  0xb3 PF: > { %v900_v8 = vld [vmem:[#allocation2 + $0x30] sm:$0xff]  ;;  %vm904_vm1 = vcmask 261120   ;;  %v898_v9 = vld [vmem:[#allocation2 + $0x20] sm:$0xff]  ;;  %v901_v14 = vld [vmem:[#allocation2 + $0x38] sm:$0xff]  ;;  %v3461_v24 = vmov 32.0   ;;  %s4628_s21 = sld [smem:[#allocation12_spill]]  ;;  %s4632_s29 = scalar_lea.vmem %s4568_s3, %s3597_s20 }
  0xb4   : > { %v896_v10 = vld [vmem:[#allocation2 + $0x10] sm:$0xff]  ;;  %v923_v11 = vsel %vm904_vm1, %v900_v8, 0.0  ;;  %v917_v12 = vsel %vm904_vm1, %v898_v9, 0.0  ;;  %v926_v17 = vsel %vm904_vm1, %v901_v14, 0.0  ;;  %v894_v20 = vld [vmem:[#allocation2] sm:$0xff]  ;;  %v895_v21 = vld [vmem:[#allocation2 + $0x8] sm:$0xff]  ;;  %3232 = vrcp.f32 %v3461_v24  ;;  %s4639_s17 = scalar_lea.vmem %s4574_s9, %s3597_s20 }
  0xb5   : > { %v911_v13 = vsel %vm904_vm1, %v896_v10, 0.0  ;;  %924 = vadd.xlane.f32.xlu0 %v923_v11  ;;  %918 = vadd.xlane.f32.xlu1 %v917_v12  ;;  %v905_v22 = vsel %vm904_vm1, %v894_v20, 0.0  ;;  %v908_v23 = vsel %vm904_vm1, %v895_v21, 0.0  ;;  %s4635_s23 = sld [smem:[#allocation11_spill]]  ;;  %s3462_s6 = smov 120  }
  0xb6   : > { %912 = vadd.xlane.f32.xlu2 %v911_v13  ;;  %s4637_s30 = sld [smem:[#allocation14_spill]]  ;;  %s3463_s8 = smov 112  }
  0xb8   : > { %v899_v15 = vld [vmem:[#allocation2 + $0x28] sm:$0xff] }
  0xb9   : > { %v897_v16 = vld [vmem:[#allocation2 + $0x18] sm:$0xff]  ;;  %v920_v18 = vsel %vm904_vm1, %v899_v15, 0.0  ;;  %s4629_s24 = scalar_lea.vmem %s4628_s21, %s3597_s20  ;;  %s3464_s21 = smov 104  }
  0xba   : > { %v914_v19 = vsel %vm904_vm1, %v897_v16, 0.0  ;;  %v3233_v25 = vpop.eup %3232 }
  0xbb   : > { %v930_v26 = vmul.f32 32.0, %v3233_v25  ;;  %vm934_vm2 = vweird.f32 %v3233_v25 }
  0xbc   : > { %s4638_s27 = scalar_lea.vmem %s4637_s30, %s3597_s20 }
  0xbd   : > { %927 = vadd.xlane.f32.xlu0 %v926_v17  ;;  %921 = vadd.xlane.f32.xlu1 %v920_v18  ;;  %v931_v27 = vsub.f32 1.0, %v930_v26 }
  0xbe   : > { %915 = vadd.xlane.f32.xlu2 %v914_v19 }
  0xbf   : > { %v932_v28 = vmul.f32 %v3233_v25, %v931_v27 }
  0xc1   : > { %v933_v29 = vadd.f32 %v3233_v25, %v932_v28 }
  0xc3   : > { %v3688_v30 = vsel %vm934_vm2, %v3233_v25, %v933_v29 }
  0xc5   : > { %906 = vadd.xlane.f32.xlu0 %v905_v22  ;;  %909 = vadd.xlane.f32.xlu1 %v908_v23 }
 0x128   : > { %v925_v31 = vpop.xlane.xlu0 %924  ;;  %v919_v32 = vpop.xlane.xlu1 %918 }
 0x129   : > { %v942_v33 = vmul.f32 %v3688_v30, %v925_v31  ;;  %v940_v34 = vmul.f32 %v3688_v30, %v919_v32  ;;  %v913_v35 = vpop.xlane.xlu2 %912 }
 0x12a   : > { %v938_v48 = vmul.f32 %v3688_v30, %v913_v35  ;;  %v3156_v35 = vld [vmem:[%s3614_s28 + $0x8] sm:$0xff] }
 0x12b   : > { %v3692_v36 = vsub.f32 %v900_v8, %v942_v33  ;;  %v3694_v37 = vsub.f32 %v898_v9, %v940_v34  ;;  %1152 = vmatpush.bf16.msra.mxu0 %v3156_v35 }
 0x12c   : > { %v3718_v55 = vsub.f32 %v896_v10, %v938_v48 }
 0x12d   : > { %v958_v38 = vmul.f32 %v3692_v36, %v3692_v36  ;;  %v956_v39 = vmul.f32 %v3694_v37, %v3694_v37 }
 0x12e   : > { %v954_v0 = vmul.f32 %v3718_v55, %v3718_v55 }
 0x12f   : > { %v978_v40 = vsel %vm904_vm1, %v958_v38, 0.0  ;;  %v972_v41 = vsel %vm904_vm1, %v956_v39, 0.0 }
 0x130   : > { %v928_v42 = vpop.xlane.xlu0 %927  ;;  %v922_v43 = vpop.xlane.xlu1 %921  ;;  %979 = vadd.xlane.f32.xlu2 %v978_v40  ;;  %973 = vadd.xlane.f32.xlu1 %v972_v41  ;;  %v966_v3 = vsel %vm904_vm1, %v954_v0, 0.0 }
 0x131   : > { %v943_v44 = vmul.f32 %v3688_v30, %v928_v42  ;;  %v941_v45 = vmul.f32 %v3688_v30, %v922_v43  ;;  %v916_v46 = vpop.xlane.xlu2 %915  ;;  %v3155_v42 = vld [vmem:[%s3614_s28] sm:$0xff] }
 0x132   : > { %v939_v47 = vmul.f32 %v3688_v30, %v916_v46  ;;  %1153 = vmatpush.bf16.msra.mxu0 %v3155_v42 }
 0x133   : > { %v3706_v49 = vsub.f32 %v901_v14, %v943_v44  ;;  %v3708_v50 = vsub.f32 %v899_v15, %v941_v45 }
 0x134   : > { %v3710_v51 = vsub.f32 %v897_v16, %v939_v47 }
 0x135   : > { %v957_v52 = vmul.f32 %v3708_v50, %v3708_v50  ;;  %v959_v53 = vmul.f32 %v3706_v49, %v3706_v49 }
 0x136   : > { %v955_v54 = vmul.f32 %v3710_v51, %v3710_v51 }
 0x137   : > { %v975_v56 = vsel %vm904_vm1, %v957_v52, 0.0  ;;  %v981_v57 = vsel %vm904_vm1, %v959_v53, 0.0 }
 0x138   : > { %976 = vadd.xlane.f32.xlu2 %v975_v56  ;;  %v969_v58 = vsel %vm904_vm1, %v955_v54, 0.0  ;;  %982 = vadd.xlane.f32.xlu0 %v981_v57  ;;  %v907_v59 = vpop.xlane.xlu0 %906  ;;  %v910_v60 = vpop.xlane.xlu1 %909 }
 0x139   : > { %970 = vadd.xlane.f32.xlu1 %v969_v58  ;;  %v936_v61 = vmul.f32 %v3688_v30, %v907_v59  ;;  %v937_v62 = vmul.f32 %v3688_v30, %v910_v60 }
 0x13b   : > { %v3725_v63 = vsub.f32 %v894_v20, %v936_v61  ;;  %v3729_v1 = vsub.f32 %v895_v21, %v937_v62 }
 0x13d   : > { %v952_v2 = vmul.f32 %v3725_v63, %v3725_v63  ;;  %v953_v5 = vmul.f32 %v3729_v1, %v3729_v1 }
 0x13f   : > { %v960_v4 = vsel %vm904_vm1, %v952_v2, 0.0  ;;  %v963_v6 = vsel %vm904_vm1, %v953_v5, 0.0 }
 0x140   : > { %967 = vadd.xlane.f32.xlu0 %v966_v3  ;;  %961 = vadd.xlane.f32.xlu2 %v960_v4 }
 0x148   : > { %964 = vadd.xlane.f32.xlu0 %v963_v6 }
 0x1a3   : > { %v980_v7 = vpop.xlane.xlu2 %979  ;;  %v974_v8 = vpop.xlane.xlu1 %973 }
 0x1a4   : > { %v990_v9 = vmul.f32 %v980_v7, %v3688_v30  ;;  %v988_v10 = vmul.f32 %v974_v8, %v3688_v30  ;;  %v3158_v7 = vld [vmem:[%s3623_s25] sm:$0xff] }
 0x1a6   : > { %v998_v11 = vadd.f32 1e-05, %v990_v9  ;;  %v3740_v12 = vadd.f32 1e-05, %v988_v10 }
 0x1a8   : > { %3234 = vrsqrt.f32 %v998_v11  ;;  %vm1066_vm4 = vweird.f32 %v998_v11  ;;  %vm1046_vm5 = vweird.f32 %v3740_v12 }
 0x1a9   : > { %3236 = vrsqrt.f32 %v3740_v12 }
 0x1ab   : > { %v977_v13 = vpop.xlane.xlu2 %976  ;;  %v983_v14 = vpop.xlane.xlu0 %982 }
 0x1ac   : > { %v989_v15 = vmul.f32 %v977_v13, %v3688_v30  ;;  %v971_v16 = vpop.xlane.xlu1 %970  ;;  %v991_v17 = vmul.f32 %v983_v14, %v3688_v30 }
 0x1ad   : > { %v987_v18 = vmul.f32 %v971_v16, %v3688_v30 }
 0x1ae   : > { %v3746_v19 = vpop.eup %3234  ;;  %v3748_v20 = vadd.f32 1e-05, %v989_v15  ;;  %v3750_v21 = vadd.f32 1e-05, %v991_v17 }
 0x1af   : > { %v3752_v22 = vpop.eup %3236  ;;  %v1061_v23 = vmul.f32 %v3746_v19, %v998_v11  ;;  %v3755_v24 = vadd.f32 1e-05, %v987_v18  ;;  %vm1067_vm3 = vweird.f32 %v3746_v19 }
 0x1b0   : > { %v1041_v25 = vmul.f32 %v3752_v22, %v3740_v12  ;;  %3238 = vrsqrt.f32 %v3748_v20  ;;  %vm1047_vm6 = vweird.f32 %v3752_v22  ;;  %vm3785_vm7 = vmor %vm1066_vm4, %vm1067_vm3  ;;  %vm1056_vm8 = vweird.f32 %v3748_v20  ;;  %v3819_v12 = vld [vmem:[%s4629_s24] ss:$0 sm:$0xff]  ;;  %s4640_s24 = sld [smem:[#allocation9_spill]] }
 0x1b1   : > { %v1062_v26 = vmul.f32 %v3746_v19, %v1061_v23  ;;  %3240 = vrsqrt.f32 %v3755_v24  ;;  %vm1036_vm9 = vweird.f32 %v3755_v24  ;;  %vm1076_vm11 = vweird.f32 %v3750_v21  ;;  %vm3805_vm12 = vmor %vm1046_vm5, %vm1047_vm6 }
 0x1b2   : > { %v1042_v27 = vmul.f32 %v3752_v22, %v1041_v25  ;;  %3242 = vrsqrt.f32 %v3750_v21 }
 0x1b3   : > { %v1063_v28 = vmul.f32 0.5, %v1062_v26  ;;  %v962_v29 = vpop.xlane.xlu2 %961  ;;  %v968_v31 = vpop.xlane.xlu0 %967 }
 0x1b4   : > { %v1043_v32 = vmul.f32 0.5, %v1042_v27  ;;  %v984_v33 = vmul.f32 %v962_v29, %v3688_v30  ;;  %v986_v34 = vmul.f32 %v968_v31, %v3688_v30 }
 0x1b5   : > { %v1064_v38 = vsub.f32 1.5, %v1063_v28 }
 0x1b6   : > { %v3239_v39 = vpop.eup %3238  ;;  %v3767_v40 = vadd.f32 1e-05, %v984_v33  ;;  %v3769_v41 = vadd.f32 1e-05, %v986_v34  ;;  %v1044_v46 = vsub.f32 1.5, %v1043_v32 }
 0x1b7   : > { %v3772_v43 = vpop.eup %3240  ;;  %v1051_v44 = vmul.f32 %v3239_v39, %v3748_v20  ;;  %v1065_v48 = vmul.f32 %v3746_v19, %v1064_v38  ;;  %vm1057_vm10 = vweird.f32 %v3239_v39 }
 0x1b8   : > { %v3243_v45 = vpop.eup %3242  ;;  %v1031_v47 = vmul.f32 %v3772_v43, %v3755_v24  ;;  %3244 = vrsqrt.f32 %v3767_v40  ;;  %v1045_v60 = vmul.f32 %v3752_v22, %v1044_v46  ;;  %vm1037_vm14 = vweird.f32 %v3772_v43  ;;  %vm1058_vm15 = vmor %vm1056_vm8, %vm1057_vm10 }
 0x1b9   : > { %v1052_v52 = vmul.f32 %v3239_v39, %v1051_v44  ;;  %v1071_v53 = vmul.f32 %v3243_v45, %v3750_v21  ;;  %3246 = vrsqrt.f32 %v3769_v41  ;;  %v1069_v3 = vsel %vm3785_vm7, %v3746_v19, %v1065_v48  ;;  %vm3837_vm2 = vmor %vm1036_vm9, %vm1037_vm14  ;;  %v3223_v21 = vld [vmem:[%s4632_s29] ss:$0 sm:$0xff]  ;;  %s4641_s29 = sld [smem:[#allocation18_spill]] }
 0x1ba   : > { %v1032_v54 = vmul.f32 %v3772_v43, %v1031_v47  ;;  %vm1077_vm13 = vweird.f32 %v3243_v45  ;;  %v1086_v13 = vmul.f32 %v1069_v3, %v3692_v36  ;;  %v1049_v14 = vsel %vm3805_vm12, %v3752_v22, %v1045_v60 }
 0x1bb   : > { %v1053_v56 = vmul.f32 0.5, %v1052_v52  ;;  %v1072_v57 = vmul.f32 %v3243_v45, %v1071_v53  ;;  %v965_v58 = vpop.xlane.xlu0 %964  ;;  %vm1078_vm0 = vmor %vm1076_vm11, %vm1077_vm13  ;;  %v1084_v28 = vmul.f32 %v1049_v14, %v3694_v37  ;;  %vm1006_vm3 = vweird.f32 %v3767_v40 }
 0x1bc   : > { %v1033_v61 = vmul.f32 0.5, %v1032_v54  ;;  %v985_v62 = vmul.f32 %v965_v58, %v3688_v30  ;;  %v1097_v27 = vmul.f32 %v3819_v12, %v1086_v13  ;;  %vm1026_vm7 = vweird.f32 %v3769_v41 }
 0x1bd   : > { %v1054_v0 = vsub.f32 1.5, %v1053_v56  ;;  %v1073_v2 = vmul.f32 0.5, %v1072_v57  ;;  %vm1182_vm12 = vcmask 523264   ;;  %vm1278_vm13 = vcmask 64512  }
 0x1be   : > { %v3796_v4 = vpop.eup %3244  ;;  %v1034_v5 = vsub.f32 1.5, %v1033_v61  ;;  %v3799_v6 = vadd.f32 1e-05, %v985_v62  ;;  %v1108_v35 = vadd.f32 %v3223_v21, %v1097_v27  ;;  %vm1323_vm14 = vcmask 130048  }
 0x1bf   : > { %v1055_v8 = vmul.f32 %v3239_v39, %v1054_v0  ;;  %v1074_v9 = vsub.f32 1.5, %v1073_v2  ;;  %v1001_v10 = vmul.f32 %v3796_v4, %v3767_v40  ;;  %v3247_v11 = vpop.eup %3246  ;;  %vm1007_vm4 = vweird.f32 %v3796_v4  ;;  %s4642_s22 = scalar_lea.vmem %s4641_s29, %s3597_s20 }
 0x1c0   : > { %3248 = vrsqrt.f32 %v3799_v6  ;;  %v1035_v15 = vmul.f32 %v3772_v43, %v1034_v5  ;;  %v1021_v17 = vmul.f32 %v3247_v11, %v3769_v41  ;;  %vm1027_vm5 = vweird.f32 %v3247_v11  ;;  %vm3860_vm6 = vmor %vm1006_vm3, %vm1007_vm4 }
 0x1c1   : > { %v1075_v16 = vmul.f32 %v3243_v45, %v1074_v9  ;;  %v1002_v36 = vmul.f32 %v3796_v4, %v1001_v10  ;;  %v1059_v18 = vsel %vm1058_vm15, %v3239_v39, %v1055_v8  ;;  %v1095_v39 = vmul.f32 %v3819_v12, %v1084_v28  ;;  %vm1028_vm8 = vmor %vm1026_vm7, %vm1027_vm5  ;;  %v3161_v8 = vld [vmem:[%s3632_s19 + $0x8] sm:$0xff]  ;;  %v3160_v9 = vld [vmem:[%s3632_s19] sm:$0xff]  ;;  %s4645_s19 = scalar_lea.vmem %s4578_s13, %s3597_s20 }
 0x1c2   : > { %v1022_v23 = vmul.f32 %v3247_v11, %v1021_v17  ;;  %v1085_v22 = vmul.f32 %v1059_v18, %v3708_v50  ;;  %v1039_v24 = vsel %vm3837_vm2, %v3772_v43, %v1035_v15  ;;  %vm1016_vm10 = vweird.f32 %v3799_v6 }
 0x1c3   : > { %v1003_v19 = vmul.f32 0.5, %v1002_v36  ;;  %v1079_v25 = vsel %vm1078_vm0, %v3243_v45, %v1075_v16  ;;  %v1083_v42 = vmul.f32 %v1039_v24, %v3710_v51  ;;  %v1106_v53 = vadd.f32 %v3223_v21, %v1095_v39 }
 0x1c4   : > { %v1087_v26 = vmul.f32 %v1079_v25, %v3706_v49  ;;  %v1023_v29 = vmul.f32 0.5, %v1022_v23  ;;  %v1096_v32 = vmul.f32 %v3819_v12, %v1085_v22  ;;  %v3224_v25 = vld [vmem:[%s4638_s27] ss:$0 sm:$0xff]  ;;  %vm1675_vm15 = vcmask 1043456  }
 0x1c5   : > { %v1004_v50 = vsub.f32 1.5, %v1003_v19  ;;  %v1094_v54 = vmul.f32 %v3819_v12, %v1083_v42 }
 0x1c6   : > { %v3249_v31 = vpop.eup %3248  ;;  %v1098_v49 = vmul.f32 %v3819_v12, %v1087_v26  ;;  %v1024_v34 = vsub.f32 1.5, %v1023_v29  ;;  %v1107_v46 = vadd.f32 %v3223_v21, %v1096_v32 }
 0x1c7   : > { %v1005_v33 = vmul.f32 %v3796_v4, %v1004_v50  ;;  %v1011_v37 = vmul.f32 %v3249_v31, %v3799_v6  ;;  %vm1017_vm9 = vweird.f32 %v3249_v31  ;;  %v1105_v61 = vadd.f32 %v3223_v21, %v1094_v54  ;;  %v3157_v6 = vld [vmem:[%s4635_s23] sm:$0xff]  ;;  %s4643_s23 = sld [smem:[#allocation19_spill]] }
 0x1c8   : > { %v1109_v38 = vadd.f32 %v3223_v21, %v1098_v49  ;;  %v1025_v43 = vmul.f32 %v3247_v11, %v1024_v34  ;;  %v1112_v57 = vpack.c.bf16 %v1107_v46, %v1106_v53  ;;  %vm1018_vm11 = vmor %vm1016_vm10, %vm1017_vm9  ;;  %v3226_v50 = vld [vmem:[%s4639_s17] ss:$0 sm:$0xff] }
 0x1c9   : > { %v1012_v44 = vmul.f32 %v3249_v31, %v1011_v37  ;;  %v1009_v47 = vsel %vm3860_vm6, %v3796_v4, %v1005_v33 }
 0x1ca   : > { %v1113_v45 = vpack.c.bf16 %v1109_v38, %v1108_v35  ;;  %v1029_v52 = vsel %vm1028_vm8, %v3247_v11, %v1025_v43  ;;  %v1080_v41 = vmul.f32 %v1009_v47, %v3725_v63 }
 0x1cb   : > { %v1013_v48 = vmul.f32 0.5, %v1012_v44  ;;  %v1082_v51 = vmul.f32 %v1029_v52, %v3718_v55 }
 0x1cc   : > { %1190 = vmatpush.bf16.msra.mxu1 %v1113_v45  ;;  %v1091_v2 = vmul.f32 %v3819_v12, %v1080_v41 }
 0x1cd   : > { %v1014_v56 = vsub.f32 1.5, %v1013_v48  ;;  %v1093_v58 = vmul.f32 %v3819_v12, %v1082_v51  ;;  %s4644_s1 = scalar_lea.vmem %s4643_s23, %s3597_s20 }
 0x1ce   : > { %v1102_v3 = vadd.f32 %v3223_v21, %v1091_v2 }
 0x1cf   : > { %v1015_v59 = vmul.f32 %v3249_v31, %v1014_v56  ;;  %v1104_v60 = vadd.f32 %v3223_v21, %v1093_v58 }
 0x1d0   : > { %1191 = vmatpush.bf16.msra.mxu1 %v1112_v57 }
 0x1d1   : > { %v1019_v62 = vsel %vm1018_vm11, %v3249_v31, %v1015_v59  ;;  %v1111_v55 = vpack.c.bf16 %v1105_v61, %v1104_v60 }
 0x1d2   : > { %v1081_v0 = vmul.f32 %v1019_v62, %v3729_v1  ;;  %v3159_v1 = vld [vmem:[%s3623_s25 + $0x8] sm:$0xff]  ;;  %s4636_s25 = scalar_lea.vmem %s4572_s7, %s3597_s20 }
 0x1d3   : > { %v3225_v16 = vld [vmem:[%s4636_s25] ss:$0 sm:$0xff] }
 0x1d4   : > { %1192 = vmatpush.bf16.msra.mxu1 %v1111_v55  ;;  %v1092_v63 = vmul.f32 %v3819_v12, %v1081_v0 }
 0x1d6   : > { %v1103_v4 = vadd.f32 %v3223_v21, %v1092_v63 }
 0x1d8   : > { %v1110_v5 = vpack.c.bf16 %v1103_v4, %v1102_v3 }
 0x1da   : > { %3025 = vmatmul.msk.bf16.vlgmr.msra.gmra.mxu0 %vm904_vm1, %v1110_v5  ;;  %1193 = vmatpush.bf16.msra.mxu1 %v1110_v5 }
 0x1dd   : > { %3033 = vmatmul.msk.bf16.vlgmr.msra.gmra.mxu1 %vm1182_vm12, %v3157_v6 }
 0x1de   : > { %1230 = vmatpush.bf16.msrb.mxu1 %v3159_v1 }
 0x1e2   : > { %1231 = vmatpush.bf16.msrb.mxu1 %v3158_v7 }
 0x1e6   : > { %1264 = vmatpush.bf16.msra.mxu1 %v3161_v8 }
 0x1ea   : > { %3026 = vmatmul.msk.bf16.gmra.mxu0 %vm904_vm1, %v1111_v55  ;;  %1265 = vmatpush.bf16.msra.mxu1 %v3160_v9 }
 0x1fa   : > { %3027 = vmatmul.msk.bf16.gmra.mxu0 %vm904_vm1, %v1112_v57 }
 0x20a   : > { %3028 = vmatmul.msk.bf16.gmra.mxu0 %vm904_vm1, %v1113_v45 }
 0x257   : > { %v1155_v12 = vpop.f32.mrf.mxu0 }
 0x258   : > { %v1156_v27 = vadd.f32 %v3224_v25, %v1155_v12 }
 0x25a   : > { %v1195_v10 = vpop.f32.mrf.mxu1 }
 0x25f   : > { %v1157_v14 = vpop.f32.mrf.mxu0 }
 0x260   : > { %v1158_v20 = vadd.f32 %v3224_v25, %v1157_v14 }
 0x262   : > { %v1197_v11 = vpop.f32.mrf.mxu1  ;;  %v3903_v21 = vpack.c.bf16 %v1158_v20, %v1156_v27 }
 0x263   : > { %v1200_v13 = vpack.c.bf16 %v1197_v11, %v1195_v10 }
 0x265   : > { %3042 = vmatmul.msk.bf16.vlgmr.msrb.gmra.mxu1 %vm904_vm1, %v1200_v13 }
 0x267   : > { %v1160_v19 = vpop.f32.mrf.mxu0 }
 0x268   : > { %v1161_v34 = vadd.f32 %v3224_v25, %v1160_v19 }
 0x26f   : > { %v1162_v28 = vpop.f32.mrf.mxu0 }
 0x270   : > { %v1163_v33 = vadd.f32 %v3224_v25, %v1162_v28 }
 0x272   : > { %v3915_v37 = vpack.c.bf16 %v1163_v33, %v1161_v34 }
 0x275   : > { %3051 = vmatmul.msk.bf16.vlgmr.msra.gmra.mxu1 %vm904_vm1, %v1200_v13 }
 0x277   : > { %v1165_v32 = vpop.f32.mrf.mxu0 }
 0x278   : > { %v1166_v39 = vadd.f32 %v3224_v25, %v1165_v32 }
 0x27f   : > { %v1167_v35 = vpop.f32.mrf.mxu0 }
 0x280   : > { %v1168_v38 = vadd.f32 %v3224_v25, %v1167_v35 }
 0x282   : > { %v3919_v40 = vpack.c.bf16 %v1168_v38, %v1166_v39 }
 0x287   : > { %v1170_v42 = vpop.f32.mrf.mxu0 }
 0x288   : > { %v1171_v45 = vadd.f32 %v3224_v25, %v1170_v42 }
 0x28f   : > { %v1172_v43 = vpop.f32.mrf.mxu0 }
 0x290   : > { %v1173_v44 = vadd.f32 %v3224_v25, %v1172_v43 }
 0x292   : > { %v3923_v46 = vpack.c.bf16 %v1173_v44, %v1171_v45 }
 0x2e2   : > { %v1233_v15 = vpop.f32.mrf.mxu1 }
 0x2e3   : > { %v1234_v17 = vadd.f32 %v3225_v16, %v1233_v15 }
 0x2ea   : > { %v1235_v36 = vpop.f32.mrf.mxu1 }
 0x2eb   : > { %v1236_v18 = vadd.f32 %v3225_v16, %v1235_v36 }
 0x2ed   : > { %v3894_v23 = vpack.c.bf16 %v1236_v18, %v1234_v17 }
 0x2ef   : > { %v1292_v22 = vsel %vm1278_vm13, %v3894_v23, 0 }
 0x2f0   : > { %1301 = vmatpush.bf16.xpose.msra.mxu2 %v1292_v22 }
 0x2f2   : > { %v1267_v26 = vpop.f32.mrf.mxu1 }
 0x2f3   : > { %v1268_v24 = vadd.f32 %v3226_v50, %v1267_v26 }
 0x2f7   : > { %3052 = vmatmul.msk.bf16.vlgmr.msra.gmra.mxu2 %vm1278_vm13, %v3903_v21 }
 0x2fa   : > { %v1269_v29 = vpop.f32.mrf.mxu1 }
 0x2fb   : > { %v1270_v31 = vadd.f32 %v3226_v50, %v1269_v29 }
 0x2fd   : > { %v3912_v49 = vpack.c.bf16 %v1270_v31, %v1268_v24 }
 0x2ff   : > { %1435 = vmatpush.bf16.msra.mxu3 %v3912_v49 }
 0x307   : > { %3053 = vmatmul.msk.bf16.gmra.mxu2 %vm1278_vm13, %v3915_v37 }
 0x317   : > { %3054 = vmatmul.msk.bf16.gmra.mxu2 %vm1278_vm13, %v3919_v40 }
 0x327   : > { %3055 = vmatmul.msk.bf16.gmra.mxu2 %vm1278_vm13, %v3923_v46 }
 0x37a   : > { %v1303_v47 = vpop.f32.mrf.mxu2 }
 0x37b   : > { %v1324_v48 = vsel %vm1323_vm14, %v1303_v47, -inf }
 0x37c   : > { %1325 = vmax.xlane.f32.xlu1 %v1324_v48 }
 0x382   : > { %v1305_v52 = vpop.f32.mrf.mxu2 }
 0x383   : > { %v1327_v53 = vsel %vm1323_vm14, %v1305_v52, -inf }
 0x384   : > { %1328 = vmax.xlane.f32.xlu2 %v1327_v53 }
 0x38a   : > { %v1308_v51 = vpop.f32.mrf.mxu2 }
 0x38b   : > { %v1330_v54 = vsel %vm1323_vm14, %v1308_v51, -inf }
 0x38c   : > { %1331 = vmax.xlane.f32.xlu0 %v1330_v54 }
 0x392   : > { %v1310_v56 = vpop.f32.mrf.mxu2 }
 0x393   : > { %v1333_v41 = vsel %vm1323_vm14, %v1310_v56, -inf }
 0x394   : > { %1334 = vmax.xlane.f32.xlu1 %v1333_v41 }
 0x39a   : > { %v1313_v57 = vpop.f32.mrf.mxu2 }
 0x39b   : > { %v1336_v58 = vsel %vm1323_vm14, %v1313_v57, -inf }
 0x39c   : > { %1337 = vmax.xlane.f32.xlu2 %v1336_v58 }
 0x3a2   : > { %v1315_v59 = vpop.f32.mrf.mxu2 }
 0x3a3   : > { %v1339_v60 = vsel %vm1323_vm14, %v1315_v59, -inf }
 0x3a4   : > { %1340 = vmax.xlane.f32.xlu0 %v1339_v60 }
 0x3aa   : > { %v1318_v61 = vpop.f32.mrf.mxu2 }
 0x3ab   : > { %v1342_v62 = vsel %vm1323_vm14, %v1318_v61, -inf }
 0x3ac   : > { %1343 = vmax.xlane.f32.xlu1 %v1342_v62 }
 0x3b2   : > { %v1320_v0 = vpop.f32.mrf.mxu2 }
 0x3b3   : > { %v1345_v55 = vsel %vm1323_vm14, %v1320_v0, -inf }
 0x3b4   : > { %1346 = vmax.xlane.f32.xlu2 %v1345_v55 }
 0x3ef   : > { %v1326_v2 = vpop.xlane.xlu1 %1325 }
 0x3f0   : > { %v1348_v63 = vsub.f32 %v1303_v47, %v1326_v2 }
 0x3f2   : > { %v1356_v3 = vmul.f32 1.442695, %v1348_v63 }
 0x3f4   : > { %3250 = vpow2.f32 %v1356_v3 }
 0x3f7   : > { %v1329_v4 = vpop.xlane.xlu2 %1328 }
 0x3f8   : > { %v1349_v5 = vsub.f32 %v1305_v52, %v1329_v4 }
 0x3fa   : > { %v3935_v6 = vpop.eup %3250  ;;  %v1358_v1 = vmul.f32 1.442695, %v1349_v5  ;;  %v1461_v5 = vld [vmem:[%s4640_s24] sm:$0xf] }
 0x3fb   : > { %v1372_v7 = vsel %vm1323_vm14, %v3935_v6, 0.0 }
 0x3fc   : > { %3252 = vpow2.f32 %v1358_v1  ;;  %1373 = vadd.xlane.f32.xlu0 %v1372_v7 }
 0x3ff   : > { %v1332_v8 = vpop.xlane.xlu0 %1331 }
 0x400   : > { %v1350_v9 = vsub.f32 %v1308_v51, %v1332_v8 }
 0x402   : > { %v3939_v10 = vpop.eup %3252  ;;  %v1360_v11 = vmul.f32 1.442695, %v1350_v9 }
 0x403   : > { %v1375_v13 = vsel %vm1323_vm14, %v3939_v10, 0.0 }
 0x404   : > { %3254 = vpow2.f32 %v1360_v11  ;;  %1376 = vadd.xlane.f32.xlu1 %v1375_v13 }
 0x407   : > { %v1335_v12 = vpop.xlane.xlu1 %1334 }
 0x408   : > { %v1351_v14 = vsub.f32 %v1310_v56, %v1335_v12 }
 0x40a   : > { %v3943_v15 = vpop.eup %3254  ;;  %v1362_v16 = vmul.f32 1.442695, %v1351_v14 }
 0x40b   : > { %v1378_v36 = vsel %vm1323_vm14, %v3943_v15, 0.0 }
 0x40c   : > { %3256 = vpow2.f32 %v1362_v16  ;;  %1379 = vadd.xlane.f32.xlu2 %v1378_v36 }
 0x40f   : > { %v1338_v17 = vpop.xlane.xlu2 %1337 }
 0x410   : > { %v1352_v18 = vsub.f32 %v1313_v57, %v1338_v17 }
 0x412   : > { %v3947_v19 = vpop.eup %3256  ;;  %v1364_v25 = vmul.f32 1.442695, %v1352_v18 }
 0x413   : > { %v1381_v22 = vsel %vm1323_vm14, %v3947_v19, 0.0 }
 0x414   : > { %3258 = vpow2.f32 %v1364_v25  ;;  %1382 = vadd.xlane.f32.xlu0 %v1381_v22 }
 0x417   : > { %v1341_v20 = vpop.xlane.xlu0 %1340 }
 0x418   : > { %v1353_v26 = vsub.f32 %v1315_v59, %v1341_v20 }
 0x41a   : > { %v3951_v27 = vpop.eup %3258  ;;  %v1366_v28 = vmul.f32 1.442695, %v1353_v26 }
 0x41b   : > { %v1384_v50 = vsel %vm1323_vm14, %v3951_v27, 0.0 }
 0x41c   : > { %3260 = vpow2.f32 %v1366_v28  ;;  %1385 = vadd.xlane.f32.xlu1 %v1384_v50 }
 0x41f   : > { %v1344_v29 = vpop.xlane.xlu1 %1343 }
 0x420   : > { %v1354_v24 = vsub.f32 %v1318_v61, %v1344_v29 }
 0x422   : > { %v3261_v31 = vpop.eup %3260  ;;  %v1368_v32 = vmul.f32 1.442695, %v1354_v24 }
 0x423   : > { %v1387_v33 = vsel %vm1323_vm14, %v3261_v31, 0.0 }
 0x424   : > { %3262 = vpow2.f32 %v1368_v32  ;;  %1388 = vadd.xlane.f32.xlu2 %v1387_v33 }
 0x427   : > { %v1347_v34 = vpop.xlane.xlu2 %1346 }
 0x428   : > { %v1355_v35 = vsub.f32 %v1320_v0, %v1347_v34 }
 0x42a   : > { %v3956_v38 = vpop.eup %3262  ;;  %v1370_v39 = vmul.f32 1.442695, %v1355_v35 }
 0x42b   : > { %v1390_v42 = vsel %vm1323_vm14, %v3956_v38, 0.0 }
 0x42c   : > { %3264 = vpow2.f32 %v1370_v39  ;;  %1391 = vadd.xlane.f32.xlu0 %v1390_v42 }
 0x432   : > { %v3960_v43 = vpop.eup %3264 }
 0x433   : > { %v1393_v44 = vsel %vm1323_vm14, %v3960_v43, 0.0 }
 0x434   : > { %1394 = vadd.xlane.f32.xlu1 %v1393_v44 }
 0x43c   : > { %1475 = vrot.lane.b32.xlu2 %v3894_v23, %s3462_s6 }
 0x440   : > { %1466 = vrot.lane.b32.xlu0 %v3903_v21, %s3462_s6 }
 0x444   : > { %1470 = vrot.lane.b32.xlu2 %v3919_v40, %s3462_s6 }
 0x448   : > { %1472 = vrot.lane.b32.xlu0 %v3923_v46, %s3462_s6 }
 0x44c   : > { %1760 = vrot.lane.b32.xlu2 %v3894_v23, %s3463_s8 }
 0x44d   : > { %1468 = vrot.lane.b32.xlu1 %v3915_v37, %s3462_s6 }
 0x450   : > { %1752 = vrot.lane.b32.xlu0 %v3903_v21, %s3463_s8 }
 0x454   : > { %1999 = vrot.lane.b32.xlu2 %v3903_v21, %s3464_s21 }
 0x455   : > { %2007 = vrot.lane.b32.xlu1 %v3894_v23, %s3464_s21 }
 0x458   : > { %2001 = vrot.lane.b32.xlu0 %v3915_v37, %s3464_s21 }
 0x45c   : > { %1756 = vrot.lane.b32.xlu2 %v3919_v40, %s3463_s8 }
 0x45d   : > { %1754 = vrot.lane.b32.xlu1 %v3915_v37, %s3463_s8 }
 0x460   : > { %1758 = vrot.lane.b32.xlu0 %v3923_v46, %s3463_s8 }
 0x464   : > { %2005 = vrot.lane.b32.xlu2 %v3923_v46, %s3464_s21 }
 0x465   : > { %2003 = vrot.lane.b32.xlu1 %v3919_v40, %s3464_s21 }
 0x46f   : > { %v1374_v21 = vpop.xlane.xlu0 %1373 }
 0x470   : > { %3266 = vrcp.f32 %v1374_v21 }
 0x476   : > { %v3267_v45 = vpop.eup %3266 }
 0x477   : > { %v1377_v23 = vpop.xlane.xlu1 %1376  ;;  %v1404_v48 = vmul.f32 %v3267_v45, %v3935_v6  ;;  %v1721_v6 = vsel %vm1675_vm15, %v1461_v5, 0 }
 0x478   : > { %3268 = vrcp.f32 %v1377_v23  ;;  %1730 = vmatpush.bf16.msrb.mxu3 %v1721_v6 }
 0x47e   : > { %v3269_v47 = vpop.eup %3268 }
 0x47f   : > { %v1405_v52 = vmul.f32 %v3269_v47, %v3939_v10  ;;  %v1380_v53 = vpop.xlane.xlu2 %1379 }
 0x480   : > { %3270 = vrcp.f32 %v1380_v53 }
 0x481   : > { %v1412_v37 = vpack.c.bf16 %v1405_v52, %v1404_v48 }
 0x483   : > { %3056 = vmatmul.msk.bf16.vlgmr.msra.gmra.mxu3 %vm1323_vm14, %v1412_v37 }
 0x486   : > { %v3271_v46 = vpop.eup %3270 }
 0x487   : > { %v1383_v51 = vpop.xlane.xlu0 %1382  ;;  %v1406_v40 = vmul.f32 %v3271_v46, %v3943_v15 }
 0x488   : > { %3272 = vrcp.f32 %v1383_v51 }
 0x48e   : > { %v3273_v54 = vpop.eup %3272 }
 0x48f   : > { %v1407_v56 = vmul.f32 %v3273_v54, %v3947_v19  ;;  %v1386_v57 = vpop.xlane.xlu1 %1385 }
 0x490   : > { %3274 = vrcp.f32 %v1386_v57 }
 0x491   : > { %v1413_v41 = vpack.c.bf16 %v1407_v56, %v1406_v40 }
 0x493   : > { %3057 = vmatmul.msk.bf16.gmra.mxu3 %vm1323_vm14, %v1413_v41 }
 0x496   : > { %v3275_v59 = vpop.eup %3274 }
 0x497   : > { %v1389_v58 = vpop.xlane.xlu2 %1388  ;;  %v1408_v62 = vmul.f32 %v3275_v59, %v3951_v27 }
 0x498   : > { %3276 = vrcp.f32 %v1389_v58 }
 0x49e   : > { %v3277_v60 = vpop.eup %3276 }
 0x49f   : > { %v1476_v61 = vpop.permute.xlu2 %1475  ;;  %v1409_v0 = vmul.f32 %v3277_v60, %v3261_v31  ;;  %v1392_v63 = vpop.xlane.xlu0 %1391 }
 0x4a0   : > { %v1490_v55 = vsel %vm1278_vm13, %v1476_v61, 0  ;;  %3278 = vrcp.f32 %v1392_v63 }
 0x4a1   : > { %1499 = vmatpush.bf16.xpose.msrb.mxu1 %v1490_v55  ;;  %v1414_v2 = vpack.c.bf16 %v1409_v0, %v1408_v62 }
 0x4a3   : > { %3058 = vmatmul.msk.bf16.gmra.mxu3 %vm1323_vm14, %v1414_v2 }
 0x4a6   : > { %v3279_v1 = vpop.eup %3278 }
 0x4a7   : > { %v1395_v3 = vpop.xlane.xlu1 %1394  ;;  %v1471_v4 = vpop.permute.xlu2 %1470  ;;  %v1410_v9 = vmul.f32 %v3279_v1, %v3956_v38 }
 0x4a8   : > { %3280 = vrcp.f32 %v1395_v3 }
 0x4ae   : > { %v3281_v7 = vpop.eup %3280 }
 0x4af   : > { %v1761_v8 = vpop.permute.xlu2 %1760  ;;  %v1411_v10 = vmul.f32 %v3281_v7, %v3960_v43 }
 0x4b0   : > { %v1775_v11 = vsel %vm1278_vm13, %v1761_v8, 0 }
 0x4b1   : > { %1784 = vmatpush.bf16.xpose.msra.mxu1 %v1775_v11  ;;  %v1415_v13 = vpack.c.bf16 %v1411_v10, %v1410_v9 }
 0x4b2   : > { %v1467_v12 = vpop.permute.xlu0 %1466 }
 0x4b3   : > { %3059 = vmatmul.msk.bf16.gmra.mxu3 %vm1323_vm14, %v1415_v13  ;;  %3060 = vmatmul.msk.bf16.vlgmr.msrb.gmra.mxu1 %vm1278_vm13, %v1467_v12 }
 0x4b7   : > { %v2000_v25 = vpop.permute.xlu2 %1999 }
 0x4ba   : > { %v1473_v36 = vpop.permute.xlu0 %1472 }
 0x4bf   : > { %v1469_v14 = vpop.permute.xlu1 %1468  ;;  %v1757_v26 = vpop.permute.xlu2 %1756 }
 0x4c2   : > { %v1753_v17 = vpop.permute.xlu0 %1752 }
 0x4c3   : > { %3061 = vmatmul.msk.bf16.gmra.mxu1 %vm1278_vm13, %v1469_v14 }
 0x4c7   : > { %v2008_v15 = vpop.permute.xlu1 %2007  ;;  %v2006_v60 = vpop.permute.xlu2 %2005 }
 0x4c8   : > { %v2022_v16 = vsel %vm1278_vm13, %v2008_v15, 0 }
 0x4c9   : > { %2031 = vmatpush.bf16.xpose.msra.mxu3 %v2022_v16 }
 0x4ca   : > { %v2002_v28 = vpop.permute.xlu0 %2001 }
 0x4cf   : > { %v1755_v18 = vpop.permute.xlu1 %1754 }
 0x4d2   : > { %v1759_v24 = vpop.permute.xlu0 %1758 }
 0x4d3   : > { %3062 = vmatmul.msk.bf16.gmra.mxu1 %vm1278_vm13, %v1471_v4 }
 0x4d7   : > { %v2004_v56 = vpop.permute.xlu1 %2003 }
 0x4e3   : > { %3063 = vmatmul.msk.bf16.gmra.mxu1 %vm1278_vm13, %v1473_v36 }
 0x4f3   : > { %3076 = vmatmul.msk.bf16.vlgmr.msra.gmra.mxu1 %vm1278_vm13, %v1753_v17 }
 0x503   : > { %3077 = vmatmul.msk.bf16.gmra.mxu1 %vm1278_vm13, %v1755_v18 }
 0x506   : > { %v1437_v19 = vpop.f32.mrf.mxu3 }
 0x50e   : > { %v1439_v22 = vpop.f32.mrf.mxu3 }
 0x50f   : > { %v1457_v20 = vpack.c.bf16 %v1439_v22, %v1437_v19 }
 0x511   : > { %3072 = vmatmul.msk.bf16.vlgmr.msrb.gmra.mxu3 %vm1278_vm13, %v1457_v20 }
 0x513   : > { %3078 = vmatmul.msk.bf16.gmra.mxu1 %vm1278_vm13, %v1757_v26 }
 0x516   : > { %v1442_v27 = vpop.f32.mrf.mxu3 }
 0x51e   : > { %v1444_v50 = vpop.f32.mrf.mxu3 }
 0x51f   : > { %v1458_v29 = vpack.c.bf16 %v1444_v50, %v1442_v27 }
 0x521   : > { %3073 = vmatmul.msk.bf16.gmra.mxu3 %vm1278_vm13, %v1458_v29 }
 0x523   : > { %3079 = vmatmul.msk.bf16.gmra.mxu1 %vm1278_vm13, %v1759_v24 }
 0x526   : > { %v1447_v31 = vpop.f32.mrf.mxu3 }
 0x52e   : > { %v1449_v32 = vpop.f32.mrf.mxu3 }
 0x52f   : > { %v1459_v33 = vpack.c.bf16 %v1449_v32, %v1447_v31 }
 0x530   : > { %v1501_v34 = vpop.f32.mrf.mxu1 }
 0x531   : > { %3074 = vmatmul.msk.bf16.gmra.mxu3 %vm1278_vm13, %v1459_v33  ;;  %v1521_v35 = vsel %vm1323_vm14, %v1501_v34, -inf }
 0x532   : > { %1522 = vmax.xlane.f32.xlu1 %v1521_v35 }
 0x536   : > { %v1452_v38 = vpop.f32.mrf.mxu3 }
 0x538   : > { %v4022_v39 = vpop.f32.mrf.mxu1 }
 0x539   : > { %v1524_v42 = vsel %vm1323_vm14, %v4022_v39, -inf }
 0x53a   : > { %1525 = vmax.xlane.f32.xlu0 %v1524_v42 }
 0x53e   : > { %v1454_v43 = vpop.f32.mrf.mxu3 }
 0x53f   : > { %v1460_v44 = vpack.c.bf16 %v1454_v43, %v1452_v38 }
 0x540   : > { %v4026_v21 = vpop.f32.mrf.mxu1 }
 0x541   : > { %3075 = vmatmul.msk.bf16.gmra.mxu3 %vm1278_vm13, %v1460_v44  ;;  %v1527_v23 = vsel %vm1323_vm14, %v4026_v21, -inf }
 0x542   : > { %1528 = vmax.xlane.f32.xlu2 %v1527_v23 }
 0x548   : > { %v4031_v45 = vpop.f32.mrf.mxu1 }
 0x549   : > { %v1530_v47 = vsel %vm1323_vm14, %v4031_v45, -inf }
 0x54a   : > { %1531 = vmax.xlane.f32.xlu1 %v1530_v47 }
 0x550   : > { %v4035_v48 = vpop.f32.mrf.mxu1 }
 0x551   : > { %3088 = vmatmul.msk.bf16.vlgmr.msra.gmra.mxu3 %vm1278_vm13, %v2000_v25  ;;  %v1533_v52 = vsel %vm1323_vm14, %v4035_v48, -inf }
 0x552   : > { %1534 = vmax.xlane.f32.xlu0 %v1533_v52 }
 0x558   : > { %v4040_v37 = vpop.f32.mrf.mxu1 }
 0x559   : > { %v1536_v53 = vsel %vm1323_vm14, %v4040_v37, -inf }
 0x55a   : > { %1537 = vmax.xlane.f32.xlu2 %v1536_v53 }
 0x560   : > { %v4044_v51 = vpop.f32.mrf.mxu1 }
 0x561   : > { %3089 = vmatmul.msk.bf16.gmra.mxu3 %vm1278_vm13, %v2002_v28  ;;  %v1539_v46 = vsel %vm1323_vm14, %v4044_v51, -inf }
 0x562   : > { %1540 = vmax.xlane.f32.xlu1 %v1539_v46 }
 0x568   : > { %v4049_v54 = vpop.f32.mrf.mxu1 }
 0x569   : > { %v1542_v40 = vsel %vm1323_vm14, %v4049_v54, -inf }
 0x56a   : > { %1543 = vmax.xlane.f32.xlu0 %v1542_v40 }
 0x570   : > { %v4053_v41 = vpop.f32.mrf.mxu1 }
 0x571   : > { %3090 = vmatmul.msk.bf16.gmra.mxu3 %vm1278_vm13, %v2004_v56  ;;  %v1806_v57 = vsel %vm1323_vm14, %v4053_v41, -inf }
 0x572   : > { %1807 = vmax.xlane.f32.xlu2 %v1806_v57 }
 0x578   : > { %v4058_v58 = vpop.f32.mrf.mxu1 }
 0x579   : > { %v1809_v59 = vsel %vm1323_vm14, %v4058_v58, -inf }
 0x57a   : > { %1810 = vmax.xlane.f32.xlu1 %v1809_v59 }
 0x57e   : > { %1614 = vrot.lane.b32.xlu0 %v3912_v49, %s3462_s6 }
 0x580   : > { %v4064_v61 = vpop.f32.mrf.mxu1 }
 0x581   : > { %3091 = vmatmul.msk.bf16.gmra.mxu3 %vm1278_vm13, %v2006_v60  ;;  %v1812_v62 = vsel %vm1323_vm14, %v4064_v61, -inf }
 0x582   : > { %1813 = vmax.xlane.f32.xlu1 %v1812_v62 }
 0x588   : > { %v4069_v0 = vpop.f32.mrf.mxu1 }
 0x589   : > { %v1815_v55 = vsel %vm1323_vm14, %v4069_v0, -inf }
 0x58a   : > { %1816 = vmax.xlane.f32.xlu2 %v1815_v55 }
 0x590   : > { %v4073_v2 = vpop.f32.mrf.mxu1 }
 0x591   : > { %v1818_v63 = vsel %vm1323_vm14, %v4073_v2, -inf }
 0x592   : > { %1819 = vmax.xlane.f32.xlu1 %v1818_v63 }
 0x594   : > { %v4077_v3 = vpop.f32.mrf.mxu3 }
 0x598   : > { %v4079_v4 = vpop.f32.mrf.mxu1 }
 0x599   : > { %v1821_v5 = vsel %vm1323_vm14, %v4079_v4, -inf }
 0x59a   : > { %1822 = vmax.xlane.f32.xlu2 %v1821_v5 }
 0x59c   : > { %v4083_v6 = vpop.f32.mrf.mxu3 }
 0x5a0   : > { %v4085_v1 = vpop.f32.mrf.mxu1 }
 0x5a1   : > { %v1824_v7 = vsel %vm1323_vm14, %v4085_v1, -inf }
 0x5a2   : > { %1825 = vmax.xlane.f32.xlu2 %v1824_v7 }
 0x5a4   : > { %v4089_v8 = vpop.f32.mrf.mxu3 }
 0x5a5   : > { %v1523_v9 = vpop.xlane.xlu1 %1522 }
 0x5a6   : > { %v1545_v10 = vsub.f32 %v1501_v34, %v1523_v9 }
 0x5a8   : > { %v1553_v11 = vmul.f32 1.442695, %v1545_v10  ;;  %v4091_v13 = vpop.f32.mrf.mxu1 }
 0x5a9   : > { %v1827_v12 = vsel %vm1323_vm14, %v4091_v13, -inf }
 0x5aa   : > { %3282 = vpow2.f32 %v1553_v11  ;;  %1828 = vmax.xlane.f32.xlu1 %v1827_v12 }
 0x5ac   : > { %v4095_v14 = vpop.f32.mrf.mxu3 }
 0x5ad   : > { %v1526_v15 = vpop.xlane.xlu0 %1525 }
 0x5ae   : > { %v1546_v16 = vsub.f32 %v4022_v39, %v1526_v15 }
 0x5b0   : > { %v4098_v36 = vpop.eup %3282  ;;  %v1555_v17 = vmul.f32 1.442695, %v1546_v16 }
 0x5b1   : > { %v1569_v18 = vsel %vm1323_vm14, %v4098_v36, 0.0 }
 0x5b2   : > { %3284 = vpow2.f32 %v1555_v17  ;;  %1570 = vadd.xlane.f32.xlu2 %v1569_v18 }
 0x5b4   : > { %v4102_v19 = vpop.f32.mrf.mxu3 }
 0x5b5   : > { %v1529_v25 = vpop.xlane.xlu2 %1528 }
 0x5b6   : > { %v1547_v22 = vsub.f32 %v4026_v21, %v1529_v25 }
 0x5b8   : > { %v4105_v20 = vpop.eup %3284  ;;  %v1557_v26 = vmul.f32 1.442695, %v1547_v22 }
 0x5b9   : > { %v1572_v27 = vsel %vm1323_vm14, %v4105_v20, 0.0 }
 0x5ba   : > { %3286 = vpow2.f32 %v1557_v26  ;;  %1573 = vadd.xlane.f32.xlu1 %v1572_v27 }
 0x5bc   : > { %v4109_v28 = vpop.f32.mrf.mxu3 }
 0x5bd   : > { %v1532_v50 = vpop.xlane.xlu1 %1531 }
 0x5be   : > { %v1548_v29 = vsub.f32 %v4031_v45, %v1532_v50 }
 0x5c0   : > { %v4112_v24 = vpop.eup %3286  ;;  %v1559_v31 = vmul.f32 1.442695, %v1548_v29 }
 0x5c1   : > { %v1575_v32 = vsel %vm1323_vm14, %v4112_v24, 0.0 }
 0x5c2   : > { %3288 = vpow2.f32 %v1559_v31  ;;  %1576 = vadd.xlane.f32.xlu2 %v1575_v32 }
 0x5c4   : > { %v4116_v33 = vpop.f32.mrf.mxu3 }
 0x5c5   : > { %v1535_v34 = vpop.xlane.xlu0 %1534 }
 0x5c6   : > { %v1549_v35 = vsub.f32 %v4035_v48, %v1535_v34 }
 0x5c8   : > { %v4119_v38 = vpop.eup %3288  ;;  %v1561_v39 = vmul.f32 1.442695, %v1549_v35 }
 0x5c9   : > { %v1578_v42 = vsel %vm1323_vm14, %v4119_v38, 0.0 }
 0x5ca   : > { %3290 = vpow2.f32 %v1561_v39  ;;  %1579 = vadd.xlane.f32.xlu1 %v1578_v42 }
 0x5cc   : > { %v4123_v43 = vpop.f32.mrf.mxu3 }
 0x5cd   : > { %v1538_v44 = vpop.xlane.xlu2 %1537 }
 0x5ce   : > { %v1550_v21 = vsub.f32 %v4040_v37, %v1538_v44 }
 0x5d0   : > { %v4126_v23 = vpop.eup %3290  ;;  %v1563_v45 = vmul.f32 1.442695, %v1550_v21 }
 0x5d1   : > { %v1581_v47 = vsel %vm1323_vm14, %v4126_v23, 0.0 }
 0x5d2   : > { %3292 = vpow2.f32 %v1563_v45  ;;  %1582 = vadd.xlane.f32.xlu1 %v1581_v47 }
 0x5d4   : > { %v4130_v48 = vpop.f32.mrf.mxu3 }
 0x5d5   : > { %v1541_v52 = vpop.xlane.xlu1 %1540  ;;  %v2053_v39 = vsel %vm1323_vm14, %v4130_v48, -inf }
 0x5d6   : > { %v1551_v53 = vsub.f32 %v4044_v51, %v1541_v52 }
 0x5d8   : > { %v4133_v46 = vpop.eup %3292  ;;  %v1565_v40 = vmul.f32 1.442695, %v1551_v53 }
 0x5d9   : > { %v1584_v56 = vsel %vm1323_vm14, %v4133_v46, 0.0 }
 0x5da   : > { %3294 = vpow2.f32 %v1565_v40  ;;  %1585 = vadd.xlane.f32.xlu2 %v1584_v56 }
 0x5dc   : > { %v4137_v37 = vpop.f32.mrf.mxu3 }
 0x5dd   : > { %v1544_v57 = vpop.xlane.xlu0 %1543  ;;  %v2056_v27 = vsel %vm1323_vm14, %v4137_v37, -inf }
 0x5de   : > { %v1552_v59 = vsub.f32 %v4049_v54, %v1544_v57 }
 0x5e0   : > { %v4140_v60 = vpop.eup %3294  ;;  %v1567_v62 = vmul.f32 1.442695, %v1552_v59 }
 0x5e1   : > { %v1587_v55 = vsel %vm1323_vm14, %v4140_v60, 0.0 }
 0x5e2   : > { %3296 = vpow2.f32 %v1567_v62  ;;  %1588 = vadd.xlane.f32.xlu1 %v1587_v55 }
 0x5e4   : > { %v4144_v51 = vpop.f32.mrf.mxu3 }
 0x5e5   : > { %v1808_v63 = vpop.xlane.xlu2 %1807  ;;  %v2059_v10 = vsel %vm1323_vm14, %v4144_v51, -inf }
 0x5e6   : > { %v1830_v5 = vsub.f32 %v4053_v41, %v1808_v63 }
 0x5e8   : > { %v4147_v7 = vpop.eup %3296  ;;  %v1838_v9 = vmul.f32 1.442695, %v1830_v5 }
 0x5e9   : > { %v1590_v54 = vsel %vm1323_vm14, %v4147_v7, 0.0 }
 0x5ea   : > { %3298 = vpow2.f32 %v1838_v9  ;;  %2060 = vmax.xlane.f32.xlu1 %v2059_v10  ;;  %1591 = vadd.xlane.f32.xlu2 %v1590_v54 }
 0x5ec   : > { %v4153_v11 = vpop.f32.mrf.mxu3 }
 0x5ed   : > { %v1811_v12 = vpop.xlane.xlu1 %1810 }
 0x5ee   : > { %v1831_v15 = vsub.f32 %v4058_v58, %v1811_v12 }
 0x5f0   : > { %v4156_v16 = vpop.eup %3298  ;;  %v1840_v41 = vmul.f32 1.442695, %v1831_v15  ;;  %v1615_v17 = vpop.permute.xlu0 %1614 }
 0x5f1   : > { %1636 = vmatpush.bf16.msrb.mxu0 %v1615_v17  ;;  %v1854_v18 = vsel %vm1323_vm14, %v4156_v16, 0.0 }
 0x5f2   : > { %3300 = vpow2.f32 %v1840_v41  ;;  %1855 = vadd.xlane.f32.xlu0 %v1854_v18 }
 0x5f4   : > { %v4160_v25 = vpop.f32.mrf.mxu3 }
 0x5f5   : > { %v2065_v22 = vsel %vm1323_vm14, %v4160_v25, -inf  ;;  %v1814_v29 = vpop.xlane.xlu1 %1813 }
 0x5f6   : > { %2066 = vmax.xlane.f32.xlu1 %v2065_v22  ;;  %v1832_v34 = vsub.f32 %v4064_v61, %v1814_v29  ;;  %v2062_v61 = vsel %vm1323_vm14, %v4153_v11, -inf }
 0x5f8   : > { %v4164_v26 = vpop.eup %3300  ;;  %v1842_v44 = vmul.f32 1.442695, %v1832_v34 }
 0x5f9   : > { %v1857_v58 = vsel %vm1323_vm14, %v4164_v26, 0.0 }
 0x5fa   : > { %1858 = vadd.xlane.f32.xlu2 %v1857_v58  ;;  %2057 = vmax.xlane.f32.xlu0 %v2056_v27 }
 0x5fc   : > { %v4170_v50 = vpop.f32.mrf.mxu3 }
 0x5fd   : > { %v1817_v31 = vpop.xlane.xlu2 %1816  ;;  %v2068_v42 = vsel %vm1323_vm14, %v4170_v50, -inf }
 0x5fe   : > { %v1833_v32 = vsub.f32 %v4069_v0, %v1817_v31 }
 0x600   : > { %v1844_v35 = vmul.f32 1.442695, %v1833_v32 }
 0x602   : > { %2054 = vmax.xlane.f32.xlu2 %v2053_v39  ;;  %2069 = vmax.xlane.f32.xlu0 %v2068_v42  ;;  %3302 = vpow2.f32 %v1844_v35 }
 0x603   : > { %3304 = vpow2.f32 %v1842_v44 }
 0x604   : > { %v4178_v21 = vpop.f32.mrf.mxu3 }
 0x605   : > { %v2071_v45 = vsel %vm1323_vm14, %v4178_v21, -inf  ;;  %v4198_v59 = vpop.xlane.xlu1 %1819 }
 0x606   : > { %2072 = vmax.xlane.f32.xlu1 %v2071_v45 }
 0x608   : > { %v4184_v0 = vpop.eup %3302 }
 0x609   : > { %v1863_v53 = vsel %vm1323_vm14, %v4184_v0, 0.0  ;;  %v4192_v40 = vpop.eup %3304 }
 0x60a   : > { %2063 = vmax.xlane.f32.xlu2 %v2062_v61  ;;  %v1860_v56 = vsel %vm1323_vm14, %v4192_v40, 0.0 }
 0x60c   : > { %v4186_v47 = vpop.f32.mrf.mxu3 }
 0x60d   : > { %v2074_v52 = vsel %vm1323_vm14, %v4186_v47, -inf  ;;  %v4196_v57 = vpop.xlane.xlu2 %1822 }
 0x60e   : > { %2075 = vmax.xlane.f32.xlu0 %v2074_v52  ;;  %1864 = vadd.xlane.f32.xlu1 %v1863_v53 }
 0x612   : > { %1861 = vadd.xlane.f32.xlu2 %v1860_v56 }
 0x615   : > { %v4200_v62 = vpop.xlane.xlu2 %1825 }
 0x61d   : > { %v4204_v55 = vpop.xlane.xlu1 %1828 }
 0x622   : > { %1898 = vrot.lane.b32.xlu0 %v3912_v49, %s3463_s8 }
 0x625   : > { %v1571_v63 = vpop.xlane.xlu2 %1570 }
 0x626   : > { %3306 = vrcp.f32 %v1571_v63 }
 0x62c   : > { %v3307_v9 = vpop.eup %3306 }
 0x62d   : > { %v1574_v5 = vpop.xlane.xlu1 %1573  ;;  %v1601_v54 = vmul.f32 %v3307_v9, %v4098_v36 }
 0x62e   : > { %3308 = vrcp.f32 %v1574_v5 }
 0x634   : > { %v3309_v10 = vpop.eup %3308 }
 0x635   : > { %v1602_v12 = vmul.f32 %v3309_v10, %v4105_v20  ;;  %v1577_v41 = vpop.xlane.xlu2 %1576 }
 0x636   : > { %3310 = vrcp.f32 %v1577_v41 }
 0x637   : > { %v1609_v15 = vpack.c.bf16 %v1602_v12, %v1601_v54 }
 0x639   : > { %3064 = vmatmul.msk.bf16.vlgmr.msrb.gmra.mxu0 %vm1323_vm14, %v1609_v15 }
 0x63c   : > { %v3311_v18 = vpop.eup %3310 }
 0x63d   : > { %v1580_v17 = vpop.xlane.xlu1 %1579  ;;  %v1603_v58 = vmul.f32 %v3311_v18, %v4112_v24 }
 0x63e   : > { %3312 = vrcp.f32 %v1580_v17 }
 0x644   : > { %v3313_v22 = vpop.eup %3312 }
 0x645   : > { %v1604_v27 = vmul.f32 %v3313_v22, %v4119_v38  ;;  %v1583_v31 = vpop.xlane.xlu1 %1582 }
 0x646   : > { %3314 = vrcp.f32 %v1583_v31 }
 0x647   : > { %v1610_v29 = vpack.c.bf16 %v1604_v27, %v1603_v58 }
 0x649   : > { %3065 = vmatmul.msk.bf16.gmra.mxu0 %vm1323_vm14, %v1610_v29 }
 0x64c   : > { %v3315_v20 = vpop.eup %3314 }
 0x64d   : > { %v1586_v36 = vpop.xlane.xlu2 %1585  ;;  %v1605_v34 = vmul.f32 %v3315_v20, %v4126_v23 }
 0x64e   : > { %3316 = vrcp.f32 %v1586_v36 }
 0x654   : > { %v3317_v32 = vpop.eup %3316 }
 0x655   : > { %v1606_v35 = vmul.f32 %v3317_v32, %v4133_v46  ;;  %v1589_v42 = vpop.xlane.xlu1 %1588 }
 0x656   : > { %3318 = vrcp.f32 %v1589_v42 }
 0x657   : > { %v1611_v39 = vpack.c.bf16 %v1606_v35, %v1605_v34 }
 0x659   : > { %3066 = vmatmul.msk.bf16.gmra.mxu0 %vm1323_vm14, %v1611_v39 }
 0x65c   : > { %v3319_v38 = vpop.eup %3318 }
 0x65d   : > { %v1592_v24 = vpop.xlane.xlu2 %1591  ;;  %v1607_v61 = vmul.f32 %v3319_v38, %v4140_v60  ;;  %v2061_v23 = vpop.xlane.xlu1 %2060 }
 0x65e   : > { %3320 = vrcp.f32 %v1592_v24  ;;  %v2079_v5 = vsub.f32 %v4144_v51, %v2061_v23 }
 0x660   : > { %v2089_v10 = vmul.f32 1.442695, %v2079_v5 }
 0x664   : > { %v3321_v44 = vpop.eup %3320 }
 0x665   : > { %v1856_v45 = vpop.xlane.xlu0 %1855  ;;  %v1608_v52 = vmul.f32 %v3321_v44, %v4147_v7  ;;  %v1834_v7 = vsub.f32 %v4073_v2, %v4198_v59 }
 0x667   : > { %v1612_v53 = vpack.c.bf16 %v1608_v52, %v1607_v61  ;;  %v1846_v51 = vmul.f32 1.442695, %v1834_v7 }
 0x669   : > { %3067 = vmatmul.msk.bf16.gmra.mxu0 %vm1323_vm14, %v1612_v53  ;;  %v4220_v54 = vpop.xlane.xlu1 %2066 }
 0x66d   : > { %v2058_v56 = vpop.xlane.xlu0 %2057  ;;  %v1859_v46 = vpop.xlane.xlu2 %1858 }
 0x66e   : > { %v2078_v63 = vsub.f32 %v4137_v37, %v2058_v56 }
 0x670   : > { %v2087_v9 = vmul.f32 1.442695, %v2078_v63  ;;  %v1837_v63 = vsub.f32 %v4091_v13, %v4204_v55 }
 0x672   : > { %3322 = vpow2.f32 %v2087_v9 }
 0x673   : > { %3324 = vpow2.f32 %v2089_v10 }
 0x675   : > { %v2055_v12 = vpop.xlane.xlu2 %2054 }
 0x676   : > { %v2077_v60 = vsub.f32 %v4130_v48, %v2055_v12  ;;  %v1835_v48 = vsub.f32 %v4079_v4, %v4196_v57  ;;  %v1662_v12 = vld [vmem:[%s4640_s24 + $0x4] sm:$0xf] }
 0x677   : > { %v1677_v55 = vsel %vm1675_vm15, %v1662_v12, 0 }
 0x678   : > { %v4223_v15 = vpop.eup %3322  ;;  %v2085_v41 = vmul.f32 1.442695, %v2077_v60  ;;  %v1848_v36 = vmul.f32 1.442695, %v1835_v48  ;;  %1686 = vmatpush.bf16.msrb.mxu2 %v1677_v55 }
 0x679   : > { %v2104_v37 = vsel %vm1323_vm14, %v4223_v15, 0.0  ;;  %v2073_v17 = vpop.xlane.xlu1 %2072  ;;  %v4229_v22 = vpop.eup %3324 }
 0x67a   : > { %2105 = vadd.xlane.f32.xlu1 %v2104_v37  ;;  %3326 = vpow2.f32 %v2085_v41  ;;  %v2083_v2 = vsub.f32 %v4178_v21, %v2073_v17  ;;  %v2107_v29 = vsel %vm1323_vm14, %v4229_v22, 0.0  ;;  %v1836_v21 = vsub.f32 %v4085_v1, %v4200_v62 }
 0x67b   : > { %3328 = vpow2.f32 %v1846_v51 }
 0x67c   : > { %v2097_v20 = vmul.f32 1.442695, %v2083_v2  ;;  %v1850_v35 = vmul.f32 1.442695, %v1836_v21 }
 0x67d   : > { %v2064_v18 = vpop.xlane.xlu2 %2063 }
 0x67e   : > { %v2080_v58 = vsub.f32 %v4153_v11, %v2064_v18  ;;  %v2070_v11 = vpop.xlane.xlu0 %2069 }
 0x67f   : > { %v2082_v1 = vsub.f32 %v4170_v50, %v2070_v11 }
 0x680   : > { %v2091_v59 = vmul.f32 1.442695, %v2080_v58  ;;  %v4235_v27 = vpop.eup %3326 }
 0x681   : > { %v2101_v31 = vsel %vm1323_vm14, %v4235_v27, 0.0  ;;  %v4241_v32 = vpop.eup %3328  ;;  %v2095_v53 = vmul.f32 1.442695, %v2082_v1  ;;  %v1865_v5 = vpop.xlane.xlu1 %1864 }
 0x682   : > { %3330 = vpow2.f32 %v2091_v59  ;;  %2108 = vadd.xlane.f32.xlu1 %v2107_v29  ;;  %2102 = vadd.xlane.f32.xlu2 %v2101_v31  ;;  %v1866_v57 = vsel %vm1323_vm14, %v4241_v32, 0.0 }
 0x683   : > { %3332 = vpow2.f32 %v1848_v36 }
 0x684   : > { %3334 = vpow2.f32 %v2097_v20 }
 0x685   : > { %3336 = vrcp.f32 %v1859_v46  ;;  %v1862_v46 = vpop.xlane.xlu2 %1861 }
 0x686   : > { %3338 = vrcp.f32 %v1856_v45  ;;  %v2076_v39 = vpop.xlane.xlu0 %2075 }
 0x687   : > { %3340 = vpow2.f32 %v1850_v35  ;;  %v2084_v13 = vsub.f32 %v4186_v47, %v2076_v39 }
 0x688   : > { %v4243_v4 = vpop.eup %3330  ;;  %3342 = vpow2.f32 %v2095_v53 }
 0x689   : > { %v2110_v34 = vsel %vm1323_vm14, %v4243_v4, 0.0  ;;  %v4251_v42 = vpop.eup %3332  ;;  %3344 = vrcp.f32 %v1862_v46  ;;  %v2099_v37 = vmul.f32 1.442695, %v2084_v13 }
 0x68a   : > { %1867 = vadd.xlane.f32.xlu1 %v1866_v57  ;;  %2111 = vadd.xlane.f32.xlu0 %v2110_v34  ;;  %v4253_v24 = vpop.eup %3334  ;;  %v1869_v44 = vsel %vm1323_vm14, %v4251_v42, 0.0  ;;  %3346 = vrcp.f32 %v1865_v5 }
 0x68b   : > { %v3337_v38 = vpop.eup %3336  ;;  %v2119_v61 = vsel %vm1323_vm14, %v4253_v24, 0.0 }
 0x68c   : > { %v3339_v62 = vpop.eup %3338  ;;  %v1887_v52 = vmul.f32 %v3337_v38, %v4164_v26 }
 0x68d   : > { %v1886_v45 = vmul.f32 %v3339_v62, %v4156_v16  ;;  %v4262_v56 = vpop.eup %3340  ;;  %v1852_v16 = vmul.f32 1.442695, %v1837_v63 }
 0x68e   : > { %v1872_v26 = vsel %vm1323_vm14, %v4262_v56, 0.0  ;;  %v4271_v9 = vpop.eup %3342 }
 0x68f   : > { %v1894_v50 = vpack.c.bf16 %v1887_v52, %v1886_v45  ;;  %v3345_v10 = vpop.eup %3344  ;;  %3348 = vpow2.f32 %v1852_v16  ;;  %v2116_v7 = vsel %vm1323_vm14, %v4271_v9, 0.0  ;;  %v1946_v52 = vld [vmem:[%s4640_s24 + $0x8] sm:$0xf] }
 0x690   : > { %v3347_v60 = vpop.eup %3346  ;;  %v1888_v41 = vmul.f32 %v3345_v10, %v4192_v40  ;;  %3350 = vpow2.f32 %v2099_v37  ;;  %v2081_v40 = vsub.f32 %v4160_v25, %v4220_v54 }
 0x692   : > { %1870 = vadd.xlane.f32.xlu1 %v1869_v44  ;;  %2120 = vadd.xlane.f32.xlu0 %v2119_v61 }
 0x694   : > { %v1899_v23 = vpop.permute.xlu0 %1898 }
 0x695   : > { %1920 = vmatpush.bf16.msra.mxu0 %v1899_v23  ;;  %v4280_v51 = vpop.eup %3348 }
 0x696   : > { %v1875_v47 = vsel %vm1323_vm14, %v4280_v51, 0.0  ;;  %v4285_v18 = vpop.eup %3350 }
 0x697   : > { %v2122_v58 = vsel %vm1323_vm14, %v4285_v18, 0.0 }
 0x698   : > { %3080 = vmatmul.msk.bf16.vlgmr.msra.gmra.mxu0 %vm1323_vm14, %v1894_v50  ;;  %v1960_v50 = vsel %vm1675_vm15, %v1946_v52, 0 }
 0x699   : > { %1969 = vmatpush.bf16.msra.mxu2 %v1960_v50 }
 0x69a   : > { %1873 = vadd.xlane.f32.xlu1 %v1872_v26  ;;  %2145 = vrot.lane.b32.xlu2 %v3912_v49, %s3464_s21  ;;  %v1889_v49 = vmul.f32 %v3347_v60, %v4184_v0  ;;  %v2093_v0 = vmul.f32 1.442695, %v2081_v40 }
 0x69c   : > { %v1895_v17 = vpack.c.bf16 %v1889_v49, %v1888_v41  ;;  %3352 = vpow2.f32 %v2093_v0 }
 0x6a2   : > { %2117 = vadd.xlane.f32.xlu1 %v2116_v7  ;;  %v4291_v29 = vpop.eup %3352 }
 0x6a3   : > { %v2113_v31 = vsel %vm1323_vm14, %v4291_v29, 0.0 }
 0x6a8   : > { %3081 = vmatmul.msk.bf16.gmra.mxu0 %vm1323_vm14, %v1895_v17 }
 0x6aa   : > { %1876 = vadd.xlane.f32.xlu1 %v1875_v47 }
 0x6b2   : > { %2123 = vadd.xlane.f32.xlu1 %v2122_v58 }
 0x6b6   : > { %v1638_v48 = vpop.f32.mrf.mxu0 }
 0x6be   : > { %v1640_v2 = vpop.f32.mrf.mxu0 }
 0x6bf   : > { %v1658_v59 = vpack.c.bf16 %v1640_v2, %v1638_v48 }
 0x6c1   : > { %3068 = vmatmul.msk.bf16.vlgmr.msrb.gmra.mxu2 %vm1278_vm13, %v1658_v59 }
 0x6c3   : > { %2114 = vadd.xlane.f32.xlu2 %v2113_v31 }
 0x6c6   : > { %v1643_v36 = vpop.f32.mrf.mxu0 }
 0x6ce   : > { %v1645_v11 = vpop.f32.mrf.mxu0 }
 0x6cf   : > { %v1659_v20 = vpack.c.bf16 %v1645_v11, %v1643_v36 }
 0x6d1   : > { %3069 = vmatmul.msk.bf16.gmra.mxu2 %vm1278_vm13, %v1659_v20 }
 0x6d6   : > { %v1648_v25 = vpop.f32.mrf.mxu0 }
 0x6de   : > { %v1650_v54 = vpop.f32.mrf.mxu0 }
 0x6df   : > { %v1660_v21 = vpack.c.bf16 %v1650_v54, %v1648_v25 }
 0x6e1   : > { %3070 = vmatmul.msk.bf16.gmra.mxu2 %vm1278_vm13, %v1660_v21 }
 0x6e6   : > { %v1653_v57 = vpop.f32.mrf.mxu0 }
 0x6ed   : > { %v2106_v34 = vpop.xlane.xlu1 %2105 }
 0x6ee   : > { %v1655_v35 = vpop.f32.mrf.mxu0  ;;  %3354 = vrcp.f32 %v2106_v34 }
 0x6ef   : > { %v1661_v39 = vpack.c.bf16 %v1655_v35, %v1653_v57 }
 0x6f1   : > { %3071 = vmatmul.msk.bf16.gmra.mxu2 %vm1278_vm13, %v1661_v39  ;;  %v2193_v39 = vld [vmem:[%s4640_s24 + $0xc] sm:$0xf] }
 0x6f4   : > { %v3355_v62 = vpop.eup %3354 }
 0x6f5   : > { %v2109_v38 = vpop.xlane.xlu1 %2108  ;;  %v2103_v1 = vpop.xlane.xlu2 %2102  ;;  %v2134_v45 = vmul.f32 %v3355_v62, %v4223_v15 }
 0x6f6   : > { %3356 = vrcp.f32 %v2103_v1 }
 0x6fc   : > { %v3357_v44 = vpop.eup %3356 }
 0x6fd   : > { %v1868_v61 = vpop.xlane.xlu1 %1867  ;;  %v2133_v53 = vmul.f32 %v3357_v44, %v4235_v27  ;;  %v2146_v23 = vpop.permute.xlu2 %2145 }
 0x6fe   : > { %2167 = vmatpush.bf16.msrb.mxu1 %v2146_v23  ;;  %v2112_v63 = vpop.xlane.xlu0 %2111 }
 0x6ff   : > { %v2141_v46 = vpack.c.bf16 %v2134_v45, %v2133_v53  ;;  %3358 = vrcp.f32 %v2112_v63 }
 0x700   : > { %3360 = vrcp.f32 %v1868_v61 }
 0x701   : > { %3092 = vmatmul.msk.bf16.vlgmr.msrb.gmra.mxu1 %vm1323_vm14, %v2141_v46  ;;  %3362 = vrcp.f32 %v2109_v38 }
 0x705   : > { %v1871_v5 = vpop.xlane.xlu1 %1870  ;;  %v3359_v26 = vpop.eup %3358 }
 0x706   : > { %3364 = vrcp.f32 %v1871_v5  ;;  %v3361_v16 = vpop.eup %3360  ;;  %v2136_v27 = vmul.f32 %v3359_v26, %v4243_v4 }
 0x707   : > { %v3363_v10 = vpop.eup %3362  ;;  %v1890_v13 = vmul.f32 %v3361_v16, %v4241_v32 }
 0x708   : > { %v2135_v60 = vmul.f32 %v3363_v10, %v4229_v22 }
 0x70a   : > { %v2142_v41 = vpack.c.bf16 %v2136_v27, %v2135_v60 }
 0x70c   : > { %v3365_v15 = vpop.eup %3364 }
 0x70d   : > { %v1874_v12 = vpop.xlane.xlu1 %1873  ;;  %v1891_v55 = vmul.f32 %v3365_v15, %v4251_v42 }
 0x70e   : > { %3366 = vrcp.f32 %v1874_v12 }
 0x70f   : > { %v1896_v7 = vpack.c.bf16 %v1891_v55, %v1890_v13 }
 0x711   : > { %3082 = vmatmul.msk.bf16.gmra.mxu0 %vm1323_vm14, %v1896_v7  ;;  %3093 = vmatmul.msk.bf16.gmra.mxu1 %vm1323_vm14, %v2142_v41 }
 0x714   : > { %v3367_v32 = vpop.eup %3366 }
 0x715   : > { %v2118_v37 = vpop.xlane.xlu1 %2117  ;;  %v1922_v49 = vpop.f32.mrf.mxu0  ;;  %v1892_v22 = vmul.f32 %v3367_v32, %v4262_v56  ;;  %v4337_v32 = vld [vmem:[%s4642_s22] ss:$0 sm:$0xff] }
 0x71d   : > { %v1877_v17 = vpop.xlane.xlu1 %1876  ;;  %v1924_v47 = vpop.f32.mrf.mxu0 }
 0x71e   : > { %3368 = vrcp.f32 %v1877_v17  ;;  %v1942_v4 = vpack.c.bf16 %v1924_v47, %v1922_v49 }
 0x71f   : > { %3370 = vrcp.f32 %v2118_v37 }
 0x720   : > { %3084 = vmatmul.msk.bf16.vlgmr.msra.gmra.mxu2 %vm1278_vm13, %v1942_v4 }
 0x724   : > { %v3369_v58 = vpop.eup %3368 }
 0x725   : > { %v1927_v42 = vpop.f32.mrf.mxu0  ;;  %v1893_v40 = vmul.f32 %v3369_v58, %v4280_v51  ;;  %v3371_v31 = vpop.eup %3370  ;;  %v3410_v58 = vld [vmem:[#allocation2] sm:$0xff] }
 0x726   : > { %v2138_v11 = vmul.f32 %v3371_v31, %v4271_v9  ;;  %v2124_v56 = vpop.xlane.xlu1 %2123  ;;  %v2121_v51 = vpop.xlane.xlu0 %2120  ;;  %v2207_v9 = vsel %vm1675_vm15, %v2193_v39, 0  ;;  %v3411_v31 = vld [vmem:[#allocation2 + $0x8] sm:$0xff] }
 0x727   : > { %v1897_v0 = vpack.c.bf16 %v1893_v40, %v1892_v22  ;;  %2216 = vmatpush.bf16.msrb.mxu0 %v2207_v9 }
 0x729   : > { %3083 = vmatmul.msk.bf16.gmra.mxu0 %vm1323_vm14, %v1897_v0 }
 0x72d   : > { %v1929_v48 = vpop.f32.mrf.mxu0 }
 0x72e   : > { %v1943_v2 = vpack.c.bf16 %v1929_v48, %v1927_v42 }
 0x730   : > { %3085 = vmatmul.msk.bf16.gmra.mxu2 %vm1278_vm13, %v1943_v2 }
 0x736   : > { %v2115_v59 = vpop.xlane.xlu2 %2114 }
 0x737   : > { %3372 = vrcp.f32 %v2115_v59 }
 0x738   : > { %3374 = vrcp.f32 %v2124_v56 }
 0x739   : > { %3376 = vrcp.f32 %v2121_v51 }
 0x73d   : > { %v3373_v36 = vpop.eup %3372 }
 0x73e   : > { %v2137_v20 = vmul.f32 %v3373_v36, %v4291_v29  ;;  %v3375_v54 = vpop.eup %3374 }
 0x73f   : > { %v3377_v21 = vpop.eup %3376  ;;  %v2140_v57 = vmul.f32 %v3375_v54, %v4285_v18  ;;  %v3412_v54 = vld [vmem:[#allocation2 + $0x10] sm:$0xff] }
 0x740   : > { %v2143_v25 = vpack.c.bf16 %v2138_v11, %v2137_v20  ;;  %v2139_v34 = vmul.f32 %v3377_v21, %v4253_v24 }
 0x742   : > { %3094 = vmatmul.msk.bf16.gmra.mxu1 %vm1323_vm14, %v2143_v25  ;;  %v2144_v35 = vpack.c.bf16 %v2140_v57, %v2139_v34 }
 0x744   : > { %v1688_v23 = vpop.f32.mrf.mxu2 }
 0x745   : > { %v1733_v37 = vadd.f32 %v4077_v3, %v1688_v23 }
 0x74c   : > { %v1690_v46 = vpop.f32.mrf.mxu2 }
 0x74d   : > { %v1735_v22 = vadd.f32 %v4083_v6, %v1690_v46 }
 0x752   : > { %3095 = vmatmul.msk.bf16.gmra.mxu1 %vm1323_vm14, %v2144_v35 }
 0x754   : > { %v1693_v5 = vpop.f32.mrf.mxu2 }
 0x755   : > { %v1738_v11 = vadd.f32 %v4089_v8, %v1693_v5 }
 0x75c   : > { %v1695_v10 = vpop.f32.mrf.mxu2 }
 0x75d   : > { %v1740_v34 = vadd.f32 %v4095_v14, %v1695_v10  ;;  %v3415_v10 = vld [vmem:[#allocation2 + $0x28] sm:$0xff] }
 0x764   : > { %v1698_v27 = vpop.f32.mrf.mxu2 }
 0x76c   : > { %v1700_v55 = vpop.f32.mrf.mxu2 }
 0x774   : > { %v1703_v60 = vpop.f32.mrf.mxu2 }
 0x77c   : > { %v4329_v7 = vpop.f32.mrf.mxu2 }
 0x77e   : > { %v2169_v29 = vpop.f32.mrf.mxu1 }
 0x786   : > { %v2171_v38 = vpop.f32.mrf.mxu1 }
 0x787   : > { %v2189_v1 = vpack.c.bf16 %v2171_v38, %v2169_v29  ;;  %v3413_v38 = vld [vmem:[#allocation2 + $0x18] sm:$0xff] }
 0x789   : > { %3096 = vmatmul.msk.bf16.vlgmr.msrb.gmra.mxu0 %vm1278_vm13, %v2189_v1 }
 0x78e   : > { %v1932_v62 = vpop.f32.mrf.mxu0  ;;  %v2174_v44 = vpop.f32.mrf.mxu1 }
 0x796   : > { %v1934_v61 = vpop.f32.mrf.mxu0  ;;  %v2176_v45 = vpop.f32.mrf.mxu1 }
 0x797   : > { %v1944_v52 = vpack.c.bf16 %v1934_v61, %v1932_v62  ;;  %v2190_v18 = vpack.c.bf16 %v2176_v45, %v2174_v44  ;;  %v1743_v61 = vadd.f32 %v4102_v19, %v1698_v27  ;;  %v1748_v27 = vadd.f32 %v4116_v33, %v1703_v60 }
 0x798   : > { %v1750_v60 = vadd.f32 %v4123_v43, %v4329_v7 }
 0x799   : > { %3086 = vmatmul.msk.bf16.gmra.mxu2 %vm1278_vm13, %v1944_v52  ;;  %3097 = vmatmul.msk.bf16.gmra.mxu0 %vm1278_vm13, %v2190_v18 }
 0x7a3   : > { %v1971_v41 = vpop.f32.mrf.mxu2 }
 0x7a4   : > { %v1991_v49 = vadd.f32 %v1971_v41, %v1733_v37  ;;  %v3416_v37 = vld [vmem:[#allocation2 + $0x30] sm:$0xff] }
 0x7a6   : > { %v1937_v24 = vpop.f32.mrf.mxu0 }
 0x7ab   : > { %v1973_v17 = vpop.f32.mrf.mxu2 }
 0x7ac   : > { %v1992_v0 = vadd.f32 %v1973_v17, %v1735_v22 }
 0x7ae   : > { %v1939_v53 = vpop.f32.mrf.mxu0 }
 0x7af   : > { %v1945_v50 = vpack.c.bf16 %v1939_v53, %v1937_v24  ;;  %v3414_v24 = vld [vmem:[#allocation2 + $0x20] sm:$0xff] }
 0x7b1   : > { %3087 = vmatmul.msk.bf16.gmra.mxu2 %vm1278_vm13, %v1945_v50  ;;  %v1745_v50 = vadd.f32 %v4109_v28, %v1700_v55 }
 0x7b3   : > { %v1976_v59 = vpop.f32.mrf.mxu2 }
 0x7b4   : > { %v1993_v56 = vadd.f32 %v1976_v59, %v1738_v11 }
 0x7bb   : > { %v1978_v57 = vpop.f32.mrf.mxu2 }
 0x7bc   : > { %v1994_v39 = vadd.f32 %v1978_v57, %v1740_v34 }
 0x7bf   : > { %v2179_v63 = vpop.f32.mrf.mxu1 }
 0x7c7   : > { %v2181_v26 = vpop.f32.mrf.mxu1 }
 0x7c8   : > { %v2191_v16 = vpack.c.bf16 %v2181_v26, %v2179_v63 }
 0x7ca   : > { %3098 = vmatmul.msk.bf16.gmra.mxu0 %vm1278_vm13, %v2191_v16 }
 0x7cf   : > { %v2184_v15 = vpop.f32.mrf.mxu1 }
 0x7d7   : > { %v2186_v12 = vpop.f32.mrf.mxu1 }
 0x7d8   : > { %v2192_v13 = vpack.c.bf16 %v2186_v12, %v2184_v15 }
 0x7da   : > { %3099 = vmatmul.msk.bf16.gmra.mxu0 %vm1278_vm13, %v2192_v13 }
 0x806   : > { %v2218_v47 = vpop.f32.mrf.mxu0 }
 0x807   : > { %v2238_v4 = vadd.f32 %v2218_v47, %v1991_v49 }
 0x809   : > { %v2246_v42 = vadd.f32 %v3410_v58, %v2238_v4 }
 0x80b   : > { %v4341_v40 = vadd.f32 %v4337_v32, %v2246_v42 }
 0x80d   : > { %v2268_v3 = vsel %vm904_vm1, %v4341_v40, 0.0 }
 0x80e   : > { %2269 = vadd.xlane.f32.xlu0 %v2268_v3  ;;  %v2220_v48 = vpop.f32.mrf.mxu0 }
 0x80f   : > { %v2239_v2 = vadd.f32 %v2220_v48, %v1992_v0 }
 0x811   : > { %v2247_v36 = vadd.f32 %v3411_v31, %v2239_v2  ;;  %v3417_v2 = vld [vmem:[#allocation2 + $0x38] sm:$0xff] }
 0x813   : > { %v4347_v20 = vadd.f32 %v4337_v32, %v2247_v36 }
 0x815   : > { %v2271_v6 = vsel %vm904_vm1, %v4347_v20, 0.0 }
 0x816   : > { %2272 = vadd.xlane.f32.xlu1 %v2271_v6  ;;  %v2223_v25 = vpop.f32.mrf.mxu0 }
 0x817   : > { %v2240_v51 = vadd.f32 %v2223_v25, %v1993_v56 }
 0x819   : > { %v2248_v21 = vadd.f32 %v3412_v54, %v2240_v51 }
 0x81b   : > { %v4353_v35 = vadd.f32 %v4337_v32, %v2248_v21 }
 0x81c   : > { %v1981_v14 = vpop.f32.mrf.mxu2 }
 0x81d   : > { %v2274_v8 = vsel %vm904_vm1, %v4353_v35, 0.0  ;;  %v1995_v52 = vadd.f32 %v1981_v14, %v1743_v61 }
 0x81e   : > { %2275 = vadd.xlane.f32.xlu0 %v2274_v8  ;;  %v2225_v9 = vpop.f32.mrf.mxu0 }
 0x81f   : > { %v2241_v29 = vadd.f32 %v2225_v9, %v1994_v39 }
 0x821   : > { %v2249_v1 = vadd.f32 %v3413_v38, %v2241_v29 }
 0x823   : > { %v4358_v62 = vadd.f32 %v4337_v32, %v2249_v1 }
 0x824   : > { %v1983_v23 = vpop.f32.mrf.mxu2 }
 0x825   : > { %v2277_v44 = vsel %vm904_vm1, %v4358_v62, 0.0  ;;  %v1996_v63 = vadd.f32 %v1983_v23, %v1745_v50 }
 0x826   : > { %2278 = vadd.xlane.f32.xlu2 %v2277_v44 }
 0x834   : > { %v1986_v15 = vpop.f32.mrf.mxu2 }
 0x835   : > { %v1997_v13 = vadd.f32 %v1986_v15, %v1748_v27  ;;  %v3162_v27 = vld [vmem:[%s3658_s18] sm:$0xff] }
 0x83c   : > { %v1988_v33 = vpop.f32.mrf.mxu2 }
 0x83d   : > { %v1998_v42 = vadd.f32 %v1988_v33, %v1750_v60 }
 0x847   : > { %v2228_v45 = vpop.f32.mrf.mxu0 }
 0x848   : > { %v2242_v18 = vadd.f32 %v2228_v45, %v1995_v52 }
 0x84a   : > { %v2250_v53 = vadd.f32 %v3414_v24, %v2242_v18 }
 0x84c   : > { %v4365_v46 = vadd.f32 %v4337_v32, %v2250_v53 }
 0x84e   : > { %v2280_v5 = vsel %vm904_vm1, %v4365_v46, 0.0 }
 0x84f   : > { %2281 = vadd.xlane.f32.xlu1 %v2280_v5  ;;  %v2230_v26 = vpop.f32.mrf.mxu0 }
 0x850   : > { %v2243_v16 = vadd.f32 %v2230_v26, %v1996_v63 }
 0x852   : > { %v2251_v19 = vadd.f32 %v3415_v10, %v2243_v16 }
 0x854   : > { %v4371_v12 = vadd.f32 %v4337_v32, %v2251_v19  ;;  %v3163_v19 = vld [vmem:[%s3658_s18 + $0x8] sm:$0xff] }
 0x855   : > { %2508 = vmatpush.bf16.msrb.mxu2 %v3163_v19 }
 0x856   : > { %v2283_v28 = vsel %vm904_vm1, %v4371_v12, 0.0 }
 0x857   : > { %2284 = vadd.xlane.f32.xlu0 %v2283_v28  ;;  %v2233_v55 = vpop.f32.mrf.mxu0 }
 0x858   : > { %v2244_v41 = vadd.f32 %v2233_v55, %v1997_v13 }
 0x859   : > { %2509 = vmatpush.bf16.msrb.mxu2 %v3162_v27 }
 0x85a   : > { %v2252_v49 = vadd.f32 %v3416_v37, %v2244_v41 }
 0x85c   : > { %v4376_v17 = vadd.f32 %v4337_v32, %v2252_v49 }
 0x85e   : > { %v2286_v47 = vsel %vm904_vm1, %v4376_v17, 0.0 }
 0x85f   : > { %2287 = vadd.xlane.f32.xlu0 %v2286_v47  ;;  %v2235_v4 = vpop.f32.mrf.mxu0 }
 0x860   : > { %v2245_v0 = vadd.f32 %v2235_v4, %v1998_v42 }
 0x862   : > { %v2253_v59 = vadd.f32 %v3417_v2, %v2245_v0 }
 0x864   : > { %v4391_v7 = vadd.f32 %v4337_v32, %v2253_v59 }
 0x866   : > { %v2289_v25 = vsel %vm904_vm1, %v4391_v7, 0.0 }
 0x881   : > { %v2270_v58 = vpop.xlane.xlu0 %2269 }
 0x882   : > { %v2292_v22 = vmul.f32 %v2270_v58, %v3688_v30 }
 0x884   : > { %v4384_v3 = vsub.f32 %v4341_v40, %v2292_v22 }
 0x886   : > { %v2308_v48 = vmul.f32 %v4384_v3, %v4384_v3 }
 0x888   : > { %v2316_v31 = vsel %vm904_vm1, %v2308_v48, 0.0 }
 0x889   : > { %v2273_v36 = vpop.xlane.xlu1 %2272  ;;  %2317 = vadd.xlane.f32.xlu2 %v2316_v31 }
 0x88a   : > { %v2293_v43 = vmul.f32 %v2273_v36, %v3688_v30 }
 0x88c   : > { %v4394_v11 = vsub.f32 %v4347_v20, %v2293_v43 }
 0x88e   : > { %v2309_v56 = vmul.f32 %v4394_v11, %v4394_v11 }
 0x890   : > { %v2319_v6 = vsel %vm904_vm1, %v2309_v56, 0.0 }
 0x891   : > { %v2276_v51 = vpop.xlane.xlu0 %2275  ;;  %2320 = vadd.xlane.f32.xlu1 %v2319_v6  ;;  %2290 = vadd.xlane.f32.xlu2 %v2289_v25 }
 0x892   : > { %v2294_v54 = vmul.f32 %v2276_v51, %v3688_v30 }
 0x894   : > { %v4403_v21 = vsub.f32 %v4353_v35, %v2294_v54 }
 0x896   : > { %v2310_v32 = vmul.f32 %v4403_v21, %v4403_v21 }
 0x898   : > { %v2322_v57 = vsel %vm904_vm1, %v2310_v32, 0.0 }
 0x899   : > { %2323 = vadd.xlane.f32.xlu1 %v2322_v57  ;;  %v2279_v34 = vpop.xlane.xlu2 %2278  ;;  %v4454_v57 = vld [vmem:[%s4644_s1] ss:$0 sm:$0xff] }
 0x89a   : > { %v2295_v39 = vmul.f32 %v2279_v34, %v3688_v30 }
 0x89c   : > { %v4410_v8 = vsub.f32 %v4358_v62, %v2295_v39 }
 0x89e   : > { %v2311_v9 = vmul.f32 %v4410_v8, %v4410_v8 }
 0x8a0   : > { %v2325_v29 = vsel %vm904_vm1, %v2311_v9, 0.0 }
 0x8a1   : > { %2326 = vadd.xlane.f32.xlu0 %v2325_v29 }
 0x8c2   : > { %v2282_v38 = vpop.xlane.xlu1 %2281 }
 0x8c3   : > { %v2296_v1 = vmul.f32 %v2282_v38, %v3688_v30 }
 0x8c5   : > { %v4417_v44 = vsub.f32 %v4365_v46, %v2296_v1 }
 0x8c7   : > { %v2312_v14 = vmul.f32 %v4417_v44, %v4417_v44 }
 0x8c9   : > { %v2328_v61 = vsel %vm904_vm1, %v2312_v14, 0.0  ;;  %v4462_v14 = vld [vmem:[%s4645_s19] ss:$0 sm:$0xff] }
 0x8ca   : > { %v2285_v52 = vpop.xlane.xlu0 %2284  ;;  %2329 = vadd.xlane.f32.xlu2 %v2328_v61 }
 0x8cb   : > { %v2297_v45 = vmul.f32 %v2285_v52, %v3688_v30 }
 0x8cd   : > { %v4424_v18 = vsub.f32 %v4371_v12, %v2297_v45 }
 0x8cf   : > { %v2313_v24 = vmul.f32 %v4424_v18, %v4424_v18 }
 0x8d1   : > { %v2331_v53 = vsel %vm904_vm1, %v2313_v24, 0.0 }
 0x8d2   : > { %2332 = vadd.xlane.f32.xlu1 %v2331_v53  ;;  %v2288_v23 = vpop.xlane.xlu0 %2287 }
 0x8d3   : > { %v2298_v50 = vmul.f32 %v2288_v23, %v3688_v30 }
 0x8d5   : > { %v4431_v63 = vsub.f32 %v4376_v17, %v2298_v50 }
 0x8d7   : > { %v2314_v5 = vmul.f32 %v4431_v63, %v4431_v63 }
 0x8d9   : > { %v2334_v26 = vsel %vm904_vm1, %v2314_v5, 0.0 }
 0x8da   : > { %2335 = vadd.xlane.f32.xlu0 %v2334_v26 }
 0x8fc   : > { %v2318_v16 = vpop.xlane.xlu2 %2317 }
 0x8fd   : > { %v2340_v10 = vmul.f32 %v2318_v16, %v3688_v30 }
 0x8ff   : > { %v2348_v15 = vadd.f32 1e-05, %v2340_v10 }
 0x901   : > { %3378 = vrsqrt.f32 %v2348_v15  ;;  %vm2362_vm2 = vweird.f32 %v2348_v15 }
 0x904   : > { %v2321_v13 = vpop.xlane.xlu1 %2320  ;;  %v2291_v28 = vpop.xlane.xlu2 %2290 }
 0x905   : > { %v2341_v55 = vmul.f32 %v2321_v13, %v3688_v30  ;;  %v2299_v41 = vmul.f32 %v2291_v28, %v3688_v30 }
 0x907   : > { %v3379_v37 = vpop.eup %3378  ;;  %v2349_v49 = vadd.f32 1e-05, %v2341_v55  ;;  %v4442_v47 = vsub.f32 %v4391_v7, %v2299_v41 }
 0x908   : > { %v2357_v33 = vmul.f32 %v3379_v37, %v2348_v15  ;;  %vm2363_vm0 = vweird.f32 %v3379_v37 }
 0x909   : > { %3380 = vrsqrt.f32 %v2349_v49  ;;  %v2315_v60 = vmul.f32 %v4442_v47, %v4442_v47  ;;  %vm2364_vm3 = vmor %vm2362_vm2, %vm2363_vm0  ;;  %vm2372_vm5 = vweird.f32 %v2349_v49 }
 0x90a   : > { %v2358_v4 = vmul.f32 %v3379_v37, %v2357_v33 }
 0x90b   : > { %v2337_v58 = vsel %vm904_vm1, %v2315_v60, 0.0 }
 0x90c   : > { %v2359_v42 = vmul.f32 0.5, %v2358_v4  ;;  %v2324_v22 = vpop.xlane.xlu1 %2323  ;;  %2338 = vadd.xlane.f32.xlu2 %v2337_v58 }
 0x90d   : > { %v2342_v0 = vmul.f32 %v2324_v22, %v3688_v30 }
 0x90e   : > { %v2360_v48 = vsub.f32 1.5, %v2359_v42 }
 0x90f   : > { %v3381_v2 = vpop.eup %3380  ;;  %v2350_v59 = vadd.f32 1e-05, %v2342_v0 }
 0x910   : > { %v2361_v31 = vmul.f32 %v3379_v37, %v2360_v48  ;;  %v2367_v36 = vmul.f32 %v3381_v2, %v2349_v49  ;;  %vm2373_vm4 = vweird.f32 %v3381_v2 }
 0x911   : > { %3382 = vrsqrt.f32 %v2350_v59  ;;  %vm2374_vm6 = vmor %vm2372_vm5, %vm2373_vm4  ;;  %vm2382_vm8 = vweird.f32 %v2350_v59 }
 0x912   : > { %v2368_v43 = vmul.f32 %v3381_v2, %v2367_v36  ;;  %v2365_v56 = vsel %vm2364_vm3, %v3379_v37, %v2361_v31 }
 0x913   : > { %v2436_v34 = vmul.f32 %v2365_v56, %v4384_v3 }
 0x914   : > { %v2369_v6 = vmul.f32 0.5, %v2368_v43  ;;  %v2327_v25 = vpop.xlane.xlu0 %2326 }
 0x915   : > { %v2343_v51 = vmul.f32 %v2327_v25, %v3688_v30  ;;  %v2447_v61 = vmul.f32 %v4454_v57, %v2436_v34 }
 0x916   : > { %v2370_v54 = vsub.f32 1.5, %v2369_v6 }
 0x917   : > { %v3383_v32 = vpop.eup %3382  ;;  %v2351_v39 = vadd.f32 1e-05, %v2343_v51  ;;  %v2458_v23 = vadd.f32 %v4462_v14, %v2447_v61 }
 0x918   : > { %v2371_v9 = vmul.f32 %v3381_v2, %v2370_v54  ;;  %v2377_v29 = vmul.f32 %v3383_v32, %v2350_v59  ;;  %vm2383_vm7 = vweird.f32 %v3383_v32 }
 0x919   : > { %3384 = vrsqrt.f32 %v2351_v39  ;;  %vm2384_vm9 = vmor %vm2382_vm8, %vm2383_vm7  ;;  %vm2392_vm11 = vweird.f32 %v2351_v39 }
 0x91a   : > { %v2375_v38 = vsel %vm2374_vm6, %v3381_v2, %v2371_v9  ;;  %v2378_v1 = vmul.f32 %v3383_v32, %v2377_v29 }
 0x91b   : > { %v2437_v52 = vmul.f32 %v2375_v38, %v4394_v11 }
 0x91c   : > { %v2379_v45 = vmul.f32 0.5, %v2378_v1 }
 0x91d   : > { %v2448_v3 = vmul.f32 %v4454_v57, %v2437_v52 }
 0x91e   : > { %v2380_v24 = vsub.f32 1.5, %v2379_v45 }
 0x91f   : > { %v3385_v53 = vpop.eup %3384  ;;  %v2459_v50 = vadd.f32 %v4462_v14, %v2448_v3 }
 0x920   : > { %v2381_v5 = vmul.f32 %v3383_v32, %v2380_v24  ;;  %v2387_v26 = vmul.f32 %v3385_v53, %v2351_v39  ;;  %vm2393_vm10 = vweird.f32 %v3385_v53 }
 0x921   : > { %v2466_v16 = vpack.c.bf16 %v2459_v50, %v2458_v23  ;;  %vm2394_vm12 = vmor %vm2392_vm11, %vm2393_vm10 }
 0x922   : > { %v2388_v10 = vmul.f32 %v3385_v53, %v2387_v26  ;;  %v2385_v19 = vsel %vm2384_vm9, %v3383_v32, %v2381_v5 }
 0x923   : > { %3108 = vmatmul.msk.bf16.vlgmr.msrb.gmra.mxu2 %vm904_vm1, %v2466_v16  ;;  %v2438_v27 = vmul.f32 %v2385_v19, %v4403_v21 }
 0x924   : > { %v2389_v11 = vmul.f32 0.5, %v2388_v10 }
 0x925   : > { %v2449_v41 = vmul.f32 %v4454_v57, %v2438_v27 }
 0x926   : > { %v2390_v15 = vsub.f32 1.5, %v2389_v11 }
 0x927   : > { %v2460_v49 = vadd.f32 %v4462_v14, %v2449_v41 }
 0x928   : > { %v2391_v13 = vmul.f32 %v3385_v53, %v2390_v15  ;;  %v3171_v15 = vld [vmem:[%s3672_s12 + $0x38] sm:$0xff] }
 0x929   : > { %2671 = vmatpush.bf16.msrb.mxu3 %v3171_v15 }
 0x92a   : > { %v2395_v28 = vsel %vm2394_vm12, %v3385_v53, %v2391_v13 }
 0x92b   : > { %v2439_v55 = vmul.f32 %v2395_v28, %v4410_v8 }
 0x92d   : > { %v2450_v37 = vmul.f32 %v4454_v57, %v2439_v55  ;;  %v3170_v55 = vld [vmem:[%s3672_s12 + $0x30] sm:$0xff] }
 0x92e   : > { %2672 = vmatpush.bf16.msrb.mxu3 %v3170_v55 }
 0x92f   : > { %v2461_v33 = vadd.f32 %v4462_v14, %v2450_v37 }
 0x931   : > { %v2467_v60 = vpack.c.bf16 %v2461_v33, %v2460_v49  ;;  %v3169_v49 = vld [vmem:[%s3672_s12 + $0x28] sm:$0xff] }
 0x932   : > { %2673 = vmatpush.bf16.msrb.mxu3 %v3169_v49 }
 0x933   : > { %3109 = vmatmul.msk.bf16.gmra.mxu2 %vm904_vm1, %v2467_v60 }
 0x93d   : > { %v2330_v4 = vpop.xlane.xlu2 %2329 }
 0x93e   : > { %v2344_v21 = vmul.f32 %v2330_v4, %v3688_v30 }
 0x940   : > { %v2352_v58 = vadd.f32 1e-05, %v2344_v21 }
 0x942   : > { %3386 = vrsqrt.f32 %v2352_v58  ;;  %vm2402_vm14 = vweird.f32 %v2352_v58 }
 0x945   : > { %v2333_v42 = vpop.xlane.xlu1 %2332 }
 0x946   : > { %v2345_v22 = vmul.f32 %v2333_v42, %v3688_v30 }
 0x948   : > { %v3387_v8 = vpop.eup %3386  ;;  %v2353_v0 = vadd.f32 1e-05, %v2345_v22 }
 0x949   : > { %v2397_v48 = vmul.f32 %v3387_v8, %v2352_v58  ;;  %vm2403_vm13 = vweird.f32 %v3387_v8  ;;  %v3168_v58 = vld [vmem:[%s3672_s12 + $0x20] sm:$0xff] }
 0x94a   : > { %3388 = vrsqrt.f32 %v2353_v0  ;;  %vm2404_vm15 = vmor %vm2402_vm14, %vm2403_vm13  ;;  %vm2412_vm2 = vweird.f32 %v2353_v0  ;;  %2674 = vmatpush.bf16.msrb.mxu3 %v3168_v58 }
 0x94b   : > { %v2398_v2 = vmul.f32 %v3387_v8, %v2397_v48 }
 0x94d   : > { %v2399_v59 = vmul.f32 0.5, %v2398_v2  ;;  %v2336_v45 = vpop.xlane.xlu0 %2335 }
 0x94f   : > { %v2400_v31 = vsub.f32 1.5, %v2399_v59 }
 0x950   : > { %v3389_v36 = vpop.eup %3388 }
 0x951   : > { %v2401_v43 = vmul.f32 %v3387_v8, %v2400_v31  ;;  %v2407_v56 = vmul.f32 %v3389_v36, %v2353_v0  ;;  %vm2413_vm0 = vweird.f32 %v3389_v36  ;;  %v3166_v0 = vld [vmem:[%s3672_s12 + $0x10] sm:$0xff] }
 0x952   : > { %vm2414_vm3 = vmor %vm2412_vm2, %vm2413_vm0 }
 0x953   : > { %v2408_v6 = vmul.f32 %v3389_v36, %v2407_v56  ;;  %v2405_v25 = vsel %vm2404_vm15, %v3387_v8, %v2401_v43  ;;  %v3167_v8 = vld [vmem:[%s3672_s12 + $0x18] sm:$0xff] }
 0x954   : > { %v2440_v32 = vmul.f32 %v2405_v25, %v4417_v44  ;;  %v2346_v44 = vmul.f32 %v2336_v45, %v3688_v30  ;;  %2675 = vmatpush.bf16.msrb.mxu3 %v3167_v8 }
 0x955   : > { %v2409_v51 = vmul.f32 0.5, %v2408_v6 }
 0x956   : > { %v2451_v29 = vmul.f32 %v4454_v57, %v2440_v32  ;;  %v2354_v3 = vadd.f32 1e-05, %v2346_v44 }
 0x957   : > { %v2410_v54 = vsub.f32 1.5, %v2409_v51 }
 0x958   : > { %v2462_v1 = vadd.f32 %v4462_v14, %v2451_v29  ;;  %3390 = vrsqrt.f32 %v2354_v3  ;;  %vm2422_vm5 = vweird.f32 %v2354_v3  ;;  %2676 = vmatpush.bf16.msrb.mxu3 %v3166_v0 }
 0x959   : > { %v2411_v34 = vmul.f32 %v3389_v36, %v2410_v54 }
 0x95b   : > { %v2415_v39 = vsel %vm2414_vm3, %v3389_v36, %v2411_v34 }
 0x95c   : > { %v2441_v9 = vmul.f32 %v2415_v39, %v4424_v18 }
 0x95e   : > { %v2452_v38 = vmul.f32 %v4454_v57, %v2441_v9  ;;  %v3391_v24 = vpop.eup %3390 }
 0x95f   : > { %v2417_v53 = vmul.f32 %v3391_v24, %v2354_v3  ;;  %vm2423_vm4 = vweird.f32 %v3391_v24 }
 0x960   : > { %v2463_v61 = vadd.f32 %v4462_v14, %v2452_v38  ;;  %vm2424_vm6 = vmor %vm2422_vm5, %vm2423_vm4 }
 0x961   : > { %v2418_v18 = vmul.f32 %v3391_v24, %v2417_v53 }
 0x962   : > { %v2468_v52 = vpack.c.bf16 %v2463_v61, %v2462_v1 }
 0x963   : > { %v2419_v26 = vmul.f32 0.5, %v2418_v18 }
 0x964   : > { %3110 = vmatmul.msk.bf16.gmra.mxu2 %vm904_vm1, %v2468_v52 }
 0x965   : > { %v2420_v16 = vsub.f32 1.5, %v2419_v26 }
 0x967   : > { %v2421_v19 = vmul.f32 %v3391_v24, %v2420_v16 }
 0x969   : > { %v2425_v13 = vsel %vm2424_vm6, %v3391_v24, %v2421_v19 }
 0x96a   : > { %v2442_v41 = vmul.f32 %v2425_v13, %v4431_v63 }
 0x96c   : > { %v2453_v4 = vmul.f32 %v4454_v57, %v2442_v41 }
 0x96e   : > { %v2464_v63 = vadd.f32 %v4462_v14, %v2453_v4 }
 0x97f   : > { %v2339_v23 = vpop.xlane.xlu2 %2338 }
 0x980   : > { %v2347_v50 = vmul.f32 %v2339_v23, %v3688_v30 }
 0x982   : > { %v2355_v5 = vadd.f32 1e-05, %v2347_v50 }
 0x984   : > { %3392 = vrsqrt.f32 %v2355_v5  ;;  %vm2432_vm8 = vweird.f32 %v2355_v5 }
 0x98a   : > { %v3393_v10 = vpop.eup %3392 }
 0x98b   : > { %v2427_v11 = vmul.f32 %v3393_v10, %v2355_v5  ;;  %vm2433_vm7 = vweird.f32 %v3393_v10 }
 0x98c   : > { %vm2434_vm9 = vmor %vm2432_vm8, %vm2433_vm7 }
 0x98d   : > { %v2428_v27 = vmul.f32 %v3393_v10, %v2427_v11 }
 0x98f   : > { %v2429_v28 = vmul.f32 0.5, %v2428_v27 }
 0x991   : > { %v2430_v30 = vsub.f32 1.5, %v2429_v28 }
 0x993   : > { %v2431_v37 = vmul.f32 %v3393_v10, %v2430_v30 }
 0x995   : > { %v2435_v33 = vsel %vm2434_vm9, %v3393_v10, %v2431_v37 }
 0x996   : > { %v2443_v60 = vmul.f32 %v2435_v33, %v4442_v47  ;;  %v4506_v47 = vld [vmem:[%s834_s10] ss:$0 sm:$0xff] }
 0x998   : > { %v2454_v21 = vmul.f32 %v4454_v57, %v2443_v60  ;;  %v3165_v57 = vld [vmem:[%s3672_s12 + $0x8] sm:$0xff] }
 0x999   : > { %2677 = vmatpush.bf16.msrb.mxu3 %v3165_v57 }
 0x99a   : > { %v2465_v42 = vadd.f32 %v4462_v14, %v2454_v21  ;;  %v3164_v14 = vld [vmem:[%s3672_s12] sm:$0xff] }
 0x99c   : > { %v2469_v22 = vpack.c.bf16 %v2465_v42, %v2464_v63 }
 0x99d   : > { %2678 = vmatpush.bf16.msrb.mxu3 %v3164_v14 }
 0x99e   : > { %3111 = vmatmul.msk.bf16.gmra.mxu2 %vm904_vm1, %v2469_v22 }
 0x9a6   : > { %v2511_v48 = vpop.f32.mrf.mxu2 }
 0x9a7   : > { %v2512_v2 = vadd.f32 %v4506_v47, %v2511_v48 }
 0x9a9   : > { %v2531_v59 = vmul.f32 %v2512_v2, %v2512_v2 }
 0x9ab   : > { %v2539_v31 = vmul.f32 %v2531_v59, %v2512_v2 }
 0x9ad   : > { %v2547_v36 = vmul.f32 0.044715, %v2539_v31 }
 0x9ae   : > { %v2513_v43 = vpop.f32.mrf.mxu2 }
 0x9af   : > { %v2555_v56 = vadd.f32 %v2547_v36, %v2512_v2  ;;  %v2514_v6 = vadd.f32 %v4506_v47, %v2513_v43 }
 0x9b1   : > { %v2563_v25 = vmul.f32 0.7978846, %v2555_v56  ;;  %v2532_v51 = vmul.f32 %v2514_v6, %v2514_v6 }
 0x9b3   : > { %v2540_v54 = vmul.f32 %v2532_v51, %v2514_v6  ;;  %3394 = vtanh.f32 %v2563_v25 }
 0x9b5   : > { %v2548_v32 = vmul.f32 0.044715, %v2540_v54 }
 0x9b6   : > { %v2516_v34 = vpop.f32.mrf.mxu2 }
 0x9b7   : > { %v2556_v39 = vadd.f32 %v2548_v32, %v2514_v6  ;;  %v2517_v9 = vadd.f32 %v4506_v47, %v2516_v34 }
 0x9b9   : > { %v2564_v29 = vmul.f32 0.7978846, %v2556_v39  ;;  %v2533_v38 = vmul.f32 %v2517_v9, %v2517_v9  ;;  %v3395_v1 = vpop.eup %3394 }
 0x9ba   : > { %v2579_v45 = vadd.f32 1.0, %v3395_v1 }
 0x9bb   : > { %3396 = vtanh.f32 %v2564_v29  ;;  %v2541_v61 = vmul.f32 %v2533_v38, %v2517_v9 }
 0x9bc   : > { %v2587_v50 = vmul.f32 0.5, %v2579_v45 }
 0x9bd   : > { %v2549_v52 = vmul.f32 0.044715, %v2541_v61 }
 0x9be   : > { %v2518_v44 = vpop.f32.mrf.mxu2  ;;  %v2595_v19 = vmul.f32 %v2587_v50, %v2512_v2 }
 0x9bf   : > { %v2557_v3 = vadd.f32 %v2549_v52, %v2517_v9  ;;  %v2519_v24 = vadd.f32 %v4506_v47, %v2518_v44 }
 0x9c1   : > { %v3397_v53 = vpop.eup %3396  ;;  %v2565_v18 = vmul.f32 0.7978846, %v2557_v3  ;;  %v2534_v23 = vmul.f32 %v2519_v24, %v2519_v24 }
 0x9c2   : > { %v2580_v5 = vadd.f32 1.0, %v3397_v53 }
 0x9c3   : > { %v2542_v26 = vmul.f32 %v2534_v23, %v2519_v24  ;;  %3398 = vtanh.f32 %v2565_v18 }
 0x9c4   : > { %v2588_v16 = vmul.f32 0.5, %v2580_v5 }
 0x9c5   : > { %v2550_v10 = vmul.f32 0.044715, %v2542_v26 }
 0x9c6   : > { %v2596_v11 = vmul.f32 %v2588_v16, %v2514_v6 }
 0x9c7   : > { %v2558_v15 = vadd.f32 %v2550_v10, %v2519_v24 }
 0x9c8   : > { %v2603_v27 = vpack.c.bf16 %v2596_v11, %v2595_v19 }
 0x9c9   : > { %v2566_v13 = vmul.f32 0.7978846, %v2558_v15  ;;  %v3399_v28 = vpop.eup %3398 }
 0x9ca   : > { %2679 = vmatmul.bf16.vlgmr.msrb.gmra.mxu3 %v2603_v27  ;;  %v2581_v55 = vadd.f32 1.0, %v3399_v28 }
 0x9cb   : > { %3400 = vtanh.f32 %v2566_v13 }
 0x9cc   : > { %v2589_v37 = vmul.f32 0.5, %v2581_v55 }
 0x9ce   : > { %v2597_v33 = vmul.f32 %v2589_v37, %v2517_v9 }
 0x9d1   : > { %v3401_v30 = vpop.eup %3400 }
 0x9d2   : > { %v2582_v41 = vadd.f32 1.0, %v3401_v30 }
 0x9d4   : > { %v2590_v49 = vmul.f32 0.5, %v2582_v41 }
 0x9d6   : > { %v2598_v60 = vmul.f32 %v2590_v49, %v2519_v24 }
 0x9d8   : > { %v2604_v4 = vpack.c.bf16 %v2598_v60, %v2597_v33 }
 0x9da   : > { %2684 = vmatmul.bf16.gmra.mxu3 %v2604_v4 }
 0x9e7   : > { %v2521_v21 = vpop.f32.mrf.mxu2 }
 0x9e8   : > { %v2522_v58 = vadd.f32 %v4506_v47, %v2521_v21 }
 0x9ea   : > { %v2535_v63 = vmul.f32 %v2522_v58, %v2522_v58 }
 0x9ec   : > { %v2543_v42 = vmul.f32 %v2535_v63, %v2522_v58 }
 0x9ee   : > { %v2551_v22 = vmul.f32 0.044715, %v2543_v42 }
 0x9ef   : > { %v2523_v8 = vpop.f32.mrf.mxu2 }
 0x9f0   : > { %v2559_v0 = vadd.f32 %v2551_v22, %v2522_v58  ;;  %v2524_v57 = vadd.f32 %v4506_v47, %v2523_v8 }
 0x9f2   : > { %v2567_v48 = vmul.f32 0.7978846, %v2559_v0  ;;  %v2536_v2 = vmul.f32 %v2524_v57, %v2524_v57 }
 0x9f4   : > { %v2544_v14 = vmul.f32 %v2536_v2, %v2524_v57  ;;  %3402 = vtanh.f32 %v2567_v48 }
 0x9f6   : > { %v2552_v59 = vmul.f32 0.044715, %v2544_v14 }
 0x9f8   : > { %v2560_v31 = vadd.f32 %v2552_v59, %v2524_v57 }
 0x9fa   : > { %v2568_v36 = vmul.f32 0.7978846, %v2560_v31  ;;  %v3403_v43 = vpop.eup %3402 }
 0x9fb   : > { %v2583_v56 = vadd.f32 1.0, %v3403_v43 }
 0x9fc   : > { %3404 = vtanh.f32 %v2568_v36 }
 0x9fd   : > { %v2591_v51 = vmul.f32 0.5, %v2583_v56 }
 0x9ff   : > { %v2599_v32 = vmul.f32 %v2591_v51, %v2522_v58 }
 0xa02   : > { %v3405_v6 = vpop.eup %3404 }
 0xa03   : > { %v2584_v25 = vadd.f32 1.0, %v3405_v6 }
 0xa05   : > { %v2592_v54 = vmul.f32 0.5, %v2584_v25 }
 0xa07   : > { %v2600_v34 = vmul.f32 %v2592_v54, %v2524_v57 }
 0xa09   : > { %v2605_v39 = vpack.c.bf16 %v2600_v34, %v2599_v32 }
 0xa0b   : > { %2689 = vmatmul.bf16.gmra.mxu3 %v2605_v39 }
 0xa21   : > { %v2526_v9 = vpop.f32.mrf.mxu2 }
 0xa22   : > { %v2527_v29 = vadd.f32 %v4506_v47, %v2526_v9 }
 0xa24   : > { %v2537_v38 = vmul.f32 %v2527_v29, %v2527_v29 }
 0xa26   : > { %v2545_v1 = vmul.f32 %v2537_v38, %v2527_v29 }
 0xa28   : > { %v2553_v61 = vmul.f32 0.044715, %v2545_v1 }
 0xa29   : > { %v2528_v52 = vpop.f32.mrf.mxu2 }
 0xa2a   : > { %v2561_v45 = vadd.f32 %v2553_v61, %v2527_v29  ;;  %v2529_v44 = vadd.f32 %v4506_v47, %v2528_v52  ;;  %v3231_v47 = vld [vmem:[%s842_s11] ss:$0 sm:$0xff]  ;;  %s4648_s11 = sld [smem:[#allocation3_spill]] }
 0xa2c   : > { %v2569_v3 = vmul.f32 0.7978846, %v2561_v45  ;;  %v2538_v24 = vmul.f32 %v2529_v44, %v2529_v44 }
 0xa2e   : > { %v2546_v53 = vmul.f32 %v2538_v24, %v2529_v44  ;;  %3406 = vtanh.f32 %v2569_v3 }
 0xa30   : > { %v2554_v18 = vmul.f32 0.044715, %v2546_v53  ;;  %p3144_p8 = scmp.ne.s32.totalorder %s4648_s11, 1 }
 0xa31   : > { %s3465_s20 = smov (!%p3144_p8), 32   ;;  %s3466_s16 = smov (!%p3144_p8), 64  }
 0xa32   : > { %v2562_v23 = vadd.f32 %v2554_v18, %v2529_v44  ;;  %s3467_s17 = smov (!%p3144_p8), 96  }
 0xa34   : > { %v2570_v50 = vmul.f32 0.7978846, %v2562_v23  ;;  %v3407_v5 = vpop.eup %3406 }
 0xa35   : > { %v2585_v26 = vadd.f32 1.0, %v3407_v5 }
 0xa36   : > { %3408 = vtanh.f32 %v2570_v50 }
 0xa37   : > { %v2593_v19 = vmul.f32 0.5, %v2585_v26 }
 0xa39   : > { %v2601_v15 = vmul.f32 %v2593_v19, %v2527_v29 }
 0xa3c   : > { %v3409_v16 = vpop.eup %3408 }
 0xa3d   : > { %v2586_v10 = vadd.f32 1.0, %v3409_v16 }
 0xa3f   : > { %v2594_v11 = vmul.f32 0.5, %v2586_v10 }
 0xa41   : > { %v2602_v27 = vmul.f32 %v2594_v11, %v2529_v44 }
 0xa43   : > { %v2606_v13 = vpack.c.bf16 %v2602_v27, %v2601_v15 }
 0xa45   : > { %2694 = vmatmul.bf16.gmra.mxu3 %v2606_v13 }
 0xa4d   : > { %v2680_v28 = vpop.f32.mrf.mxu3 }
 0xa4e   : > { %v2700_v55 = vadd.f32 %v2680_v28, %v4341_v40 }
 0xa50   : > { %v2712_v30 = vadd.f32 %v3231_v47, %v2700_v55 }
 0xa52   : > { %2720 = vst.msk [vmem:[#allocation2] sm:$0xff] %vm904_vm1, %v2712_v30 }
 0xa55   : > { %v2682_v41 = vpop.f32.mrf.mxu3 }
 0xa56   : > { %v2701_v37 = vadd.f32 %v2682_v41, %v4347_v20 }
 0xa58   : > { %v2713_v49 = vadd.f32 %v3231_v47, %v2701_v37 }
 0xa5a   : > { %2721 = vst.msk [vmem:[#allocation2 + $0x8] sm:$0xff] %vm904_vm1, %v2713_v49 }
 0xa5d   : > { %v2685_v33 = vpop.f32.mrf.mxu3 }
 0xa5e   : > { %v2702_v60 = vadd.f32 %v2685_v33, %v4353_v35 }
 0xa60   : > { %v2714_v4 = vadd.f32 %v3231_v47, %v2702_v60 }
 0xa62   : > { %2722 = vst.msk [vmem:[#allocation2 + $0x10] sm:$0xff] %vm904_vm1, %v2714_v4 }
 0xa65   : > { %v2687_v21 = vpop.f32.mrf.mxu3 }
 0xa66   : > { %v2703_v58 = vadd.f32 %v2687_v21, %v4358_v62 }
 0xa68   : > { %v2715_v63 = vadd.f32 %v3231_v47, %v2703_v58 }
 0xa6a   : > { %2723 = vst.msk [vmem:[#allocation2 + $0x18] sm:$0xff] %vm904_vm1, %v2715_v63 }
 0xa8e   : > { %v2690_v40 = vpop.f32.mrf.mxu3 }
 0xa8f   : > { %v2704_v42 = vadd.f32 %v2690_v40, %v4365_v46 }
 0xa91   : > { %v2716_v22 = vadd.f32 %v3231_v47, %v2704_v42 }
 0xa93   : > { %2724 = vst.msk [vmem:[#allocation2 + $0x20] sm:$0xff] %vm904_vm1, %v2716_v22 }
 0xa96   : > { %v2692_v20 = vpop.f32.mrf.mxu3 }
 0xa97   : > { %v2705_v8 = vadd.f32 %v2692_v20, %v4371_v12 }
 0xa99   : > { %v2717_v0 = vadd.f32 %v3231_v47, %v2705_v8 }
 0xa9b   : > { %2725 = vst.msk [vmem:[#allocation2 + $0x28] sm:$0xff] %vm904_vm1, %v2717_v0 }
 0xac8   : > { %v2695_v35 = vpop.f32.mrf.mxu3 }
 0xac9   : > { %v2706_v57 = vadd.f32 %v2695_v35, %v4376_v17 }
 0xacb   : > { %v2718_v48 = vadd.f32 %v3231_v47, %v2706_v57 }
 0xacd   : > { %2726 = vst.msk [vmem:[#allocation2 + $0x30] sm:$0xff] %vm904_vm1, %v2718_v48 }
 0xad0   : > { %v2697_v62 = vpop.f32.mrf.mxu3 }
 0xad1   : > { %v2707_v2 = vadd.f32 %v2697_v62, %v4391_v7  ;;  %2731 = sbr.rel (%p3144_p8) target bundleno = 2900 (0xb54), region = 100 }
 0xad3   : > { %v2719_v14 = vadd.f32 %v3231_v47, %v2707_v2 }
 0xad5   : > { %2727 = vst.msk [vmem:[#allocation2 + $0x38] sm:$0xff] %vm904_vm1, %v2719_v14 }
 0xad6   : > { %2732 = vst.msk [vmem:[%s3677_s5] sm:$0xff] %vm904_vm1, %v2712_v30  ;;  %2736 = vrot.lane.b32.xlu0 %v2714_v4, %s3465_s20  ;;  %2747 = vrot.lane.b32.xlu1 %v2716_v22, %s3466_s16  ;;  %vm2742_vm10 = vcmask 523520   ;;  %vm2753_vm11 = vcmask 785920   ;;  %vm2764_vm12 = vcmask 1048320  }
 0xad7   : > { %2733 = vst.msk [vmem:[%s3677_s5 + $0x8] sm:$0xff] %vm904_vm1, %v2713_v49  ;;  %2758 = vrot.lane.b32.xlu2 %v2718_v48, %s3467_s17 }
 0xade   : > { %2738 = vrot.lane.b32.xlu0 %v2715_v63, %s3465_s20  ;;  %2749 = vrot.lane.b32.xlu1 %v2717_v0, %s3466_s16 }
 0xadf   : > { %2760 = vrot.lane.b32.xlu2 %v2719_v14, %s3467_s17 }
 0xb31   : > { %v2759_v46 = vpop.permute.xlu2 %2758 }
 0xb39   : > { %v2761_v7 = vpop.permute.xlu2 %2760 }
 0xb48   : > { %v2737_v12 = vpop.permute.xlu0 %2736  ;;  %v2748_v17 = vpop.permute.xlu1 %2747 }
 0xb49   : > { %2743 = vst.msk [vmem:[%s3677_s5] sm:$0xff] %vm2742_vm10, %v2737_v12 }
 0xb4a   : > { %2754 = vst.msk [vmem:[%s3677_s5] sm:$0xff] %vm2753_vm11, %v2748_v17 }
 0xb4b   : > { %2765 = vst.msk [vmem:[%s3677_s5] sm:$0xff] %vm2764_vm12, %v2759_v46 }
 0xb50   : > { %v2739_v59 = vpop.permute.xlu0 %2738  ;;  %v2750_v31 = vpop.permute.xlu1 %2749 }
 0xb51   : > { %2744 = vst.msk [vmem:[%s3677_s5 + $0x8] sm:$0xff] %vm2742_vm10, %v2739_v59 }
 0xb52   : > { %2755 = vst.msk [vmem:[%s3677_s5 + $0x8] sm:$0xff] %vm2753_vm11, %v2750_v31 }
 0xb53   : > { %2766 = vst.msk [vmem:[%s3677_s5 + $0x8] sm:$0xff] %vm2764_vm12, %v2761_v7 }
 0xb54 PF: > { %s4649_s6 = sld [smem:[#allocation6_spill]] }
 0xb55   : > { %s4650_s27 = sld [smem:[#allocation4_spill]] }
 0xb56   : > { %s4651_s28 = sld [smem:[#allocation5_spill]] }
 0xb57   : > { %s4652_s29 = sld [smem:[#allocation7_spill]] }
 0xb58   : > { %s4653_s30 = sld [smem:[#allocation8_spill]] }
 0xb5a   : > { %s28_s0 = sadd.s32 1, %s4649_s6  }
 0xb5b   : > { %p25_p9 = scmp.ge.s32.totalorder %s28_s0, 6  }
 0xb5d   :  { %27 = sbr.rel (!%p25_p9) target bundleno = 15 (0xf), region = 178 }

</bundles_post_ra>
